<compile_context>
chip_gen: v6e
topology: v6e:2x2x1
jax: 0.10.0
libtpu: 0.0.40
codegen_flags: <defaults>
</compile_context>

<pallas_src>
import functools

import jax
import jax.numpy as jnp
from jax.experimental import pallas as pl
from jax.experimental.pallas import tpu as pltpu

CFG = dict(
    conv_feature_layers=[(24, 10, 5), (24, 3, 2), (24, 2, 2)],  # (dim, k, stride)
    encoder_embed_dim=32,
    encoder_layers=2,
    encoder_attention_heads=4,
    encoder_ffn_embed_dim=64,
    conv_pos=3,
    conv_pos_groups=2,
    layer_norm_eps=1e-5,
    # dropout / mask_prob / mask_channel_prob == 0.0  ->  identity at inference
)

_F32 = jnp.float32
_BF16 = jnp.bfloat16


# ------------------------------- math helpers --------------------------------

def _gelu(x):
    # Exact erf-GELU via the Abramowitz–Stegun 7.1.26 rational approximation of
    # erf (|err| < 1.5e-7).  Matches fairseq's exact GELU far better than the
    # tanh approximation while using only exp/abs/select (guaranteed Mosaic
    # lowering; avoids relying on lax.erf inside the kernel).
    z = x * 0.7071067811865476
    a = jnp.abs(z)
    t = 1.0 / (1.0 + 0.3275911 * a)
    poly = t * (0.254829592 + t * (-0.284496736 + t * (1.421413741
               + t * (-1.453152027 + t * 1.061405429))))
    erf_a = 1.0 - poly * jnp.exp(-a * a)
    erf_z = jnp.where(z >= 0.0, erf_a, -erf_a)
    return 0.5 * x * (1.0 + erf_z)


def _layer_norm(x, g, b, eps):
    mean = jnp.mean(x, axis=-1, keepdims=True)
    xc = x - mean
    var = jnp.mean(xc * xc, axis=-1, keepdims=True)
    return xc * jax.lax.rsqrt(var + eps) * g + b


def _row_tile(m, target=512):
    """Row-tile size for (M, *) kernels: whole if small, else a dividing tile."""
    if m <= target:
        return m
    for t in (target, 256, 128, 64, 32, 16, 8):
        if m % t == 0:
            return t
    return m


# ----------------------------- Pallas kernels --------------------------------

def _conv_layer_kernel(x_ref, w_ref, *rest, kernel, stride, cin, tout, eps, has_gn):
    """One conv feature layer for one batch element.

    x_ref: (1, U, stride*cin) phase-split view (x[t] lives at [t//stride,
           (t%stride)*cin : ...]), so every kernel tap is a *contiguous* static
           slice — the im2col gather never touches HBM.
    """
    if has_gn:
        g_ref, bg_ref, o_ref = rest
    else:
        (o_ref,) = rest

    xb = x_ref[0]                                   # (U, stride*cin) f32
    wf = w_ref[...]                                 # (K, cin, cout)  f32
    cout = wf.shape[-1]

    acc = jnp.zeros((tout, cout), _F32)
    for k in range(kernel):                         # K is tiny & static
        q, r = divmod(k, stride)
        xs = xb[q:q + tout, r * cin:(r + 1) * cin]  # (tout, cin), element = x[t*stride + k]
        if cin == 1:
            # degenerate contraction -> broadcast multiply on the VPU
            acc = acc + xs * wf[k]
        else:
            acc = acc + jnp.dot(xs.astype(_BF16), wf[k].astype(_BF16),
                                preferred_element_type=_F32)

    y = acc
    if has_gn:
        # GroupNorm(num_groups == num_channels): per-channel norm over time.
        mean = jnp.mean(y, axis=0, keepdims=True)
        yc = y - mean
        var = jnp.mean(yc * yc, axis=0, keepdims=True)
        y = yc * jax.lax.rsqrt(var + eps) * g_ref[...] + bg_ref[...]
    o_ref[0] = _gelu(y)


def conv_layer(x, w, gn, *, kernel, stride, eps):
    """x: (B, T, Cin) channel-last; w: (K, Cin, Cout). Returns (B, Tout, Cout)."""
    B, T, cin = x.shape
    _, _, cout = w.shape
    tout = (T - kernel) // stride + 1
    q = -(-kernel // stride)                        # ceil(K / stride)
    u = tout + q - 1
    t_pad = u * stride
    if t_pad <= T:
        xp = x[:, :t_pad, :]
    else:
        xp = jnp.pad(x, ((0, 0), (0, t_pad - T), (0, 0)))
    xph = xp.reshape(B, u, stride * cin)            # pure reshape (phase split)

    has_gn = gn is not None
    in_specs = [pl.BlockSpec((1, u, stride * cin), lambda b: (b, 0, 0)),
                pl.BlockSpec((kernel, cin, cout), lambda b: (0, 0, 0))]
    args = [xph, w]
    if has_gn:
        in_specs += [pl.BlockSpec((1, cout), lambda b: (0, 0)),
                     pl.BlockSpec((1, cout), lambda b: (0, 0))]
        args += [gn[0], gn[1]]

    return pl.pallas_call(
        functools.partial(_conv_layer_kernel, kernel=kernel, stride=stride,
                          cin=cin, tout=tout, eps=eps, has_gn=has_gn),
        out_shape=jax.ShapeDtypeStruct((B, tout, cout), _F32),
        grid=(B,),
        in_specs=in_specs,
        out_specs=pl.BlockSpec((1, tout, cout), lambda b: (b, 0, 0)),
        compiler_params=pltpu.CompilerParams(dimension_semantics=("parallel",)),
    )(*args)


def _lnproj_kernel(x_ref, g_ref, b_ref, w_ref, bias_ref, o_ref, *, eps):
    x = x_ref[...]                                  # (tm, C) f32
    xn = _layer_norm(x, g_ref[...], b_ref[...], eps)
    o_ref[...] = jnp.dot(xn.astype(_BF16), w_ref[...],
                         preferred_element_type=_F32) + bias_ref[...]


def ln_proj(x, g, b, w, bias, *, eps):
    """Fused feature LayerNorm + post_extract_proj: (M,C) -> (M,E)."""
    M, C = x.shape
    E = w.shape[1]
    tm = _row_tile(M)
    return pl.pallas_call(
        functools.partial(_lnproj_kernel, eps=eps),
        out_shape=jax.ShapeDtypeStruct((M, E), _F32),
        grid=(M // tm,),
        in_specs=[pl.BlockSpec((tm, C), lambda i: (i, 0)),
                  pl.BlockSpec((1, C), lambda i: (0, 0)),
                  pl.BlockSpec((1, C), lambda i: (0, 0)),
                  pl.BlockSpec((C, E), lambda i: (0, 0)),
                  pl.BlockSpec((1, E), lambda i: (0, 0))],
        out_specs=pl.BlockSpec((tm, E), lambda i: (i, 0)),
        compiler_params=pltpu.CompilerParams(dimension_semantics=("parallel",)),
    )(x, g, b, w, bias)


def _posconv_ln_kernel(xp_ref, w_ref, bc_ref, g_ref, b_ref, o_ref, *, kernel, pad, eps):
    """Grouped pos-conv (block-diagonal weight) + GELU + residual + LayerNorm."""
    xp = xp_ref[0]                                  # (T + 2*pad, E) f32
    T = o_ref.shape[1]
    wf = w_ref[...]                                 # (K, E, E) block-diagonal f32
    E = wf.shape[-1]
    acc = jnp.zeros((T, E), _F32)
    for k in range(kernel):
        xs = xp[k:k + T, :].astype(_BF16)
        acc = acc + jnp.dot(xs, wf[k].astype(_BF16), preferred_element_type=_F32)
    conv = _gelu(acc + bc_ref[...])
    y = xp[pad:pad + T, :] + conv                   # x + pos_conv(x)
    o_ref[0] = _layer_norm(y, g_ref[...], b_ref[...], eps)


def posconv_ln(x, w_blk, bc, g, b, *, kernel, eps):
    # SamePad is a no-op for odd kernel (conv_pos=3 here).
    # TODO(synk): for the real even conv_pos=128, add the SamePad trailing trim
    # and grid over groups instead of using a block-diagonal weight.
    B, T, E = x.shape
    pad = kernel // 2
    xp = jnp.pad(x, ((0, 0), (pad, pad), (0, 0)))
    return pl.pallas_call(
        functools.partial(_posconv_ln_kernel, kernel=kernel, pad=pad, eps=eps),
        out_shape=jax.ShapeDtypeStruct((B, T, E), _F32),
        grid=(B,),
        in_specs=[pl.BlockSpec((1, T + 2 * pad, E), lambda bi: (bi, 0, 0)),
                  pl.BlockSpec((kernel, E, E), lambda bi: (0, 0, 0)),
                  pl.BlockSpec((1, E), lambda bi: (0, 0)),
                  pl.BlockSpec((1, E), lambda bi: (0, 0)),
                  pl.BlockSpec((1, E), lambda bi: (0, 0))],
        out_specs=pl.BlockSpec((1, T, E), lambda bi: (bi, 0, 0)),
        compiler_params=pltpu.CompilerParams(dimension_semantics=("parallel",)),
    )(xp, w_blk, bc, g, b)


def _attn_layer_kernel(x_ref, wqkv_ref, bqkv_ref, wo_ref, bo_ref, g_ref, b_ref,
                       o_ref, *, heads, hdim, eps):
    """Fused MHA sub-layer for one batch element: QKV proj + per-head softmax
    attention + (head-merge folded into the) output projection + residual + LN.
    Output is a lane-dense (T, E) slab (no per-head HBM transposes / narrow stores).
    """
    x = x_ref[0]                                    # (T, E) f32
    T = x.shape[0]
    E = heads * hdim

    # Single fused QKV matmul; q-scaling already folded into wq/bq.
    qkv = jnp.dot(x.astype(_BF16), wqkv_ref[...],
                  preferred_element_type=_F32) + bqkv_ref[...]       # (T, 3E)
    wo = wo_ref[...]                                # (E, E) bf16

    # TODO(synk): for long sequences, KV-tile this with an online softmax
    # (flash-style m/l/acc) instead of the full (T, T) score block.
    acc = jnp.zeros((T, E), _F32)
    for h in range(heads):                          # static unroll, lane slices
        lo, hi = h * hdim, (h + 1) * hdim
        qh = qkv[:, lo:hi].astype(_BF16)
        kh = qkv[:, E + lo:E + hi].astype(_BF16)
        vh = qkv[:, 2 * E + lo:2 * E + hi].astype(_BF16)
        s = jax.lax.dot_general(qh, kh, (((1,), (1,)), ((), ())),
                                preferred_element_type=_F32)         # (T, T)
        s = s - jnp.max(s, axis=-1, keepdims=True)
        p = jnp.exp(s)
        p = p * pl.reciprocal(jnp.sum(p, axis=-1, keepdims=True), approx=True)
        ctx = jnp.dot(p.astype(_BF16), vh, preferred_element_type=_F32)  # (T, hdim)
        # head-merge + output projection folded: accumulate ctx @ Wo[rows of head h]
        acc = acc + jnp.dot(ctx.astype(_BF16), wo[lo:hi, :],
                            preferred_element_type=_F32)
    y = x + acc + bo_ref[...]                       # residual + out-proj bias
    o_ref[0] = _layer_norm(y, g_ref[...], b_ref[...], eps)


def attn_layer(x, p, *, heads, eps):
    B, T, E = x.shape
    hdim = E // heads
    spec_x = pl.BlockSpec((1, T, E), lambda b: (b, 0, 0))
    return pl.pallas_call(
        functools.partial(_attn_layer_kernel, heads=heads, hdim=hdim, eps=eps),
        out_shape=jax.ShapeDtypeStruct((B, T, E), _F32),
        grid=(B,),
        in_specs=[spec_x,
                  pl.BlockSpec((E, 3 * E), lambda b: (0, 0)),
                  pl.BlockSpec((1, 3 * E), lambda b: (0, 0)),
                  pl.BlockSpec((E, E), lambda b: (0, 0)),
                  pl.BlockSpec((1, E), lambda b: (0, 0)),
                  pl.BlockSpec((1, E), lambda b: (0, 0)),
                  pl.BlockSpec((1, E), lambda b: (0, 0))],
        out_specs=spec_x,
        compiler_params=pltpu.CompilerParams(dimension_semantics=("parallel",)),
    )(x, p["w_qkv"], p["b_qkv"], p["wo"], p["bo"], p["ln1_g"], p["ln1_b"])


def _ffn_kernel(x_ref, w1_ref, b1_ref, w2_ref, b2_ref, g_ref, b_ref, o_ref, *, eps):
    x = x_ref[...]                                  # (tm, E) f32
    h = jnp.dot(x.astype(_BF16), w1_ref[...],
                preferred_element_type=_F32) + b1_ref[...]
    h = _gelu(h)                                    # (tm, F) stays in VMEM
    y = jnp.dot(h.astype(_BF16), w2_ref[...],
                preferred_element_type=_F32) + b2_ref[...]
    o_ref[...] = _layer_norm(x + y, g_ref[...], b_ref[...], eps)


def ffn_layer(x, p, *, eps):
    """Fused FFN + residual + final LayerNorm, row-tiled over M."""
    M, E = x.shape
    F = p["w1"].shape[1]
    tm = _row_tile(M)
    return pl.pallas_call(
        functools.partial(_ffn_kernel, eps=eps),
        out_shape=jax.ShapeDtypeStruct((M, E), _F32),
        grid=(M // tm,),
        in_specs=[pl.BlockSpec((tm, E), lambda i: (i, 0)),
                  pl.BlockSpec((E, F), lambda i: (0, 0)),
                  pl.BlockSpec((1, F), lambda i: (0, 0)),
                  pl.BlockSpec((F, E), lambda i: (0, 0)),
                  pl.BlockSpec((1, E), lambda i: (0, 0)),
                  pl.BlockSpec((1, E), lambda i: (0, 0)),
                  pl.BlockSpec((1, E), lambda i: (0, 0))],
        out_specs=pl.BlockSpec((tm, E), lambda i: (i, 0)),
        compiler_params=pltpu.CompilerParams(dimension_semantics=("parallel",)),
    )(x, p["w1"], p["b1"], p["w2"], p["b2"], p["ln2_g"], p["ln2_b"])


# -------------------------------- forward ------------------------------------

def wav2vec2_encoder_forward(x, params, cfg=CFG):
    # x: (B, 1, T_audio) -> encoder(x.squeeze(1), features_only=True)['x']
    eps = cfg["layer_norm_eps"]
    B = x.shape[0]
    h = x[:, 0, :, None]                            # squeeze(1), channel-last (B, T, 1)

    # --- ConvFeatureExtractionModel, mode="default" ---
    for li, (_, k, stride) in enumerate(cfg["conv_feature_layers"]):
        gn = (params["gn_g"], params["gn_b"]) if li == 0 else None
        h = conv_layer(h, params["conv"][li], gn, kernel=k, stride=stride, eps=eps)
    # h is channel-last (B, T', C)  ==  features.transpose(1, 2)

    _, Tp, C = h.shape
    E = cfg["encoder_embed_dim"]

    # fused LayerNorm + post_extract_proj
    x2 = ln_proj(h.reshape(B * Tp, C), params["ln_feat_g"], params["ln_feat_b"],
                 params["proj_w"], params["proj_b"], eps=eps)

    # mask_prob = mask_channel_prob = dropout = 0 -> identity here.

    # --- TransformerEncoder: x + pos_conv(x), then LayerNorm (post-norm model) ---
    xb = posconv_ln(x2.reshape(B, Tp, E), params["pos_w"], params["pos_b"],
                    params["enc_ln_g"], params["enc_ln_b"],
                    kernel=cfg["conv_pos"], eps=eps)

    H = cfg["encoder_attention_heads"]
    for lp in params["layers"]:
        xb = attn_layer(xb, lp, heads=H, eps=eps)
        xb = ffn_layer(xb.reshape(B * Tp, E), lp, eps=eps).reshape(B, Tp, E)
    return xb


# --------------------------- parameter init / fold ----------------------------

def init_params(key, cfg=CFG):
    keys = iter(jax.random.split(key, 128))

    def nrm(shape, scale=0.02):
        return scale * jax.random.normal(next(keys), shape, _F32)

    p = {"conv": []}
    in_ch = 1
    for dim, k, _ in cfg["conv_feature_layers"]:
        p["conv"].append({"w": nrm((dim, in_ch, k))})     # PyTorch layout (Cout, Cin, K)
        in_ch = dim
    C = in_ch
    E = cfg["encoder_embed_dim"]
    F = cfg["encoder_ffn_embed_dim"]
    cg = E // cfg["conv_pos_groups"]

    p["gn_g"] = jnp.ones((C,), _F32)
    p["gn_b"] = jnp.zeros((C,), _F32)
    p["ln_feat_g"] = jnp.ones((C,), _F32)
    p["ln_feat_b"] = jnp.zeros((C,), _F32)
    p["proj_w"] = nrm((C, E))
    p["proj_b"] = nrm((E,), 0.01)
    p["pos_w"] = nrm((E, cg, cfg["conv_pos"]))            # weight-norm folded offline
    p["pos_b"] = nrm((E,), 0.01)
    p["enc_ln_g"] = jnp.ones((E,), _F32)
    p["enc_ln_b"] = jnp.zeros((E,), _F32)

    p["layers"] = []
    for _ in range(cfg["encoder_layers"]):
        p["layers"].append(dict(
            wq=nrm((E, E)), bq=nrm((E,), 0.01),
            wk=nrm((E, E)), bk=nrm((E,), 0.01),
            wv=nrm((E, E)), bv=nrm((E,), 0.01),
            wo=nrm((E, E)), bo=nrm((E,), 0.01),
            ln1_g=jnp.ones((E,), _F32), ln1_b=jnp.zeros((E,), _F32),
            w1=nrm((E, F)), b1=nrm((F,), 0.01),
            w2=nrm((F, E)), b2=nrm((E,), 0.01),
            ln2_g=jnp.ones((E,), _F32), ln2_b=jnp.zeros((E,), _F32),
        ))
    return p


def prepare_params(p, cfg=CFG):
    """One-time fold to kernel-ready layouts: conv weights -> (K, Cin, Cout),
    pos_conv -> block-diagonal (K, E, E), fused QKV with q-scaling folded,
    large matmul weights cast to bf16, all vectors as lane-dense (1, N) rows."""
    E = cfg["encoder_embed_dim"]
    H = cfg["encoder_attention_heads"]
    G = cfg["conv_pos_groups"]
    cg = E // G
    Kp = cfg["conv_pos"]
    scale = (E // H) ** -0.5

    kp = {}
    kp["conv"] = [jnp.transpose(c["w"], (2, 1, 0)) for c in p["conv"]]  # (K, Cin, Cout)
    kp["gn_g"] = p["gn_g"].reshape(1, -1)
    kp["gn_b"] = p["gn_b"].reshape(1, -1)
    kp["ln_feat_g"] = p["ln_feat_g"].reshape(1, -1)
    kp["ln_feat_b"] = p["ln_feat_b"].reshape(1, -1)
    kp["proj_w"] = p["proj_w"].astype(_BF16)
    kp["proj_b"] = p["proj_b"].reshape(1, -1)

    w_blk = jnp.zeros((Kp, E, E), _F32)                   # block-diagonal grouped conv
    for g in range(G):
        wg = p["pos_w"][g * cg:(g + 1) * cg]              # (cg, cg, K) = [o_local, i, k]
        w_blk = w_blk.at[:, g * cg:(g + 1) * cg, g * cg:(g + 1) * cg].set(
            jnp.transpose(wg, (2, 1, 0)))                 # -> (K, i, o_local)
    kp["pos_w"] = w_blk
    kp["pos_b"] = p["pos_b"].reshape(1, -1)
    kp["enc_ln_g"] = p["enc_ln_g"].reshape(1, -1)
    kp["enc_ln_b"] = p["enc_ln_b"].reshape(1, -1)

    kp["layers"] = []
    for lp in p["layers"]:
        kp["layers"].append(dict(
            w_qkv=jnp.concatenate([lp["wq"] * scale, lp["wk"], lp["wv"]],
                                  axis=1).astype(_BF16),               # (E, 3E)
            b_qkv=jnp.concatenate([lp["bq"] * scale, lp["bk"],
                                   lp["bv"]]).reshape(1, -1),
            wo=lp["wo"].astype(_BF16), bo=lp["bo"].reshape(1, -1),
            ln1_g=lp["ln1_g"].reshape(1, -1), ln1_b=lp["ln1_b"].reshape(1, -1),
            w1=lp["w1"].astype(_BF16), b1=lp["b1"].reshape(1, -1),
            w2=lp["w2"].astype(_BF16), b2=lp["b2"].reshape(1, -1),
            ln2_g=lp["ln2_g"].reshape(1, -1), ln2_b=lp["ln2_b"].reshape(1, -1),
        ))
    return kp


if __name__ == "__main__":
    key = jax.random.PRNGKey(0)
    kx, kparam = jax.random.split(key)
    x = jax.random.normal(kx, (2, 1, 320), _F32)          # (B, 1, T_audio)
    params = prepare_params(init_params(kparam))

    fwd = jax.jit(wav2vec2_encoder_forward)
    out = jax.block_until_ready(fwd(x, params))

    # conv stack: 320 -> 63 -> 31 -> 15 frames; encoder dim 32
    assert out.shape == (2, 15, 32), out.shape
    assert bool(jnp.all(jnp.isfinite(out)))
    print("KERNEL_OK")
</pallas_src>

<mosaic_0001>
module attributes {stable_mosaic.version = 11 : i64} {
  func.func @_conv_layer_kernel(%arg0: i32, %arg1: memref<1x64x5xf32, #tpu.memory_space<vmem>>, %arg2: memref<10x1x24xf32, #tpu.memory_space<vmem>>, %arg3: memref<1x24xf32, #tpu.memory_space<vmem>>, %arg4: memref<1x24xf32, #tpu.memory_space<vmem>>, %arg5: memref<1x63x24xf32, #tpu.memory_space<vmem>>) attributes {dimension_semantics = [#tpu.dimension_semantics<parallel>], iteration_bounds = array<i64: 2>, scalar_prefetch = 0 : i64, scratch_operands = 0 : i64, tpu.core_type = #tpu.core_type<tc>, window_params = [{transform_indices = @transform_0, window_bounds = array<i64: 1, 64, 5>}, {pipeline_mode = #tpu.pipeline_mode<synchronous>, transform_indices = @transform_1, window_bounds = array<i64: 10, 1, 24>}, {pipeline_mode = #tpu.pipeline_mode<synchronous>, transform_indices = @transform_2, window_bounds = array<i64: 1, 24>}, {pipeline_mode = #tpu.pipeline_mode<synchronous>, transform_indices = @transform_3, window_bounds = array<i64: 1, 24>}, {transform_indices = @transform_4, window_bounds = array<i64: 1, 63, 24>}]} {
    %c0 = arith.constant 0 : index
    %c0_0 = arith.constant 0 : index
    %c0_1 = arith.constant 0 : index
    %0 = vector.load %arg1[%c0, %c0_0, %c0_1] : memref<1x64x5xf32, #tpu.memory_space<vmem>>, vector<1x64x5xf32>
    %1 = vector.shape_cast %0 : vector<1x64x5xf32> to vector<64x5xf32>
    %c0_2 = arith.constant 0 : index
    %c0_3 = arith.constant 0 : index
    %c0_4 = arith.constant 0 : index
    %2 = vector.load %arg2[%c0_2, %c0_3, %c0_4] : memref<10x1x24xf32, #tpu.memory_space<vmem>>, vector<10x1x24xf32>
    %cst = arith.constant 0.000000e+00 : f32
    %3 = vector.broadcast %cst : f32 to vector<63x24xf32>
    %4 = vector.extract_strided_slice %1 {offsets = [0, 0], sizes = [63, 1], strides = [1, 1]} : vector<64x5xf32> to vector<63x1xf32>
    %5 = vector.extract_strided_slice %2 {offsets = [0, 0, 0], sizes = [1, 1, 24], strides = [1, 1, 1]} : vector<10x1x24xf32> to vector<1x1x24xf32>
    %6 = vector.shape_cast %5 : vector<1x1x24xf32> to vector<1x24xf32>
    %7 = vector.broadcast %4 : vector<63x1xf32> to vector<63x24xf32>
    %8 = vector.broadcast %6 : vector<1x24xf32> to vector<63x24xf32>
    %9 = arith.mulf %7, %8 : vector<63x24xf32>
    %10 = arith.addf %3, %9 : vector<63x24xf32>
    %11 = vector.extract_strided_slice %1 {offsets = [0, 1], sizes = [63, 1], strides = [1, 1]} : vector<64x5xf32> to vector<63x1xf32>
    %12 = vector.extract_strided_slice %2 {offsets = [1, 0, 0], sizes = [1, 1, 24], strides = [1, 1, 1]} : vector<10x1x24xf32> to vector<1x1x24xf32>
    %13 = vector.shape_cast %12 : vector<1x1x24xf32> to vector<1x24xf32>
    %14 = vector.broadcast %11 : vector<63x1xf32> to vector<63x24xf32>
    %15 = vector.broadcast %13 : vector<1x24xf32> to vector<63x24xf32>
    %16 = arith.mulf %14, %15 : vector<63x24xf32>
    %17 = arith.addf %10, %16 : vector<63x24xf32>
    %18 = vector.extract_strided_slice %1 {offsets = [0, 2], sizes = [63, 1], strides = [1, 1]} : vector<64x5xf32> to vector<63x1xf32>
    %19 = vector.extract_strided_slice %2 {offsets = [2, 0, 0], sizes = [1, 1, 24], strides = [1, 1, 1]} : vector<10x1x24xf32> to vector<1x1x24xf32>
    %20 = vector.shape_cast %19 : vector<1x1x24xf32> to vector<1x24xf32>
    %21 = vector.broadcast %18 : vector<63x1xf32> to vector<63x24xf32>
    %22 = vector.broadcast %20 : vector<1x24xf32> to vector<63x24xf32>
    %23 = arith.mulf %21, %22 : vector<63x24xf32>
    %24 = arith.addf %17, %23 : vector<63x24xf32>
    %25 = vector.extract_strided_slice %1 {offsets = [0, 3], sizes = [63, 1], strides = [1, 1]} : vector<64x5xf32> to vector<63x1xf32>
    %26 = vector.extract_strided_slice %2 {offsets = [3, 0, 0], sizes = [1, 1, 24], strides = [1, 1, 1]} : vector<10x1x24xf32> to vector<1x1x24xf32>
    %27 = vector.shape_cast %26 : vector<1x1x24xf32> to vector<1x24xf32>
    %28 = vector.broadcast %25 : vector<63x1xf32> to vector<63x24xf32>
    %29 = vector.broadcast %27 : vector<1x24xf32> to vector<63x24xf32>
    %30 = arith.mulf %28, %29 : vector<63x24xf32>
    %31 = arith.addf %24, %30 : vector<63x24xf32>
    %32 = vector.extract_strided_slice %1 {offsets = [0, 4], sizes = [63, 1], strides = [1, 1]} : vector<64x5xf32> to vector<63x1xf32>
    %33 = vector.extract_strided_slice %2 {offsets = [4, 0, 0], sizes = [1, 1, 24], strides = [1, 1, 1]} : vector<10x1x24xf32> to vector<1x1x24xf32>
    %34 = vector.shape_cast %33 : vector<1x1x24xf32> to vector<1x24xf32>
    %35 = vector.broadcast %32 : vector<63x1xf32> to vector<63x24xf32>
    %36 = vector.broadcast %34 : vector<1x24xf32> to vector<63x24xf32>
    %37 = arith.mulf %35, %36 : vector<63x24xf32>
    %38 = arith.addf %31, %37 : vector<63x24xf32>
    %39 = vector.extract_strided_slice %1 {offsets = [1, 0], sizes = [63, 1], strides = [1, 1]} : vector<64x5xf32> to vector<63x1xf32>
    %40 = vector.extract_strided_slice %2 {offsets = [5, 0, 0], sizes = [1, 1, 24], strides = [1, 1, 1]} : vector<10x1x24xf32> to vector<1x1x24xf32>
    %41 = vector.shape_cast %40 : vector<1x1x24xf32> to vector<1x24xf32>
    %42 = vector.broadcast %39 : vector<63x1xf32> to vector<63x24xf32>
    %43 = vector.broadcast %41 : vector<1x24xf32> to vector<63x24xf32>
    %44 = arith.mulf %42, %43 : vector<63x24xf32>
    %45 = arith.addf %38, %44 : vector<63x24xf32>
    %46 = vector.extract_strided_slice %1 {offsets = [1, 1], sizes = [63, 1], strides = [1, 1]} : vector<64x5xf32> to vector<63x1xf32>
    %47 = vector.extract_strided_slice %2 {offsets = [6, 0, 0], sizes = [1, 1, 24], strides = [1, 1, 1]} : vector<10x1x24xf32> to vector<1x1x24xf32>
    %48 = vector.shape_cast %47 : vector<1x1x24xf32> to vector<1x24xf32>
    %49 = vector.broadcast %46 : vector<63x1xf32> to vector<63x24xf32>
    %50 = vector.broadcast %48 : vector<1x24xf32> to vector<63x24xf32>
    %51 = arith.mulf %49, %50 : vector<63x24xf32>
    %52 = arith.addf %45, %51 : vector<63x24xf32>
    %53 = vector.extract_strided_slice %1 {offsets = [1, 2], sizes = [63, 1], strides = [1, 1]} : vector<64x5xf32> to vector<63x1xf32>
    %54 = vector.extract_strided_slice %2 {offsets = [7, 0, 0], sizes = [1, 1, 24], strides = [1, 1, 1]} : vector<10x1x24xf32> to vector<1x1x24xf32>
    %55 = vector.shape_cast %54 : vector<1x1x24xf32> to vector<1x24xf32>
    %56 = vector.broadcast %53 : vector<63x1xf32> to vector<63x24xf32>
    %57 = vector.broadcast %55 : vector<1x24xf32> to vector<63x24xf32>
    %58 = arith.mulf %56, %57 : vector<63x24xf32>
    %59 = arith.addf %52, %58 : vector<63x24xf32>
    %60 = vector.extract_strided_slice %1 {offsets = [1, 3], sizes = [63, 1], strides = [1, 1]} : vector<64x5xf32> to vector<63x1xf32>
    %61 = vector.extract_strided_slice %2 {offsets = [8, 0, 0], sizes = [1, 1, 24], strides = [1, 1, 1]} : vector<10x1x24xf32> to vector<1x1x24xf32>
    %62 = vector.shape_cast %61 : vector<1x1x24xf32> to vector<1x24xf32>
    %63 = vector.broadcast %60 : vector<63x1xf32> to vector<63x24xf32>
    %64 = vector.broadcast %62 : vector<1x24xf32> to vector<63x24xf32>
    %65 = arith.mulf %63, %64 : vector<63x24xf32>
    %66 = arith.addf %59, %65 : vector<63x24xf32>
    %67 = vector.extract_strided_slice %1 {offsets = [1, 4], sizes = [63, 1], strides = [1, 1]} : vector<64x5xf32> to vector<63x1xf32>
    %68 = vector.extract_strided_slice %2 {offsets = [9, 0, 0], sizes = [1, 1, 24], strides = [1, 1, 1]} : vector<10x1x24xf32> to vector<1x1x24xf32>
    %69 = vector.shape_cast %68 : vector<1x1x24xf32> to vector<1x24xf32>
    %70 = vector.broadcast %67 : vector<63x1xf32> to vector<63x24xf32>
    %71 = vector.broadcast %69 : vector<1x24xf32> to vector<63x24xf32>
    %72 = arith.mulf %70, %71 : vector<63x24xf32>
    %73 = arith.addf %66, %72 : vector<63x24xf32>
    %cst_5 = arith.constant dense<0.000000e+00> : vector<24xf32>
    %74 = vector.multi_reduction <add>, %73, %cst_5 [0] : vector<63x24xf32> to vector<24xf32>
    %75 = vector.shape_cast %74 : vector<24xf32> to vector<1x24xf32>
    %cst_6 = arith.constant 6.300000e+01 : f32
    %76 = vector.broadcast %cst_6 : f32 to vector<1x24xf32>
    %77 = arith.divf %75, %76 : vector<1x24xf32>
    %78 = vector.broadcast %77 : vector<1x24xf32> to vector<63x24xf32>
    %79 = arith.subf %73, %78 : vector<63x24xf32>
    %80 = arith.mulf %79, %79 : vector<63x24xf32>
    %cst_7 = arith.constant dense<0.000000e+00> : vector<24xf32>
    %81 = vector.multi_reduction <add>, %80, %cst_7 [0] : vector<63x24xf32> to vector<24xf32>
    %82 = vector.shape_cast %81 : vector<24xf32> to vector<1x24xf32>
    %cst_8 = arith.constant 6.300000e+01 : f32
    %83 = vector.broadcast %cst_8 : f32 to vector<1x24xf32>
    %84 = arith.divf %82, %83 : vector<1x24xf32>
    %cst_9 = arith.constant 9.99999974E-6 : f32
    %85 = vector.broadcast %cst_9 : f32 to vector<1x24xf32>
    %86 = arith.addf %84, %85 : vector<1x24xf32>
    %87 = math.rsqrt %86 : vector<1x24xf32>
    %88 = vector.broadcast %87 : vector<1x24xf32> to vector<63x24xf32>
    %89 = arith.mulf %79, %88 : vector<63x24xf32>
    %c0_10 = arith.constant 0 : index
    %c0_11 = arith.constant 0 : index
    %90 = vector.load %arg3[%c0_10, %c0_11] : memref<1x24xf32, #tpu.memory_space<vmem>>, vector<1x24xf32>
    %91 = vector.broadcast %90 : vector<1x24xf32> to vector<63x24xf32>
    %92 = arith.mulf %89, %91 : vector<63x24xf32>
    %c0_12 = arith.constant 0 : index
    %c0_13 = arith.constant 0 : index
    %93 = vector.load %arg4[%c0_12, %c0_13] : memref<1x24xf32, #tpu.memory_space<vmem>>, vector<1x24xf32>
    %94 = vector.broadcast %93 : vector<1x24xf32> to vector<63x24xf32>
    %95 = arith.addf %92, %94 : vector<63x24xf32>
    %cst_14 = arith.constant 0.707106769 : f32
    %96 = vector.broadcast %cst_14 : f32 to vector<63x24xf32>
    %97 = arith.mulf %95, %96 : vector<63x24xf32>
    %98 = math.absf %97 : vector<63x24xf32>
    %cst_15 = arith.constant 0.327591091 : f32
    %99 = vector.broadcast %cst_15 : f32 to vector<63x24xf32>
    %100 = arith.mulf %99, %98 : vector<63x24xf32>
    %cst_16 = arith.constant 1.000000e+00 : f32
    %101 = vector.broadcast %cst_16 : f32 to vector<63x24xf32>
    %102 = arith.addf %101, %100 : vector<63x24xf32>
    %cst_17 = arith.constant 1.000000e+00 : f32
    %103 = vector.broadcast %cst_17 : f32 to vector<63x24xf32>
    %104 = arith.divf %103, %102 : vector<63x24xf32>
    %cst_18 = arith.constant 1.06140542 : f32
    %105 = vector.broadcast %cst_18 : f32 to vector<63x24xf32>
    %106 = arith.mulf %104, %105 : vector<63x24xf32>
    %cst_19 = arith.constant -1.45315206 : f32
    %107 = vector.broadcast %cst_19 : f32 to vector<63x24xf32>
    %108 = arith.addf %107, %106 : vector<63x24xf32>
    %109 = arith.mulf %104, %108 : vector<63x24xf32>
    %cst_20 = arith.constant 1.42141378 : f32
    %110 = vector.broadcast %cst_20 : f32 to vector<63x24xf32>
    %111 = arith.addf %110, %109 : vector<63x24xf32>
    %112 = arith.mulf %104, %111 : vector<63x24xf32>
    %cst_21 = arith.constant -0.284496725 : f32
    %113 = vector.broadcast %cst_21 : f32 to vector<63x24xf32>
    %114 = arith.addf %113, %112 : vector<63x24xf32>
    %115 = arith.mulf %104, %114 : vector<63x24xf32>
    %cst_22 = arith.constant 0.254829586 : f32
    %116 = vector.broadcast %cst_22 : f32 to vector<63x24xf32>
    %117 = arith.addf %116, %115 : vector<63x24xf32>
    %118 = arith.mulf %104, %117 : vector<63x24xf32>
    %cst_23 = arith.constant 0.000000e+00 : f32
    %119 = vector.broadcast %cst_23 : f32 to vector<63x24xf32>
    %120 = arith.subf %119, %98 : vector<63x24xf32>
    %121 = arith.mulf %120, %98 : vector<63x24xf32>
    %122 = math.exp %121 : vector<63x24xf32>
    %123 = arith.mulf %118, %122 : vector<63x24xf32>
    %cst_24 = arith.constant 1.000000e+00 : f32
    %124 = vector.broadcast %cst_24 : f32 to vector<63x24xf32>
    %125 = arith.subf %124, %123 : vector<63x24xf32>
    %cst_25 = arith.constant 0.000000e+00 : f32
    %126 = vector.broadcast %cst_25 : f32 to vector<63x24xf32>
    %127 = arith.cmpf oge, %97, %126 : vector<63x24xf32>
    %cst_26 = arith.constant 0.000000e+00 : f32
    %128 = vector.broadcast %cst_26 : f32 to vector<63x24xf32>
    %129 = arith.subf %128, %125 : vector<63x24xf32>
    %130 = arith.select %127, %125, %129 : vector<63x24xi1>, vector<63x24xf32>
    %cst_27 = arith.constant 5.000000e-01 : f32
    %131 = vector.broadcast %cst_27 : f32 to vector<63x24xf32>
    %132 = arith.mulf %131, %95 : vector<63x24xf32>
    %cst_28 = arith.constant 1.000000e+00 : f32
    %133 = vector.broadcast %cst_28 : f32 to vector<63x24xf32>
    %134 = arith.addf %133, %130 : vector<63x24xf32>
    %135 = arith.mulf %132, %134 : vector<63x24xf32>
    %c0_29 = arith.constant 0 : index
    %c0_30 = arith.constant 0 : index
    %c0_31 = arith.constant 0 : index
    %136 = vector.load %arg5[%c0_29, %c0_30, %c0_31] : memref<1x63x24xf32, #tpu.memory_space<vmem>>, vector<1x63x24xf32>
    %137 = vector.shape_cast %136 : vector<1x63x24xf32> to vector<63x24xf32>
    %138 = vector.shape_cast %135 : vector<63x24xf32> to vector<1x63x24xf32>
    tpu.vector_store %arg5[%c0_29, %c0_30, %c0_31], %138 {strides = array<i32>} : memref<1x63x24xf32, #tpu.memory_space<vmem>>, vector<1x63x24xf32>,
    return
  }
  func.func @transform_0(%arg0: i32) -> (i32, i32, i32) {
    %c0_i32 = arith.constant 0 : i32
    %c0_i32_0 = arith.constant 0 : i32
    %c0_i32_1 = arith.constant 0 : i32
    return %arg0, %c0_i32, %c0_i32_0 : i32, i32, i32
  }
  func.func @transform_1(%arg0: i32) -> (i32, i32, i32) {
    %c0_i32 = arith.constant 0 : i32
    %c0_i32_0 = arith.constant 0 : i32
    %c0_i32_1 = arith.constant 0 : i32
    %c0_i32_2 = arith.constant 0 : i32
    return %c0_i32, %c0_i32_0, %c0_i32_1 : i32, i32, i32
  }
  func.func @transform_2(%arg0: i32) -> (i32, i32) {
    %c0_i32 = arith.constant 0 : i32
    %c0_i32_0 = arith.constant 0 : i32
    %c0_i32_1 = arith.constant 0 : i32
    return %c0_i32, %c0_i32_0 : i32, i32
  }
  func.func @transform_3(%arg0: i32) -> (i32, i32) {
    %c0_i32 = arith.constant 0 : i32
    %c0_i32_0 = arith.constant 0 : i32
    %c0_i32_1 = arith.constant 0 : i32
    return %c0_i32, %c0_i32_0 : i32, i32
  }
  func.func @transform_4(%arg0: i32) -> (i32, i32, i32) {
    %c0_i32 = arith.constant 0 : i32
    %c0_i32_0 = arith.constant 0 : i32
    %c0_i32_1 = arith.constant 0 : i32
    return %arg0, %c0_i32, %c0_i32_0 : i32, i32, i32
  }
}

module attributes {stable_mosaic.version = 11 : i64} {
  func.func @_conv_layer_kernel(%arg0: i32, %arg1: memref<1x32x48xf32, #tpu.memory_space<vmem>>, %arg2: memref<3x24x24xf32, #tpu.memory_space<vmem>>, %arg3: memref<1x31x24xf32, #tpu.memory_space<vmem>>) attributes {dimension_semantics = [#tpu.dimension_semantics<parallel>], iteration_bounds = array<i64: 2>, scalar_prefetch = 0 : i64, scratch_operands = 0 : i64, tpu.core_type = #tpu.core_type<tc>, window_params = [{transform_indices = @transform_0, window_bounds = array<i64: 1, 32, 48>}, {pipeline_mode = #tpu.pipeline_mode<synchronous>, transform_indices = @transform_1, window_bounds = array<i64: 3, 24, 24>}, {transform_indices = @transform_2, window_bounds = array<i64: 1, 31, 24>}]} {
    %c0 = arith.constant 0 : index
    %c0_0 = arith.constant 0 : index
    %c0_1 = arith.constant 0 : index
    %0 = vector.load %arg1[%c0, %c0_0, %c0_1] : memref<1x32x48xf32, #tpu.memory_space<vmem>>, vector<1x32x48xf32>
    %1 = vector.shape_cast %0 : vector<1x32x48xf32> to vector<32x48xf32>
    %c0_2 = arith.constant 0 : index
    %c0_3 = arith.constant 0 : index
    %c0_4 = arith.constant 0 : index
    %2 = vector.load %arg2[%c0_2, %c0_3, %c0_4] : memref<3x24x24xf32, #tpu.memory_space<vmem>>, vector<3x24x24xf32>
    %cst = arith.constant 0.000000e+00 : f32
    %3 = vector.broadcast %cst : f32 to vector<31x24xf32>
    %4 = vector.extract_strided_slice %1 {offsets = [0, 0], sizes = [31, 24], strides = [1, 1]} : vector<32x48xf32> to vector<31x24xf32>
    %5 = arith.truncf %4 : vector<31x24xf32> to vector<31x24xbf16>
    %6 = vector.extract_strided_slice %2 {offsets = [0, 0, 0], sizes = [1, 24, 24], strides = [1, 1, 1]} : vector<3x24x24xf32> to vector<1x24x24xf32>
    %7 = vector.shape_cast %6 : vector<1x24x24xf32> to vector<24x24xf32>
    %8 = arith.truncf %7 : vector<24x24xf32> to vector<24x24xbf16>
    %cst_5 = arith.constant dense<0.000000e+00> : vector<31x24xf32>
    %9 = tpu.matmul %5, %8, %cst_5 {dimension_numbers = #tpu.dot_dimension_numbers<[1], [0], [0], [1], [0, 0, 1, 1], [], []>} : vector<31x24xbf16>, vector<24x24xbf16>, vector<31x24xf32> -> vector<31x24xf32>
    %10 = arith.addf %3, %9 : vector<31x24xf32>
    %11 = vector.extract_strided_slice %1 {offsets = [0, 24], sizes = [31, 24], strides = [1, 1]} : vector<32x48xf32> to vector<31x24xf32>
    %12 = arith.truncf %11 : vector<31x24xf32> to vector<31x24xbf16>
    %13 = vector.extract_strided_slice %2 {offsets = [1, 0, 0], sizes = [1, 24, 24], strides = [1, 1, 1]} : vector<3x24x24xf32> to vector<1x24x24xf32>
    %14 = vector.shape_cast %13 : vector<1x24x24xf32> to vector<24x24xf32>
    %15 = arith.truncf %14 : vector<24x24xf32> to vector<24x24xbf16>
    %cst_6 = arith.constant dense<0.000000e+00> : vector<31x24xf32>
    %16 = tpu.matmul %12, %15, %cst_6 {dimension_numbers = #tpu.dot_dimension_numbers<[1], [0], [0], [1], [0, 0, 1, 1], [], []>} : vector<31x24xbf16>, vector<24x24xbf16>, vector<31x24xf32> -> vector<31x24xf32>
    %17 = arith.addf %10, %16 : vector<31x24xf32>
    %18 = vector.extract_strided_slice %1 {offsets = [1, 0], sizes = [31, 24], strides = [1, 1]} : vector<32x48xf32> to vector<31x24xf32>
    %19 = arith.truncf %18 : vector<31x24xf32> to vector<31x24xbf16>
    %20 = vector.extract_strided_slice %2 {offsets = [2, 0, 0], sizes = [1, 24, 24], strides = [1, 1, 1]} : vector<3x24x24xf32> to vector<1x24x24xf32>
    %21 = vector.shape_cast %20 : vector<1x24x24xf32> to vector<24x24xf32>
    %22 = arith.truncf %21 : vector<24x24xf32> to vector<24x24xbf16>
    %cst_7 = arith.constant dense<0.000000e+00> : vector<31x24xf32>
    %23 = tpu.matmul %19, %22, %cst_7 {dimension_numbers = #tpu.dot_dimension_numbers<[1], [0], [0], [1], [0, 0, 1, 1], [], []>} : vector<31x24xbf16>, vector<24x24xbf16>, vector<31x24xf32> -> vector<31x24xf32>
    %24 = arith.addf %17, %23 : vector<31x24xf32>
    %cst_8 = arith.constant 0.707106769 : f32
    %25 = vector.broadcast %cst_8 : f32 to vector<31x24xf32>
    %26 = arith.mulf %24, %25 : vector<31x24xf32>
    %27 = math.absf %26 : vector<31x24xf32>
    %cst_9 = arith.constant 0.327591091 : f32
    %28 = vector.broadcast %cst_9 : f32 to vector<31x24xf32>
    %29 = arith.mulf %28, %27 : vector<31x24xf32>
    %cst_10 = arith.constant 1.000000e+00 : f32
    %30 = vector.broadcast %cst_10 : f32 to vector<31x24xf32>
    %31 = arith.addf %30, %29 : vector<31x24xf32>
    %cst_11 = arith.constant 1.000000e+00 : f32
    %32 = vector.broadcast %cst_11 : f32 to vector<31x24xf32>
    %33 = arith.divf %32, %31 : vector<31x24xf32>
    %cst_12 = arith.constant 1.06140542 : f32
    %34 = vector.broadcast %cst_12 : f32 to vector<31x24xf32>
    %35 = arith.mulf %33, %34 : vector<31x24xf32>
    %cst_13 = arith.constant -1.45315206 : f32
    %36 = vector.broadcast %cst_13 : f32 to vector<31x24xf32>
    %37 = arith.addf %36, %35 : vector<31x24xf32>
    %38 = arith.mulf %33, %37 : vector<31x24xf32>
    %cst_14 = arith.constant 1.42141378 : f32
    %39 = vector.broadcast %cst_14 : f32 to vector<31x24xf32>
    %40 = arith.addf %39, %38 : vector<31x24xf32>
    %41 = arith.mulf %33, %40 : vector<31x24xf32>
    %cst_15 = arith.constant -0.284496725 : f32
    %42 = vector.broadcast %cst_15 : f32 to vector<31x24xf32>
    %43 = arith.addf %42, %41 : vector<31x24xf32>
    %44 = arith.mulf %33, %43 : vector<31x24xf32>
    %cst_16 = arith.constant 0.254829586 : f32
    %45 = vector.broadcast %cst_16 : f32 to vector<31x24xf32>
    %46 = arith.addf %45, %44 : vector<31x24xf32>
    %47 = arith.mulf %33, %46 : vector<31x24xf32>
    %cst_17 = arith.constant 0.000000e+00 : f32
    %48 = vector.broadcast %cst_17 : f32 to vector<31x24xf32>
    %49 = arith.subf %48, %27 : vector<31x24xf32>
    %50 = arith.mulf %49, %27 : vector<31x24xf32>
    %51 = math.exp %50 : vector<31x24xf32>
    %52 = arith.mulf %47, %51 : vector<31x24xf32>
    %cst_18 = arith.constant 1.000000e+00 : f32
    %53 = vector.broadcast %cst_18 : f32 to vector<31x24xf32>
    %54 = arith.subf %53, %52 : vector<31x24xf32>
    %cst_19 = arith.constant 0.000000e+00 : f32
    %55 = vector.broadcast %cst_19 : f32 to vector<31x24xf32>
    %56 = arith.cmpf oge, %26, %55 : vector<31x24xf32>
    %cst_20 = arith.constant 0.000000e+00 : f32
    %57 = vector.broadcast %cst_20 : f32 to vector<31x24xf32>
    %58 = arith.subf %57, %54 : vector<31x24xf32>
    %59 = arith.select %56, %54, %58 : vector<31x24xi1>, vector<31x24xf32>
    %cst_21 = arith.constant 5.000000e-01 : f32
    %60 = vector.broadcast %cst_21 : f32 to vector<31x24xf32>
    %61 = arith.mulf %60, %24 : vector<31x24xf32>
    %cst_22 = arith.constant 1.000000e+00 : f32
    %62 = vector.broadcast %cst_22 : f32 to vector<31x24xf32>
    %63 = arith.addf %62, %59 : vector<31x24xf32>
    %64 = arith.mulf %61, %63 : vector<31x24xf32>
    %c0_23 = arith.constant 0 : index
    %c0_24 = arith.constant 0 : index
    %c0_25 = arith.constant 0 : index
    %65 = vector.load %arg3[%c0_23, %c0_24, %c0_25] : memref<1x31x24xf32, #tpu.memory_space<vmem>>, vector<1x31x24xf32>
    %66 = vector.shape_cast %65 : vector<1x31x24xf32> to vector<31x24xf32>
    %67 = vector.shape_cast %64 : vector<31x24xf32> to vector<1x31x24xf32>
    tpu.vector_store %arg3[%c0_23, %c0_24, %c0_25], %67 {strides = array<i32>} : memref<1x31x24xf32, #tpu.memory_space<vmem>>, vector<1x31x24xf32>,
    return
  }
  func.func @transform_0(%arg0: i32) -> (i32, i32, i32) {
    %c0_i32 = arith.constant 0 : i32
    %c0_i32_0 = arith.constant 0 : i32
    %c0_i32_1 = arith.constant 0 : i32
    return %arg0, %c0_i32, %c0_i32_0 : i32, i32, i32
  }
  func.func @transform_1(%arg0: i32) -> (i32, i32, i32) {
    %c0_i32 = arith.constant 0 : i32
    %c0_i32_0 = arith.constant 0 : i32
    %c0_i32_1 = arith.constant 0 : i32
    %c0_i32_2 = arith.constant 0 : i32
    return %c0_i32, %c0_i32_0, %c0_i32_1 : i32, i32, i32
  }
  func.func @transform_2(%arg0: i32) -> (i32, i32, i32) {
    %c0_i32 = arith.constant 0 : i32
    %c0_i32_0 = arith.constant 0 : i32
    %c0_i32_1 = arith.constant 0 : i32
    return %arg0, %c0_i32, %c0_i32_0 : i32, i32, i32
  }
}

module attributes {stable_mosaic.version = 11 : i64} {
  func.func @_conv_layer_kernel(%arg0: i32, %arg1: memref<1x15x48xf32, #tpu.memory_space<vmem>>, %arg2: memref<2x24x24xf32, #tpu.memory_space<vmem>>, %arg3: memref<1x15x24xf32, #tpu.memory_space<vmem>>) attributes {dimension_semantics = [#tpu.dimension_semantics<parallel>], iteration_bounds = array<i64: 2>, scalar_prefetch = 0 : i64, scratch_operands = 0 : i64, tpu.core_type = #tpu.core_type<tc>, window_params = [{transform_indices = @transform_0, window_bounds = array<i64: 1, 15, 48>}, {pipeline_mode = #tpu.pipeline_mode<synchronous>, transform_indices = @transform_1, window_bounds = array<i64: 2, 24, 24>}, {transform_indices = @transform_2, window_bounds = array<i64: 1, 15, 24>}]} {
    %c0 = arith.constant 0 : index
    %c0_0 = arith.constant 0 : index
    %c0_1 = arith.constant 0 : index
    %0 = vector.load %arg1[%c0, %c0_0, %c0_1] : memref<1x15x48xf32, #tpu.memory_space<vmem>>, vector<1x15x48xf32>
    %1 = vector.shape_cast %0 : vector<1x15x48xf32> to vector<15x48xf32>
    %c0_2 = arith.constant 0 : index
    %c0_3 = arith.constant 0 : index
    %c0_4 = arith.constant 0 : index
    %2 = vector.load %arg2[%c0_2, %c0_3, %c0_4] : memref<2x24x24xf32, #tpu.memory_space<vmem>>, vector<2x24x24xf32>
    %cst = arith.constant 0.000000e+00 : f32
    %3 = vector.broadcast %cst : f32 to vector<15x24xf32>
    %4 = vector.extract_strided_slice %1 {offsets = [0, 0], sizes = [15, 24], strides = [1, 1]} : vector<15x48xf32> to vector<15x24xf32>
    %5 = arith.truncf %4 : vector<15x24xf32> to vector<15x24xbf16>
    %6 = vector.extract_strided_slice %2 {offsets = [0, 0, 0], sizes = [1, 24, 24], strides = [1, 1, 1]} : vector<2x24x24xf32> to vector<1x24x24xf32>
    %7 = vector.shape_cast %6 : vector<1x24x24xf32> to vector<24x24xf32>
    %8 = arith.truncf %7 : vector<24x24xf32> to vector<24x24xbf16>
    %cst_5 = arith.constant dense<0.000000e+00> : vector<15x24xf32>
    %9 = tpu.matmul %5, %8, %cst_5 {dimension_numbers = #tpu.dot_dimension_numbers<[1], [0], [0], [1], [0, 0, 1, 1], [], []>} : vector<15x24xbf16>, vector<24x24xbf16>, vector<15x24xf32> -> vector<15x24xf32>
    %10 = arith.addf %3, %9 : vector<15x24xf32>
    %11 = vector.extract_strided_slice %1 {offsets = [0, 24], sizes = [15, 24], strides = [1, 1]} : vector<15x48xf32> to vector<15x24xf32>
    %12 = arith.truncf %11 : vector<15x24xf32> to vector<15x24xbf16>
    %13 = vector.extract_strided_slice %2 {offsets = [1, 0, 0], sizes = [1, 24, 24], strides = [1, 1, 1]} : vector<2x24x24xf32> to vector<1x24x24xf32>
    %14 = vector.shape_cast %13 : vector<1x24x24xf32> to vector<24x24xf32>
    %15 = arith.truncf %14 : vector<24x24xf32> to vector<24x24xbf16>
    %cst_6 = arith.constant dense<0.000000e+00> : vector<15x24xf32>
    %16 = tpu.matmul %12, %15, %cst_6 {dimension_numbers = #tpu.dot_dimension_numbers<[1], [0], [0], [1], [0, 0, 1, 1], [], []>} : vector<15x24xbf16>, vector<24x24xbf16>, vector<15x24xf32> -> vector<15x24xf32>
    %17 = arith.addf %10, %16 : vector<15x24xf32>
    %cst_7 = arith.constant 0.707106769 : f32
    %18 = vector.broadcast %cst_7 : f32 to vector<15x24xf32>
    %19 = arith.mulf %17, %18 : vector<15x24xf32>
    %20 = math.absf %19 : vector<15x24xf32>
    %cst_8 = arith.constant 0.327591091 : f32
    %21 = vector.broadcast %cst_8 : f32 to vector<15x24xf32>
    %22 = arith.mulf %21, %20 : vector<15x24xf32>
    %cst_9 = arith.constant 1.000000e+00 : f32
    %23 = vector.broadcast %cst_9 : f32 to vector<15x24xf32>
    %24 = arith.addf %23, %22 : vector<15x24xf32>
    %cst_10 = arith.constant 1.000000e+00 : f32
    %25 = vector.broadcast %cst_10 : f32 to vector<15x24xf32>
    %26 = arith.divf %25, %24 : vector<15x24xf32>
    %cst_11 = arith.constant 1.06140542 : f32
    %27 = vector.broadcast %cst_11 : f32 to vector<15x24xf32>
    %28 = arith.mulf %26, %27 : vector<15x24xf32>
    %cst_12 = arith.constant -1.45315206 : f32
    %29 = vector.broadcast %cst_12 : f32 to vector<15x24xf32>
    %30 = arith.addf %29, %28 : vector<15x24xf32>
    %31 = arith.mulf %26, %30 : vector<15x24xf32>
    %cst_13 = arith.constant 1.42141378 : f32
    %32 = vector.broadcast %cst_13 : f32 to vector<15x24xf32>
    %33 = arith.addf %32, %31 : vector<15x24xf32>
    %34 = arith.mulf %26, %33 : vector<15x24xf32>
    %cst_14 = arith.constant -0.284496725 : f32
    %35 = vector.broadcast %cst_14 : f32 to vector<15x24xf32>
    %36 = arith.addf %35, %34 : vector<15x24xf32>
    %37 = arith.mulf %26, %36 : vector<15x24xf32>
    %cst_15 = arith.constant 0.254829586 : f32
    %38 = vector.broadcast %cst_15 : f32 to vector<15x24xf32>
    %39 = arith.addf %38, %37 : vector<15x24xf32>
    %40 = arith.mulf %26, %39 : vector<15x24xf32>
    %cst_16 = arith.constant 0.000000e+00 : f32
    %41 = vector.broadcast %cst_16 : f32 to vector<15x24xf32>
    %42 = arith.subf %41, %20 : vector<15x24xf32>
    %43 = arith.mulf %42, %20 : vector<15x24xf32>
    %44 = math.exp %43 : vector<15x24xf32>
    %45 = arith.mulf %40, %44 : vector<15x24xf32>
    %cst_17 = arith.constant 1.000000e+00 : f32
    %46 = vector.broadcast %cst_17 : f32 to vector<15x24xf32>
    %47 = arith.subf %46, %45 : vector<15x24xf32>
    %cst_18 = arith.constant 0.000000e+00 : f32
    %48 = vector.broadcast %cst_18 : f32 to vector<15x24xf32>
    %49 = arith.cmpf oge, %19, %48 : vector<15x24xf32>
    %cst_19 = arith.constant 0.000000e+00 : f32
    %50 = vector.broadcast %cst_19 : f32 to vector<15x24xf32>
    %51 = arith.subf %50, %47 : vector<15x24xf32>
    %52 = arith.select %49, %47, %51 : vector<15x24xi1>, vector<15x24xf32>
    %cst_20 = arith.constant 5.000000e-01 : f32
    %53 = vector.broadcast %cst_20 : f32 to vector<15x24xf32>
    %54 = arith.mulf %53, %17 : vector<15x24xf32>
    %cst_21 = arith.constant 1.000000e+00 : f32
    %55 = vector.broadcast %cst_21 : f32 to vector<15x24xf32>
    %56 = arith.addf %55, %52 : vector<15x24xf32>
    %57 = arith.mulf %54, %56 : vector<15x24xf32>
    %c0_22 = arith.constant 0 : index
    %c0_23 = arith.constant 0 : index
    %c0_24 = arith.constant 0 : index
    %58 = vector.load %arg3[%c0_22, %c0_23, %c0_24] : memref<1x15x24xf32, #tpu.memory_space<vmem>>, vector<1x15x24xf32>
    %59 = vector.shape_cast %58 : vector<1x15x24xf32> to vector<15x24xf32>
    %60 = vector.shape_cast %57 : vector<15x24xf32> to vector<1x15x24xf32>
    tpu.vector_store %arg3[%c0_22, %c0_23, %c0_24], %60 {strides = array<i32>} : memref<1x15x24xf32, #tpu.memory_space<vmem>>, vector<1x15x24xf32>,
    return
  }
  func.func @transform_0(%arg0: i32) -> (i32, i32, i32) {
    %c0_i32 = arith.constant 0 : i32
    %c0_i32_0 = arith.constant 0 : i32
    %c0_i32_1 = arith.constant 0 : i32
    return %arg0, %c0_i32, %c0_i32_0 : i32, i32, i32
  }
  func.func @transform_1(%arg0: i32) -> (i32, i32, i32) {
    %c0_i32 = arith.constant 0 : i32
    %c0_i32_0 = arith.constant 0 : i32
    %c0_i32_1 = arith.constant 0 : i32
    %c0_i32_2 = arith.constant 0 : i32
    return %c0_i32, %c0_i32_0, %c0_i32_1 : i32, i32, i32
  }
  func.func @transform_2(%arg0: i32) -> (i32, i32, i32) {
    %c0_i32 = arith.constant 0 : i32
    %c0_i32_0 = arith.constant 0 : i32
    %c0_i32_1 = arith.constant 0 : i32
    return %arg0, %c0_i32, %c0_i32_0 : i32, i32, i32
  }
}

module attributes {stable_mosaic.version = 11 : i64} {
  func.func @_lnproj_kernel(%arg0: i32, %arg1: memref<30x24xf32, #tpu.memory_space<vmem>>, %arg2: memref<1x24xf32, #tpu.memory_space<vmem>>, %arg3: memref<1x24xf32, #tpu.memory_space<vmem>>, %arg4: memref<24x32xbf16, #tpu.memory_space<vmem>>, %arg5: memref<1x32xf32, #tpu.memory_space<vmem>>, %arg6: memref<30x32xf32, #tpu.memory_space<vmem>>) attributes {dimension_semantics = [#tpu.dimension_semantics<parallel>], iteration_bounds = array<i64: 1>, scalar_prefetch = 0 : i64, scratch_operands = 0 : i64, tpu.core_type = #tpu.core_type<tc>, window_params = [{transform_indices = @transform_0, window_bounds = array<i64: 30, 24>}, {pipeline_mode = #tpu.pipeline_mode<synchronous>, transform_indices = @transform_1, window_bounds = array<i64: 1, 24>}, {pipeline_mode = #tpu.pipeline_mode<synchronous>, transform_indices = @transform_2, window_bounds = array<i64: 1, 24>}, {pipeline_mode = #tpu.pipeline_mode<synchronous>, transform_indices = @transform_3, window_bounds = array<i64: 24, 32>}, {pipeline_mode = #tpu.pipeline_mode<synchronous>, transform_indices = @transform_4, window_bounds = array<i64: 1, 32>}, {transform_indices = @transform_5, window_bounds = array<i64: 30, 32>}]} {
    %c0 = arith.constant 0 : index
    %c0_0 = arith.constant 0 : index
    %0 = vector.load %arg1[%c0, %c0_0] : memref<30x24xf32, #tpu.memory_space<vmem>>, vector<30x24xf32>
    %c0_1 = arith.constant 0 : index
    %c0_2 = arith.constant 0 : index
    %1 = vector.load %arg2[%c0_1, %c0_2] : memref<1x24xf32, #tpu.memory_space<vmem>>, vector<1x24xf32>
    %c0_3 = arith.constant 0 : index
    %c0_4 = arith.constant 0 : index
    %2 = vector.load %arg3[%c0_3, %c0_4] : memref<1x24xf32, #tpu.memory_space<vmem>>, vector<1x24xf32>
    %cst = arith.constant dense<0.000000e+00> : vector<30xf32>
    %3 = vector.multi_reduction <add>, %0, %cst [1] : vector<30x24xf32> to vector<30xf32>
    %4 = vector.shape_cast %3 : vector<30xf32> to vector<30x1xf32>
    %cst_5 = arith.constant 2.400000e+01 : f32
    %5 = vector.broadcast %cst_5 : f32 to vector<30x1xf32>
    %6 = arith.divf %4, %5 : vector<30x1xf32>
    %7 = vector.broadcast %6 : vector<30x1xf32> to vector<30x24xf32>
    %8 = arith.subf %0, %7 : vector<30x24xf32>
    %9 = arith.mulf %8, %8 : vector<30x24xf32>
    %cst_6 = arith.constant dense<0.000000e+00> : vector<30xf32>
    %10 = vector.multi_reduction <add>, %9, %cst_6 [1] : vector<30x24xf32> to vector<30xf32>
    %11 = vector.shape_cast %10 : vector<30xf32> to vector<30x1xf32>
    %cst_7 = arith.constant 2.400000e+01 : f32
    %12 = vector.broadcast %cst_7 : f32 to vector<30x1xf32>
    %13 = arith.divf %11, %12 : vector<30x1xf32>
    %cst_8 = arith.constant 9.99999974E-6 : f32
    %14 = vector.broadcast %cst_8 : f32 to vector<30x1xf32>
    %15 = arith.addf %13, %14 : vector<30x1xf32>
    %16 = math.rsqrt %15 : vector<30x1xf32>
    %17 = vector.broadcast %16 : vector<30x1xf32> to vector<30x24xf32>
    %18 = arith.mulf %8, %17 : vector<30x24xf32>
    %19 = vector.broadcast %1 : vector<1x24xf32> to vector<30x24xf32>
    %20 = arith.mulf %18, %19 : vector<30x24xf32>
    %21 = vector.broadcast %2 : vector<1x24xf32> to vector<30x24xf32>
    %22 = arith.addf %20, %21 : vector<30x24xf32>
    %23 = arith.truncf %22 : vector<30x24xf32> to vector<30x24xbf16>
    %c0_9 = arith.constant 0 : index
    %c0_10 = arith.constant 0 : index
    %24 = vector.load %arg4[%c0_9, %c0_10] : memref<24x32xbf16, #tpu.memory_space<vmem>>, vector<24x32xbf16>
    %cst_11 = arith.constant dense<0.000000e+00> : vector<30x32xf32>
    %25 = tpu.matmul %23, %24, %cst_11 {dimension_numbers = #tpu.dot_dimension_numbers<[1], [0], [0], [1], [0, 0, 1, 1], [], []>} : vector<30x24xbf16>, vector<24x32xbf16>, vector<30x32xf32> -> vector<30x32xf32>
    %c0_12 = arith.constant 0 : index
    %c0_13 = arith.constant 0 : index
    %26 = vector.load %arg5[%c0_12, %c0_13] : memref<1x32xf32, #tpu.memory_space<vmem>>, vector<1x32xf32>
    %27 = vector.broadcast %26 : vector<1x32xf32> to vector<30x32xf32>
    %28 = arith.addf %25, %27 : vector<30x32xf32>
    %c0_14 = arith.constant 0 : index
    %c0_15 = arith.constant 0 : index
    %29 = vector.load %arg6[%c0_14, %c0_15] : memref<30x32xf32, #tpu.memory_space<vmem>>, vector<30x32xf32>
    tpu.vector_store %arg6[%c0_14, %c0_15], %28 {strides = array<i32>} : memref<30x32xf32, #tpu.memory_space<vmem>>, vector<30x32xf32>,
    return
  }
  func.func @transform_0(%arg0: i32) -> (i32, i32) {
    %c0_i32 = arith.constant 0 : i32
    %c0_i32_0 = arith.constant 0 : i32
    return %arg0, %c0_i32 : i32, i32
  }
  func.func @transform_1(%arg0: i32) -> (i32, i32) {
    %c0_i32 = arith.constant 0 : i32
    %c0_i32_0 = arith.constant 0 : i32
    %c0_i32_1 = arith.constant 0 : i32
    return %c0_i32, %c0_i32_0 : i32, i32
  }
  func.func @transform_2(%arg0: i32) -> (i32, i32) {
    %c0_i32 = arith.constant 0 : i32
    %c0_i32_0 = arith.constant 0 : i32
    %c0_i32_1 = arith.constant 0 : i32
    return %c0_i32, %c0_i32_0 : i32, i32
  }
  func.func @transform_3(%arg0: i32) -> (i32, i32) {
    %c0_i32 = arith.constant 0 : i32
    %c0_i32_0 = arith.constant 0 : i32
    %c0_i32_1 = arith.constant 0 : i32
    return %c0_i32, %c0_i32_0 : i32, i32
  }
  func.func @transform_4(%arg0: i32) -> (i32, i32) {
    %c0_i32 = arith.constant 0 : i32
    %c0_i32_0 = arith.constant 0 : i32
    %c0_i32_1 = arith.constant 0 : i32
    return %c0_i32, %c0_i32_0 : i32, i32
  }
  func.func @transform_5(%arg0: i32) -> (i32, i32) {
    %c0_i32 = arith.constant 0 : i32
    %c0_i32_0 = arith.constant 0 : i32
    return %arg0, %c0_i32 : i32, i32
  }
}

module attributes {stable_mosaic.version = 11 : i64} {
  func.func @_attn_layer_kernel(%arg0: i32, %arg1: memref<1x15x32xf32, #tpu.memory_space<vmem>>, %arg2: memref<32x96xbf16, #tpu.memory_space<vmem>>, %arg3: memref<1x96xf32, #tpu.memory_space<vmem>>, %arg4: memref<32x32xbf16, #tpu.memory_space<vmem>>, %arg5: memref<1x32xf32, #tpu.memory_space<vmem>>, %arg6: memref<1x32xf32, #tpu.memory_space<vmem>>, %arg7: memref<1x32xf32, #tpu.memory_space<vmem>>, %arg8: memref<1x15x32xf32, #tpu.memory_space<vmem>>) attributes {dimension_semantics = [#tpu.dimension_semantics<parallel>], iteration_bounds = array<i64: 2>, scalar_prefetch = 0 : i64, scratch_operands = 0 : i64, tpu.core_type = #tpu.core_type<tc>, window_params = [{transform_indices = @transform_0, window_bounds = array<i64: 1, 15, 32>}, {pipeline_mode = #tpu.pipeline_mode<synchronous>, transform_indices = @transform_1, window_bounds = array<i64: 32, 96>}, {pipeline_mode = #tpu.pipeline_mode<synchronous>, transform_indices = @transform_2, window_bounds = array<i64: 1, 96>}, {pipeline_mode = #tpu.pipeline_mode<synchronous>, transform_indices = @transform_3, window_bounds = array<i64: 32, 32>}, {pipeline_mode = #tpu.pipeline_mode<synchronous>, transform_indices = @transform_4, window_bounds = array<i64: 1, 32>}, {pipeline_mode = #tpu.pipeline_mode<synchronous>, transform_indices = @transform_5, window_bounds = array<i64: 1, 32>}, {pipeline_mode = #tpu.pipeline_mode<synchronous>, transform_indices = @transform_6, window_bounds = array<i64: 1, 32>}, {transform_indices = @transform_7, window_bounds = array<i64: 1, 15, 32>}]} {
    %c0 = arith.constant 0 : index
    %c0_0 = arith.constant 0 : index
    %c0_1 = arith.constant 0 : index
    %0 = vector.load %arg1[%c0, %c0_0, %c0_1] : memref<1x15x32xf32, #tpu.memory_space<vmem>>, vector<1x15x32xf32>
    %1 = vector.shape_cast %0 : vector<1x15x32xf32> to vector<15x32xf32>
    %2 = arith.truncf %1 : vector<15x32xf32> to vector<15x32xbf16>
    %c0_2 = arith.constant 0 : index
    %c0_3 = arith.constant 0 : index
    %3 = vector.load %arg2[%c0_2, %c0_3] : memref<32x96xbf16, #tpu.memory_space<vmem>>, vector<32x96xbf16>
    %cst = arith.constant dense<0.000000e+00> : vector<15x96xf32>
    %4 = tpu.matmul %2, %3, %cst {dimension_numbers = #tpu.dot_dimension_numbers<[1], [0], [0], [1], [0, 0, 1, 1], [], []>} : vector<15x32xbf16>, vector<32x96xbf16>, vector<15x96xf32> -> vector<15x96xf32>
    %c0_4 = arith.constant 0 : index
    %c0_5 = arith.constant 0 : index
    %5 = vector.load %arg3[%c0_4, %c0_5] : memref<1x96xf32, #tpu.memory_space<vmem>>, vector<1x96xf32>
    %6 = vector.broadcast %5 : vector<1x96xf32> to vector<15x96xf32>
    %7 = arith.addf %4, %6 : vector<15x96xf32>
    %c0_6 = arith.constant 0 : index
    %c0_7 = arith.constant 0 : index
    %8 = vector.load %arg4[%c0_6, %c0_7] : memref<32x32xbf16, #tpu.memory_space<vmem>>, vector<32x32xbf16>
    %cst_8 = arith.constant 0.000000e+00 : f32
    %9 = vector.broadcast %cst_8 : f32 to vector<15x32xf32>
    %10 = vector.extract_strided_slice %7 {offsets = [0, 0], sizes = [15, 8], strides = [1, 1]} : vector<15x96xf32> to vector<15x8xf32>
    %11 = arith.truncf %10 : vector<15x8xf32> to vector<15x8xbf16>
    %12 = vector.extract_strided_slice %7 {offsets = [0, 32], sizes = [15, 8], strides = [1, 1]} : vector<15x96xf32> to vector<15x8xf32>
    %13 = arith.truncf %12 : vector<15x8xf32> to vector<15x8xbf16>
    %14 = vector.extract_strided_slice %7 {offsets = [0, 64], sizes = [15, 8], strides = [1, 1]} : vector<15x96xf32> to vector<15x8xf32>
    %15 = arith.truncf %14 : vector<15x8xf32> to vector<15x8xbf16>
    %cst_9 = arith.constant dense<0.000000e+00> : vector<15x15xf32>
    %16 = tpu.matmul %11, %13, %cst_9 {dimension_numbers = #tpu.dot_dimension_numbers<[1], [1], [0], [0], [0, 0, 1, 0], [], []>} : vector<15x8xbf16>, vector<15x8xbf16>, vector<15x15xf32> -> vector<15x15xf32>
    %cst_10 = arith.constant dense<0xFF800000> : vector<15xf32>
    %17 = vector.multi_reduction <maximumf>, %16, %cst_10 [1] : vector<15x15xf32> to vector<15xf32>
    %18 = vector.shape_cast %17 : vector<15xf32> to vector<15x1xf32>
    %19 = vector.broadcast %18 : vector<15x1xf32> to vector<15x15xf32>
    %20 = arith.subf %16, %19 : vector<15x15xf32>
    %21 = math.exp %20 : vector<15x15xf32>
    %cst_11 = arith.constant dense<0.000000e+00> : vector<15xf32>
    %22 = vector.multi_reduction <add>, %21, %cst_11 [1] : vector<15x15xf32> to vector<15xf32>
    %23 = vector.shape_cast %22 : vector<15xf32> to vector<15x1xf32>
    %24 = tpu.reciprocal %23 {approx = true} : vector<15x1xf32> -> vector<15x1xf32>
    %25 = vector.broadcast %24 : vector<15x1xf32> to vector<15x15xf32>
    %26 = arith.mulf %21, %25 : vector<15x15xf32>
    %27 = arith.truncf %26 : vector<15x15xf32> to vector<15x15xbf16>
    %cst_12 = arith.constant dense<0.000000e+00> : vector<15x8xf32>
    %28 = tpu.matmul %27, %15, %cst_12 {dimension_numbers = #tpu.dot_dimension_numbers<[1], [0], [0], [1], [0, 0, 1, 1], [], []>} : vector<15x15xbf16>, vector<15x8xbf16>, vector<15x8xf32> -> vector<15x8xf32>
    %29 = arith.truncf %28 : vector<15x8xf32> to vector<15x8xbf16>
    %30 = vector.extract_strided_slice %8 {offsets = [0, 0], sizes = [8, 32], strides = [1, 1]} : vector<32x32xbf16> to vector<8x32xbf16>
    %cst_13 = arith.constant dense<0.000000e+00> : vector<15x32xf32>
    %31 = tpu.matmul %29, %30, %cst_13 {dimension_numbers = #tpu.dot_dimension_numbers<[1], [0], [0], [1], [0, 0, 1, 1], [], []>} : vector<15x8xbf16>, vector<8x32xbf16>, vector<15x32xf32> -> vector<15x32xf32>
    %32 = arith.addf %9, %31 : vector<15x32xf32>
    %33 = vector.extract_strided_slice %7 {offsets = [0, 8], sizes = [15, 8], strides = [1, 1]} : vector<15x96xf32> to vector<15x8xf32>
    %34 = arith.truncf %33 : vector<15x8xf32> to vector<15x8xbf16>
    %35 = vector.extract_strided_slice %7 {offsets = [0, 40], sizes = [15, 8], strides = [1, 1]} : vector<15x96xf32> to vector<15x8xf32>
    %36 = arith.truncf %35 : vector<15x8xf32> to vector<15x8xbf16>
    %37 = vector.extract_strided_slice %7 {offsets = [0, 72], sizes = [15, 8], strides = [1, 1]} : vector<15x96xf32> to vector<15x8xf32>
    %38 = arith.truncf %37 : vector<15x8xf32> to vector<15x8xbf16>
    %cst_14 = arith.constant dense<0.000000e+00> : vector<15x15xf32>
    %39 = tpu.matmul %34, %36, %cst_14 {dimension_numbers = #tpu.dot_dimension_numbers<[1], [1], [0], [0], [0, 0, 1, 0], [], []>} : vector<15x8xbf16>, vector<15x8xbf16>, vector<15x15xf32> -> vector<15x15xf32>
    %cst_15 = arith.constant dense<0xFF800000> : vector<15xf32>
    %40 = vector.multi_reduction <maximumf>, %39, %cst_15 [1] : vector<15x15xf32> to vector<15xf32>
    %41 = vector.shape_cast %40 : vector<15xf32> to vector<15x1xf32>
    %42 = vector.broadcast %41 : vector<15x1xf32> to vector<15x15xf32>
    %43 = arith.subf %39, %42 : vector<15x15xf32>
    %44 = math.exp %43 : vector<15x15xf32>
    %cst_16 = arith.constant dense<0.000000e+00> : vector<15xf32>
    %45 = vector.multi_reduction <add>, %44, %cst_16 [1] : vector<15x15xf32> to vector<15xf32>
    %46 = vector.shape_cast %45 : vector<15xf32> to vector<15x1xf32>
    %47 = tpu.reciprocal %46 {approx = true} : vector<15x1xf32> -> vector<15x1xf32>
    %48 = vector.broadcast %47 : vector<15x1xf32> to vector<15x15xf32>
    %49 = arith.mulf %44, %48 : vector<15x15xf32>
    %50 = arith.truncf %49 : vector<15x15xf32> to vector<15x15xbf16>
    %cst_17 = arith.constant dense<0.000000e+00> : vector<15x8xf32>
    %51 = tpu.matmul %50, %38, %cst_17 {dimension_numbers = #tpu.dot_dimension_numbers<[1], [0], [0], [1], [0, 0, 1, 1], [], []>} : vector<15x15xbf16>, vector<15x8xbf16>, vector<15x8xf32> -> vector<15x8xf32>
    %52 = arith.truncf %51 : vector<15x8xf32> to vector<15x8xbf16>
    %53 = vector.extract_strided_slice %8 {offsets = [8, 0], sizes = [8, 32], strides = [1, 1]} : vector<32x32xbf16> to vector<8x32xbf16>
    %cst_18 = arith.constant dense<0.000000e+00> : vector<15x32xf32>
    %54 = tpu.matmul %52, %53, %cst_18 {dimension_numbers = #tpu.dot_dimension_numbers<[1], [0], [0], [1], [0, 0, 1, 1], [], []>} : vector<15x8xbf16>, vector<8x32xbf16>, vector<15x32xf32> -> vector<15x32xf32>
    %55 = arith.addf %32, %54 : vector<15x32xf32>
    %56 = vector.extract_strided_slice %7 {offsets = [0, 16], sizes = [15, 8], strides = [1, 1]} : vector<15x96xf32> to vector<15x8xf32>
    %57 = arith.truncf %56 : vector<15x8xf32> to vector<15x8xbf16>
    %58 = vector.extract_strided_slice %7 {offsets = [0, 48], sizes = [15, 8], strides = [1, 1]} : vector<15x96xf32> to vector<15x8xf32>
    %59 = arith.truncf %58 : vector<15x8xf32> to vector<15x8xbf16>
    %60 = vector.extract_strided_slice %7 {offsets = [0, 80], sizes = [15, 8], strides = [1, 1]} : vector<15x96xf32> to vector<15x8xf32>
    %61 = arith.truncf %60 : vector<15x8xf32> to vector<15x8xbf16>
    %cst_19 = arith.constant dense<0.000000e+00> : vector<15x15xf32>
    %62 = tpu.matmul %57, %59, %cst_19 {dimension_numbers = #tpu.dot_dimension_numbers<[1], [1], [0], [0], [0, 0, 1, 0], [], []>} : vector<15x8xbf16>, vector<15x8xbf16>, vector<15x15xf32> -> vector<15x15xf32>
    %cst_20 = arith.constant dense<0xFF800000> : vector<15xf32>
    %63 = vector.multi_reduction <maximumf>, %62, %cst_20 [1] : vector<15x15xf32> to vector<15xf32>
    %64 = vector.shape_cast %63 : vector<15xf32> to vector<15x1xf32>
    %65 = vector.broadcast %64 : vector<15x1xf32> to vector<15x15xf32>
    %66 = arith.subf %62, %65 : vector<15x15xf32>
    %67 = math.exp %66 : vector<15x15xf32>
    %cst_21 = arith.constant dense<0.000000e+00> : vector<15xf32>
    %68 = vector.multi_reduction <add>, %67, %cst_21 [1] : vector<15x15xf32> to vector<15xf32>
    %69 = vector.shape_cast %68 : vector<15xf32> to vector<15x1xf32>
    %70 = tpu.reciprocal %69 {approx = true} : vector<15x1xf32> -> vector<15x1xf32>
    %71 = vector.broadcast %70 : vector<15x1xf32> to vector<15x15xf32>
    %72 = arith.mulf %67, %71 : vector<15x15xf32>
    %73 = arith.truncf %72 : vector<15x15xf32> to vector<15x15xbf16>
    %cst_22 = arith.constant dense<0.000000e+00> : vector<15x8xf32>
    %74 = tpu.matmul %73, %61, %cst_22 {dimension_numbers = #tpu.dot_dimension_numbers<[1], [0], [0], [1], [0, 0, 1, 1], [], []>} : vector<15x15xbf16>, vector<15x8xbf16>, vector<15x8xf32> -> vector<15x8xf32>
    %75 = arith.truncf %74 : vector<15x8xf32> to vector<15x8xbf16>
    %76 = vector.extract_strided_slice %8 {offsets = [16, 0], sizes = [8, 32], strides = [1, 1]} : vector<32x32xbf16> to vector<8x32xbf16>
    %cst_23 = arith.constant dense<0.000000e+00> : vector<15x32xf32>
    %77 = tpu.matmul %75, %76, %cst_23 {dimension_numbers = #tpu.dot_dimension_numbers<[1], [0], [0], [1], [0, 0, 1, 1], [], []>} : vector<15x8xbf16>, vector<8x32xbf16>, vector<15x32xf32> -> vector<15x32xf32>
    %78 = arith.addf %55, %77 : vector<15x32xf32>
    %79 = vector.extract_strided_slice %7 {offsets = [0, 24], sizes = [15, 8], strides = [1, 1]} : vector<15x96xf32> to vector<15x8xf32>
    %80 = arith.truncf %79 : vector<15x8xf32> to vector<15x8xbf16>
    %81 = vector.extract_strided_slice %7 {offsets = [0, 56], sizes = [15, 8], strides = [1, 1]} : vector<15x96xf32> to vector<15x8xf32>
    %82 = arith.truncf %81 : vector<15x8xf32> to vector<15x8xbf16>
    %83 = vector.extract_strided_slice %7 {offsets = [0, 88], sizes = [15, 8], strides = [1, 1]} : vector<15x96xf32> to vector<15x8xf32>
    %84 = arith.truncf %83 : vector<15x8xf32> to vector<15x8xbf16>
    %cst_24 = arith.constant dense<0.000000e+00> : vector<15x15xf32>
    %85 = tpu.matmul %80, %82, %cst_24 {dimension_numbers = #tpu.dot_dimension_numbers<[1], [1], [0], [0], [0, 0, 1, 0], [], []>} : vector<15x8xbf16>, vector<15x8xbf16>, vector<15x15xf32> -> vector<15x15xf32>
    %cst_25 = arith.constant dense<0xFF800000> : vector<15xf32>
    %86 = vector.multi_reduction <maximumf>, %85, %cst_25 [1] : vector<15x15xf32> to vector<15xf32>
    %87 = vector.shape_cast %86 : vector<15xf32> to vector<15x1xf32>
    %88 = vector.broadcast %87 : vector<15x1xf32> to vector<15x15xf32>
    %89 = arith.subf %85, %88 : vector<15x15xf32>
    %90 = math.exp %89 : vector<15x15xf32>
    %cst_26 = arith.constant dense<0.000000e+00> : vector<15xf32>
    %91 = vector.multi_reduction <add>, %90, %cst_26 [1] : vector<15x15xf32> to vector<15xf32>
    %92 = vector.shape_cast %91 : vector<15xf32> to vector<15x1xf32>
    %93 = tpu.reciprocal %92 {approx = true} : vector<15x1xf32> -> vector<15x1xf32>
    %94 = vector.broadcast %93 : vector<15x1xf32> to vector<15x15xf32>
    %95 = arith.mulf %90, %94 : vector<15x15xf32>
    %96 = arith.truncf %95 : vector<15x15xf32> to vector<15x15xbf16>
    %cst_27 = arith.constant dense<0.000000e+00> : vector<15x8xf32>
    %97 = tpu.matmul %96, %84, %cst_27 {dimension_numbers = #tpu.dot_dimension_numbers<[1], [0], [0], [1], [0, 0, 1, 1], [], []>} : vector<15x15xbf16>, vector<15x8xbf16>, vector<15x8xf32> -> vector<15x8xf32>
    %98 = arith.truncf %97 : vector<15x8xf32> to vector<15x8xbf16>
    %99 = vector.extract_strided_slice %8 {offsets = [24, 0], sizes = [8, 32], strides = [1, 1]} : vector<32x32xbf16> to vector<8x32xbf16>
    %cst_28 = arith.constant dense<0.000000e+00> : vector<15x32xf32>
    %100 = tpu.matmul %98, %99, %cst_28 {dimension_numbers = #tpu.dot_dimension_numbers<[1], [0], [0], [1], [0, 0, 1, 1], [], []>} : vector<15x8xbf16>, vector<8x32xbf16>, vector<15x32xf32> -> vector<15x32xf32>
    %101 = arith.addf %78, %100 : vector<15x32xf32>
    %102 = arith.addf %1, %101 : vector<15x32xf32>
    %c0_29 = arith.constant 0 : index
    %c0_30 = arith.constant 0 : index
    %103 = vector.load %arg5[%c0_29, %c0_30] : memref<1x32xf32, #tpu.memory_space<vmem>>, vector<1x32xf32>
    %104 = vector.broadcast %103 : vector<1x32xf32> to vector<15x32xf32>
    %105 = arith.addf %102, %104 : vector<15x32xf32>
    %c0_31 = arith.constant 0 : index
    %c0_32 = arith.constant 0 : index
    %106 = vector.load %arg6[%c0_31, %c0_32] : memref<1x32xf32, #tpu.memory_space<vmem>>, vector<1x32xf32>
    %c0_33 = arith.constant 0 : index
    %c0_34 = arith.constant 0 : index
    %107 = vector.load %arg7[%c0_33, %c0_34] : memref<1x32xf32, #tpu.memory_space<vmem>>, vector<1x32xf32>
    %cst_35 = arith.constant dense<0.000000e+00> : vector<15xf32>
    %108 = vector.multi_reduction <add>, %105, %cst_35 [1] : vector<15x32xf32> to vector<15xf32>
    %109 = vector.shape_cast %108 : vector<15xf32> to vector<15x1xf32>
    %cst_36 = arith.constant 3.200000e+01 : f32
    %110 = vector.broadcast %cst_36 : f32 to vector<15x1xf32>
    %111 = arith.divf %109, %110 : vector<15x1xf32>
    %112 = vector.broadcast %111 : vector<15x1xf32> to vector<15x32xf32>
    %113 = arith.subf %105, %112 : vector<15x32xf32>
    %114 = arith.mulf %113, %113 : vector<15x32xf32>
    %cst_37 = arith.constant dense<0.000000e+00> : vector<15xf32>
    %115 = vector.multi_reduction <add>, %114, %cst_37 [1] : vector<15x32xf32> to vector<15xf32>
    %116 = vector.shape_cast %115 : vector<15xf32> to vector<15x1xf32>
    %cst_38 = arith.constant 3.200000e+01 : f32
    %117 = vector.broadcast %cst_38 : f32 to vector<15x1xf32>
    %118 = arith.divf %116, %117 : vector<15x1xf32>
    %cst_39 = arith.constant 9.99999974E-6 : f32
    %119 = vector.broadcast %cst_39 : f32 to vector<15x1xf32>
    %120 = arith.addf %118, %119 : vector<15x1xf32>
    %121 = math.rsqrt %120 : vector<15x1xf32>
    %122 = vector.broadcast %121 : vector<15x1xf32> to vector<15x32xf32>
    %123 = arith.mulf %113, %122 : vector<15x32xf32>
    %124 = vector.broadcast %106 : vector<1x32xf32> to vector<15x32xf32>
    %125 = arith.mulf %123, %124 : vector<15x32xf32>
    %126 = vector.broadcast %107 : vector<1x32xf32> to vector<15x32xf32>
    %127 = arith.addf %125, %126 : vector<15x32xf32>
    %c0_40 = arith.constant 0 : index
    %c0_41 = arith.constant 0 : index
    %c0_42 = arith.constant 0 : index
    %128 = vector.load %arg8[%c0_40, %c0_41, %c0_42] : memref<1x15x32xf32, #tpu.memory_space<vmem>>, vector<1x15x32xf32>
    %129 = vector.shape_cast %128 : vector<1x15x32xf32> to vector<15x32xf32>
    %130 = vector.shape_cast %127 : vector<15x32xf32> to vector<1x15x32xf32>
    tpu.vector_store %arg8[%c0_40, %c0_41, %c0_42], %130 {strides = array<i32>} : memref<1x15x32xf32, #tpu.memory_space<vmem>>, vector<1x15x32xf32>,
    return
  }
  func.func @transform_0(%arg0: i32) -> (i32, i32, i32) {
    %c0_i32 = arith.constant 0 : i32
    %c0_i32_0 = arith.constant 0 : i32
    %c0_i32_1 = arith.constant 0 : i32
    return %arg0, %c0_i32, %c0_i32_0 : i32, i32, i32
  }
  func.func @transform_1(%arg0: i32) -> (i32, i32) {
    %c0_i32 = arith.constant 0 : i32
    %c0_i32_0 = arith.constant 0 : i32
    %c0_i32_1 = arith.constant 0 : i32
    return %c0_i32, %c0_i32_0 : i32, i32
  }
  func.func @transform_2(%arg0: i32) -> (i32, i32) {
    %c0_i32 = arith.constant 0 : i32
    %c0_i32_0 = arith.constant 0 : i32
    %c0_i32_1 = arith.constant 0 : i32
    return %c0_i32, %c0_i32_0 : i32, i32
  }
  func.func @transform_3(%arg0: i32) -> (i32, i32) {
    %c0_i32 = arith.constant 0 : i32
    %c0_i32_0 = arith.constant 0 : i32
    %c0_i32_1 = arith.constant 0 : i32
    return %c0_i32, %c0_i32_0 : i32, i32
  }
  func.func @transform_4(%arg0: i32) -> (i32, i32) {
    %c0_i32 = arith.constant 0 : i32
    %c0_i32_0 = arith.constant 0 : i32
    %c0_i32_1 = arith.constant 0 : i32
    return %c0_i32, %c0_i32_0 : i32, i32
  }
  func.func @transform_5(%arg0: i32) -> (i32, i32) {
    %c0_i32 = arith.constant 0 : i32
    %c0_i32_0 = arith.constant 0 : i32
    %c0_i32_1 = arith.constant 0 : i32
    return %c0_i32, %c0_i32_0 : i32, i32
  }
  func.func @transform_6(%arg0: i32) -> (i32, i32) {
    %c0_i32 = arith.constant 0 : i32
    %c0_i32_0 = arith.constant 0 : i32
    %c0_i32_1 = arith.constant 0 : i32
    return %c0_i32, %c0_i32_0 : i32, i32
  }
  func.func @transform_7(%arg0: i32) -> (i32, i32, i32) {
    %c0_i32 = arith.constant 0 : i32
    %c0_i32_0 = arith.constant 0 : i32
    %c0_i32_1 = arith.constant 0 : i32
    return %arg0, %c0_i32, %c0_i32_0 : i32, i32, i32
  }
}

module attributes {stable_mosaic.version = 11 : i64} {
  func.func @_posconv_ln_kernel(%arg0: i32, %arg1: memref<1x17x32xf32, #tpu.memory_space<vmem>>, %arg2: memref<3x32x32xf32, #tpu.memory_space<vmem>>, %arg3: memref<1x32xf32, #tpu.memory_space<vmem>>, %arg4: memref<1x32xf32, #tpu.memory_space<vmem>>, %arg5: memref<1x32xf32, #tpu.memory_space<vmem>>, %arg6: memref<1x15x32xf32, #tpu.memory_space<vmem>>) attributes {dimension_semantics = [#tpu.dimension_semantics<parallel>], iteration_bounds = array<i64: 2>, scalar_prefetch = 0 : i64, scratch_operands = 0 : i64, tpu.core_type = #tpu.core_type<tc>, window_params = [{transform_indices = @transform_0, window_bounds = array<i64: 1, 17, 32>}, {pipeline_mode = #tpu.pipeline_mode<synchronous>, transform_indices = @transform_1, window_bounds = array<i64: 3, 32, 32>}, {pipeline_mode = #tpu.pipeline_mode<synchronous>, transform_indices = @transform_2, window_bounds = array<i64: 1, 32>}, {pipeline_mode = #tpu.pipeline_mode<synchronous>, transform_indices = @transform_3, window_bounds = array<i64: 1, 32>}, {pipeline_mode = #tpu.pipeline_mode<synchronous>, transform_indices = @transform_4, window_bounds = array<i64: 1, 32>}, {transform_indices = @transform_5, window_bounds = array<i64: 1, 15, 32>}]} {
    %c0 = arith.constant 0 : index
    %c0_0 = arith.constant 0 : index
    %c0_1 = arith.constant 0 : index
    %0 = vector.load %arg1[%c0, %c0_0, %c0_1] : memref<1x17x32xf32, #tpu.memory_space<vmem>>, vector<1x17x32xf32>
    %1 = vector.shape_cast %0 : vector<1x17x32xf32> to vector<17x32xf32>
    %c0_2 = arith.constant 0 : index
    %c0_3 = arith.constant 0 : index
    %c0_4 = arith.constant 0 : index
    %2 = vector.load %arg2[%c0_2, %c0_3, %c0_4] : memref<3x32x32xf32, #tpu.memory_space<vmem>>, vector<3x32x32xf32>
    %cst = arith.constant 0.000000e+00 : f32
    %3 = vector.broadcast %cst : f32 to vector<15x32xf32>
    %4 = vector.extract_strided_slice %1 {offsets = [0, 0], sizes = [15, 32], strides = [1, 1]} : vector<17x32xf32> to vector<15x32xf32>
    %5 = arith.truncf %4 : vector<15x32xf32> to vector<15x32xbf16>
    %6 = vector.extract_strided_slice %2 {offsets = [0, 0, 0], sizes = [1, 32, 32], strides = [1, 1, 1]} : vector<3x32x32xf32> to vector<1x32x32xf32>
    %7 = vector.shape_cast %6 : vector<1x32x32xf32> to vector<32x32xf32>
    %8 = arith.truncf %7 : vector<32x32xf32> to vector<32x32xbf16>
    %cst_5 = arith.constant dense<0.000000e+00> : vector<15x32xf32>
    %9 = tpu.matmul %5, %8, %cst_5 {dimension_numbers = #tpu.dot_dimension_numbers<[1], [0], [0], [1], [0, 0, 1, 1], [], []>} : vector<15x32xbf16>, vector<32x32xbf16>, vector<15x32xf32> -> vector<15x32xf32>
    %10 = arith.addf %3, %9 : vector<15x32xf32>
    %11 = vector.extract_strided_slice %1 {offsets = [1, 0], sizes = [15, 32], strides = [1, 1]} : vector<17x32xf32> to vector<15x32xf32>
    %12 = arith.truncf %11 : vector<15x32xf32> to vector<15x32xbf16>
    %13 = vector.extract_strided_slice %2 {offsets = [1, 0, 0], sizes = [1, 32, 32], strides = [1, 1, 1]} : vector<3x32x32xf32> to vector<1x32x32xf32>
    %14 = vector.shape_cast %13 : vector<1x32x32xf32> to vector<32x32xf32>
    %15 = arith.truncf %14 : vector<32x32xf32> to vector<32x32xbf16>
    %cst_6 = arith.constant dense<0.000000e+00> : vector<15x32xf32>
    %16 = tpu.matmul %12, %15, %cst_6 {dimension_numbers = #tpu.dot_dimension_numbers<[1], [0], [0], [1], [0, 0, 1, 1], [], []>} : vector<15x32xbf16>, vector<32x32xbf16>, vector<15x32xf32> -> vector<15x32xf32>
    %17 = arith.addf %10, %16 : vector<15x32xf32>
    %18 = vector.extract_strided_slice %1 {offsets = [2, 0], sizes = [15, 32], strides = [1, 1]} : vector<17x32xf32> to vector<15x32xf32>
    %19 = arith.truncf %18 : vector<15x32xf32> to vector<15x32xbf16>
    %20 = vector.extract_strided_slice %2 {offsets = [2, 0, 0], sizes = [1, 32, 32], strides = [1, 1, 1]} : vector<3x32x32xf32> to vector<1x32x32xf32>
    %21 = vector.shape_cast %20 : vector<1x32x32xf32> to vector<32x32xf32>
    %22 = arith.truncf %21 : vector<32x32xf32> to vector<32x32xbf16>
    %cst_7 = arith.constant dense<0.000000e+00> : vector<15x32xf32>
    %23 = tpu.matmul %19, %22, %cst_7 {dimension_numbers = #tpu.dot_dimension_numbers<[1], [0], [0], [1], [0, 0, 1, 1], [], []>} : vector<15x32xbf16>, vector<32x32xbf16>, vector<15x32xf32> -> vector<15x32xf32>
    %24 = arith.addf %17, %23 : vector<15x32xf32>
    %c0_8 = arith.constant 0 : index
    %c0_9 = arith.constant 0 : index
    %25 = vector.load %arg3[%c0_8, %c0_9] : memref<1x32xf32, #tpu.memory_space<vmem>>, vector<1x32xf32>
    %26 = vector.broadcast %25 : vector<1x32xf32> to vector<15x32xf32>
    %27 = arith.addf %24, %26 : vector<15x32xf32>
    %cst_10 = arith.constant 0.707106769 : f32
    %28 = vector.broadcast %cst_10 : f32 to vector<15x32xf32>
    %29 = arith.mulf %27, %28 : vector<15x32xf32>
    %30 = math.absf %29 : vector<15x32xf32>
    %cst_11 = arith.constant 0.327591091 : f32
    %31 = vector.broadcast %cst_11 : f32 to vector<15x32xf32>
    %32 = arith.mulf %31, %30 : vector<15x32xf32>
    %cst_12 = arith.constant 1.000000e+00 : f32
    %33 = vector.broadcast %cst_12 : f32 to vector<15x32xf32>
    %34 = arith.addf %33, %32 : vector<15x32xf32>
    %cst_13 = arith.constant 1.000000e+00 : f32
    %35 = vector.broadcast %cst_13 : f32 to vector<15x32xf32>
    %36 = arith.divf %35, %34 : vector<15x32xf32>
    %cst_14 = arith.constant 1.06140542 : f32
    %37 = vector.broadcast %cst_14 : f32 to vector<15x32xf32>
    %38 = arith.mulf %36, %37 : vector<15x32xf32>
    %cst_15 = arith.constant -1.45315206 : f32
    %39 = vector.broadcast %cst_15 : f32 to vector<15x32xf32>
    %40 = arith.addf %39, %38 : vector<15x32xf32>
    %41 = arith.mulf %36, %40 : vector<15x32xf32>
    %cst_16 = arith.constant 1.42141378 : f32
    %42 = vector.broadcast %cst_16 : f32 to vector<15x32xf32>
    %43 = arith.addf %42, %41 : vector<15x32xf32>
    %44 = arith.mulf %36, %43 : vector<15x32xf32>
    %cst_17 = arith.constant -0.284496725 : f32
    %45 = vector.broadcast %cst_17 : f32 to vector<15x32xf32>
    %46 = arith.addf %45, %44 : vector<15x32xf32>
    %47 = arith.mulf %36, %46 : vector<15x32xf32>
    %cst_18 = arith.constant 0.254829586 : f32
    %48 = vector.broadcast %cst_18 : f32 to vector<15x32xf32>
    %49 = arith.addf %48, %47 : vector<15x32xf32>
    %50 = arith.mulf %36, %49 : vector<15x32xf32>
    %cst_19 = arith.constant 0.000000e+00 : f32
    %51 = vector.broadcast %cst_19 : f32 to vector<15x32xf32>
    %52 = arith.subf %51, %30 : vector<15x32xf32>
    %53 = arith.mulf %52, %30 : vector<15x32xf32>
    %54 = math.exp %53 : vector<15x32xf32>
    %55 = arith.mulf %50, %54 : vector<15x32xf32>
    %cst_20 = arith.constant 1.000000e+00 : f32
    %56 = vector.broadcast %cst_20 : f32 to vector<15x32xf32>
    %57 = arith.subf %56, %55 : vector<15x32xf32>
    %cst_21 = arith.constant 0.000000e+00 : f32
    %58 = vector.broadcast %cst_21 : f32 to vector<15x32xf32>
    %59 = arith.cmpf oge, %29, %58 : vector<15x32xf32>
    %cst_22 = arith.constant 0.000000e+00 : f32
    %60 = vector.broadcast %cst_22 : f32 to vector<15x32xf32>
    %61 = arith.subf %60, %57 : vector<15x32xf32>
    %62 = arith.select %59, %57, %61 : vector<15x32xi1>, vector<15x32xf32>
    %cst_23 = arith.constant 5.000000e-01 : f32
    %63 = vector.broadcast %cst_23 : f32 to vector<15x32xf32>
    %64 = arith.mulf %63, %27 : vector<15x32xf32>
    %cst_24 = arith.constant 1.000000e+00 : f32
    %65 = vector.broadcast %cst_24 : f32 to vector<15x32xf32>
    %66 = arith.addf %65, %62 : vector<15x32xf32>
    %67 = arith.mulf %64, %66 : vector<15x32xf32>
    %68 = vector.extract_strided_slice %1 {offsets = [1, 0], sizes = [15, 32], strides = [1, 1]} : vector<17x32xf32> to vector<15x32xf32>
    %69 = arith.addf %68, %67 : vector<15x32xf32>
    %c0_25 = arith.constant 0 : index
    %c0_26 = arith.constant 0 : index
    %70 = vector.load %arg4[%c0_25, %c0_26] : memref<1x32xf32, #tpu.memory_space<vmem>>, vector<1x32xf32>
    %c0_27 = arith.constant 0 : index
    %c0_28 = arith.constant 0 : index
    %71 = vector.load %arg5[%c0_27, %c0_28] : memref<1x32xf32, #tpu.memory_space<vmem>>, vector<1x32xf32>
    %cst_29 = arith.constant dense<0.000000e+00> : vector<15xf32>
    %72 = vector.multi_reduction <add>, %69, %cst_29 [1] : vector<15x32xf32> to vector<15xf32>
    %73 = vector.shape_cast %72 : vector<15xf32> to vector<15x1xf32>
    %cst_30 = arith.constant 3.200000e+01 : f32
    %74 = vector.broadcast %cst_30 : f32 to vector<15x1xf32>
    %75 = arith.divf %73, %74 : vector<15x1xf32>
    %76 = vector.broadcast %75 : vector<15x1xf32> to vector<15x32xf32>
    %77 = arith.subf %69, %76 : vector<15x32xf32>
    %78 = arith.mulf %77, %77 : vector<15x32xf32>
    %cst_31 = arith.constant dense<0.000000e+00> : vector<15xf32>
    %79 = vector.multi_reduction <add>, %78, %cst_31 [1] : vector<15x32xf32> to vector<15xf32>
    %80 = vector.shape_cast %79 : vector<15xf32> to vector<15x1xf32>
    %cst_32 = arith.constant 3.200000e+01 : f32
    %81 = vector.broadcast %cst_32 : f32 to vector<15x1xf32>
    %82 = arith.divf %80, %81 : vector<15x1xf32>
    %cst_33 = arith.constant 9.99999974E-6 : f32
    %83 = vector.broadcast %cst_33 : f32 to vector<15x1xf32>
    %84 = arith.addf %82, %83 : vector<15x1xf32>
    %85 = math.rsqrt %84 : vector<15x1xf32>
    %86 = vector.broadcast %85 : vector<15x1xf32> to vector<15x32xf32>
    %87 = arith.mulf %77, %86 : vector<15x32xf32>
    %88 = vector.broadcast %70 : vector<1x32xf32> to vector<15x32xf32>
    %89 = arith.mulf %87, %88 : vector<15x32xf32>
    %90 = vector.broadcast %71 : vector<1x32xf32> to vector<15x32xf32>
    %91 = arith.addf %89, %90 : vector<15x32xf32>
    %c0_34 = arith.constant 0 : index
    %c0_35 = arith.constant 0 : index
    %c0_36 = arith.constant 0 : index
    %92 = vector.load %arg6[%c0_34, %c0_35, %c0_36] : memref<1x15x32xf32, #tpu.memory_space<vmem>>, vector<1x15x32xf32>
    %93 = vector.shape_cast %92 : vector<1x15x32xf32> to vector<15x32xf32>
    %94 = vector.shape_cast %91 : vector<15x32xf32> to vector<1x15x32xf32>
    tpu.vector_store %arg6[%c0_34, %c0_35, %c0_36], %94 {strides = array<i32>} : memref<1x15x32xf32, #tpu.memory_space<vmem>>, vector<1x15x32xf32>,
    return
  }
  func.func @transform_0(%arg0: i32) -> (i32, i32, i32) {
    %c0_i32 = arith.constant 0 : i32
    %c0_i32_0 = arith.constant 0 : i32
    %c0_i32_1 = arith.constant 0 : i32
    return %arg0, %c0_i32, %c0_i32_0 : i32, i32, i32
  }
  func.func @transform_1(%arg0: i32) -> (i32, i32, i32) {
    %c0_i32 = arith.constant 0 : i32
    %c0_i32_0 = arith.constant 0 : i32
    %c0_i32_1 = arith.constant 0 : i32
    %c0_i32_2 = arith.constant 0 : i32
    return %c0_i32, %c0_i32_0, %c0_i32_1 : i32, i32, i32
  }
  func.func @transform_2(%arg0: i32) -> (i32, i32) {
    %c0_i32 = arith.constant 0 : i32
    %c0_i32_0 = arith.constant 0 : i32
    %c0_i32_1 = arith.constant 0 : i32
    return %c0_i32, %c0_i32_0 : i32, i32
  }
  func.func @transform_3(%arg0: i32) -> (i32, i32) {
    %c0_i32 = arith.constant 0 : i32
    %c0_i32_0 = arith.constant 0 : i32
    %c0_i32_1 = arith.constant 0 : i32
    return %c0_i32, %c0_i32_0 : i32, i32
  }
  func.func @transform_4(%arg0: i32) -> (i32, i32) {
    %c0_i32 = arith.constant 0 : i32
    %c0_i32_0 = arith.constant 0 : i32
    %c0_i32_1 = arith.constant 0 : i32
    return %c0_i32, %c0_i32_0 : i32, i32
  }
  func.func @transform_5(%arg0: i32) -> (i32, i32, i32) {
    %c0_i32 = arith.constant 0 : i32
    %c0_i32_0 = arith.constant 0 : i32
    %c0_i32_1 = arith.constant 0 : i32
    return %arg0, %c0_i32, %c0_i32_0 : i32, i32, i32
  }
}

module attributes {stable_mosaic.version = 11 : i64} {
  func.func @_ffn_kernel(%arg0: i32, %arg1: memref<30x32xf32, #tpu.memory_space<vmem>>, %arg2: memref<32x64xbf16, #tpu.memory_space<vmem>>, %arg3: memref<1x64xf32, #tpu.memory_space<vmem>>, %arg4: memref<64x32xbf16, #tpu.memory_space<vmem>>, %arg5: memref<1x32xf32, #tpu.memory_space<vmem>>, %arg6: memref<1x32xf32, #tpu.memory_space<vmem>>, %arg7: memref<1x32xf32, #tpu.memory_space<vmem>>, %arg8: memref<30x32xf32, #tpu.memory_space<vmem>>) attributes {dimension_semantics = [#tpu.dimension_semantics<parallel>], iteration_bounds = array<i64: 1>, scalar_prefetch = 0 : i64, scratch_operands = 0 : i64, tpu.core_type = #tpu.core_type<tc>, window_params = [{transform_indices = @transform_0, window_bounds = array<i64: 30, 32>}, {pipeline_mode = #tpu.pipeline_mode<synchronous>, transform_indices = @transform_1, window_bounds = array<i64: 32, 64>}, {pipeline_mode = #tpu.pipeline_mode<synchronous>, transform_indices = @transform_2, window_bounds = array<i64: 1, 64>}, {pipeline_mode = #tpu.pipeline_mode<synchronous>, transform_indices = @transform_3, window_bounds = array<i64: 64, 32>}, {pipeline_mode = #tpu.pipeline_mode<synchronous>, transform_indices = @transform_4, window_bounds = array<i64: 1, 32>}, {pipeline_mode = #tpu.pipeline_mode<synchronous>, transform_indices = @transform_5, window_bounds = array<i64: 1, 32>}, {pipeline_mode = #tpu.pipeline_mode<synchronous>, transform_indices = @transform_6, window_bounds = array<i64: 1, 32>}, {transform_indices = @transform_7, window_bounds = array<i64: 30, 32>}]} {
    %c0 = arith.constant 0 : index
    %c0_0 = arith.constant 0 : index
    %0 = vector.load %arg1[%c0, %c0_0] : memref<30x32xf32, #tpu.memory_space<vmem>>, vector<30x32xf32>
    %1 = arith.truncf %0 : vector<30x32xf32> to vector<30x32xbf16>
    %c0_1 = arith.constant 0 : index
    %c0_2 = arith.constant 0 : index
    %2 = vector.load %arg2[%c0_1, %c0_2] : memref<32x64xbf16, #tpu.memory_space<vmem>>, vector<32x64xbf16>
    %cst = arith.constant dense<0.000000e+00> : vector<30x64xf32>
    %3 = tpu.matmul %1, %2, %cst {dimension_numbers = #tpu.dot_dimension_numbers<[1], [0], [0], [1], [0, 0, 1, 1], [], []>} : vector<30x32xbf16>, vector<32x64xbf16>, vector<30x64xf32> -> vector<30x64xf32>
    %c0_3 = arith.constant 0 : index
    %c0_4 = arith.constant 0 : index
    %4 = vector.load %arg3[%c0_3, %c0_4] : memref<1x64xf32, #tpu.memory_space<vmem>>, vector<1x64xf32>
    %5 = vector.broadcast %4 : vector<1x64xf32> to vector<30x64xf32>
    %6 = arith.addf %3, %5 : vector<30x64xf32>
    %cst_5 = arith.constant 0.707106769 : f32
    %7 = vector.broadcast %cst_5 : f32 to vector<30x64xf32>
    %8 = arith.mulf %6, %7 : vector<30x64xf32>
    %9 = math.absf %8 : vector<30x64xf32>
    %cst_6 = arith.constant 0.327591091 : f32
    %10 = vector.broadcast %cst_6 : f32 to vector<30x64xf32>
    %11 = arith.mulf %10, %9 : vector<30x64xf32>
    %cst_7 = arith.constant 1.000000e+00 : f32
    %12 = vector.broadcast %cst_7 : f32 to vector<30x64xf32>
    %13 = arith.addf %12, %11 : vector<30x64xf32>
    %cst_8 = arith.constant 1.000000e+00 : f32
    %14 = vector.broadcast %cst_8 : f32 to vector<30x64xf32>
    %15 = arith.divf %14, %13 : vector<30x64xf32>
    %cst_9 = arith.constant 1.06140542 : f32
    %16 = vector.broadcast %cst_9 : f32 to vector<30x64xf32>
    %17 = arith.mulf %15, %16 : vector<30x64xf32>
    %cst_10 = arith.constant -1.45315206 : f32
    %18 = vector.broadcast %cst_10 : f32 to vector<30x64xf32>
    %19 = arith.addf %18, %17 : vector<30x64xf32>
    %20 = arith.mulf %15, %19 : vector<30x64xf32>
    %cst_11 = arith.constant 1.42141378 : f32
    %21 = vector.broadcast %cst_11 : f32 to vector<30x64xf32>
    %22 = arith.addf %21, %20 : vector<30x64xf32>
    %23 = arith.mulf %15, %22 : vector<30x64xf32>
    %cst_12 = arith.constant -0.284496725 : f32
    %24 = vector.broadcast %cst_12 : f32 to vector<30x64xf32>
    %25 = arith.addf %24, %23 : vector<30x64xf32>
    %26 = arith.mulf %15, %25 : vector<30x64xf32>
    %cst_13 = arith.constant 0.254829586 : f32
    %27 = vector.broadcast %cst_13 : f32 to vector<30x64xf32>
    %28 = arith.addf %27, %26 : vector<30x64xf32>
    %29 = arith.mulf %15, %28 : vector<30x64xf32>
    %cst_14 = arith.constant 0.000000e+00 : f32
    %30 = vector.broadcast %cst_14 : f32 to vector<30x64xf32>
    %31 = arith.subf %30, %9 : vector<30x64xf32>
    %32 = arith.mulf %31, %9 : vector<30x64xf32>
    %33 = math.exp %32 : vector<30x64xf32>
    %34 = arith.mulf %29, %33 : vector<30x64xf32>
    %cst_15 = arith.constant 1.000000e+00 : f32
    %35 = vector.broadcast %cst_15 : f32 to vector<30x64xf32>
    %36 = arith.subf %35, %34 : vector<30x64xf32>
    %cst_16 = arith.constant 0.000000e+00 : f32
    %37 = vector.broadcast %cst_16 : f32 to vector<30x64xf32>
    %38 = arith.cmpf oge, %8, %37 : vector<30x64xf32>
    %cst_17 = arith.constant 0.000000e+00 : f32
    %39 = vector.broadcast %cst_17 : f32 to vector<30x64xf32>
    %40 = arith.subf %39, %36 : vector<30x64xf32>
    %41 = arith.select %38, %36, %40 : vector<30x64xi1>, vector<30x64xf32>
    %cst_18 = arith.constant 5.000000e-01 : f32
    %42 = vector.broadcast %cst_18 : f32 to vector<30x64xf32>
    %43 = arith.mulf %42, %6 : vector<30x64xf32>
    %cst_19 = arith.constant 1.000000e+00 : f32
    %44 = vector.broadcast %cst_19 : f32 to vector<30x64xf32>
    %45 = arith.addf %44, %41 : vector<30x64xf32>
    %46 = arith.mulf %43, %45 : vector<30x64xf32>
    %47 = arith.truncf %46 : vector<30x64xf32> to vector<30x64xbf16>
    %c0_20 = arith.constant 0 : index
    %c0_21 = arith.constant 0 : index
    %48 = vector.load %arg4[%c0_20, %c0_21] : memref<64x32xbf16, #tpu.memory_space<vmem>>, vector<64x32xbf16>
    %cst_22 = arith.constant dense<0.000000e+00> : vector<30x32xf32>
    %49 = tpu.matmul %47, %48, %cst_22 {dimension_numbers = #tpu.dot_dimension_numbers<[1], [0], [0], [1], [0, 0, 1, 1], [], []>} : vector<30x64xbf16>, vector<64x32xbf16>, vector<30x32xf32> -> vector<30x32xf32>
    %c0_23 = arith.constant 0 : index
    %c0_24 = arith.constant 0 : index
    %50 = vector.load %arg5[%c0_23, %c0_24] : memref<1x32xf32, #tpu.memory_space<vmem>>, vector<1x32xf32>
    %51 = vector.broadcast %50 : vector<1x32xf32> to vector<30x32xf32>
    %52 = arith.addf %49, %51 : vector<30x32xf32>
    %53 = arith.addf %0, %52 : vector<30x32xf32>
    %c0_25 = arith.constant 0 : index
    %c0_26 = arith.constant 0 : index
    %54 = vector.load %arg6[%c0_25, %c0_26] : memref<1x32xf32, #tpu.memory_space<vmem>>, vector<1x32xf32>
    %c0_27 = arith.constant 0 : index
    %c0_28 = arith.constant 0 : index
    %55 = vector.load %arg7[%c0_27, %c0_28] : memref<1x32xf32, #tpu.memory_space<vmem>>, vector<1x32xf32>
    %cst_29 = arith.constant dense<0.000000e+00> : vector<30xf32>
    %56 = vector.multi_reduction <add>, %53, %cst_29 [1] : vector<30x32xf32> to vector<30xf32>
    %57 = vector.shape_cast %56 : vector<30xf32> to vector<30x1xf32>
    %cst_30 = arith.constant 3.200000e+01 : f32
    %58 = vector.broadcast %cst_30 : f32 to vector<30x1xf32>
    %59 = arith.divf %57, %58 : vector<30x1xf32>
    %60 = vector.broadcast %59 : vector<30x1xf32> to vector<30x32xf32>
    %61 = arith.subf %53, %60 : vector<30x32xf32>
    %62 = arith.mulf %61, %61 : vector<30x32xf32>
    %cst_31 = arith.constant dense<0.000000e+00> : vector<30xf32>
    %63 = vector.multi_reduction <add>, %62, %cst_31 [1] : vector<30x32xf32> to vector<30xf32>
    %64 = vector.shape_cast %63 : vector<30xf32> to vector<30x1xf32>
    %cst_32 = arith.constant 3.200000e+01 : f32
    %65 = vector.broadcast %cst_32 : f32 to vector<30x1xf32>
    %66 = arith.divf %64, %65 : vector<30x1xf32>
    %cst_33 = arith.constant 9.99999974E-6 : f32
    %67 = vector.broadcast %cst_33 : f32 to vector<30x1xf32>
    %68 = arith.addf %66, %67 : vector<30x1xf32>
    %69 = math.rsqrt %68 : vector<30x1xf32>
    %70 = vector.broadcast %69 : vector<30x1xf32> to vector<30x32xf32>
    %71 = arith.mulf %61, %70 : vector<30x32xf32>
    %72 = vector.broadcast %54 : vector<1x32xf32> to vector<30x32xf32>
    %73 = arith.mulf %71, %72 : vector<30x32xf32>
    %74 = vector.broadcast %55 : vector<1x32xf32> to vector<30x32xf32>
    %75 = arith.addf %73, %74 : vector<30x32xf32>
    %c0_34 = arith.constant 0 : index
    %c0_35 = arith.constant 0 : index
    %76 = vector.load %arg8[%c0_34, %c0_35] : memref<30x32xf32, #tpu.memory_space<vmem>>, vector<30x32xf32>
    tpu.vector_store %arg8[%c0_34, %c0_35], %75 {strides = array<i32>} : memref<30x32xf32, #tpu.memory_space<vmem>>, vector<30x32xf32>,
    return
  }
  func.func @transform_0(%arg0: i32) -> (i32, i32) {
    %c0_i32 = arith.constant 0 : i32
    %c0_i32_0 = arith.constant 0 : i32
    return %arg0, %c0_i32 : i32, i32
  }
  func.func @transform_1(%arg0: i32) -> (i32, i32) {
    %c0_i32 = arith.constant 0 : i32
    %c0_i32_0 = arith.constant 0 : i32
    %c0_i32_1 = arith.constant 0 : i32
    return %c0_i32, %c0_i32_0 : i32, i32
  }
  func.func @transform_2(%arg0: i32) -> (i32, i32) {
    %c0_i32 = arith.constant 0 : i32
    %c0_i32_0 = arith.constant 0 : i32
    %c0_i32_1 = arith.constant 0 : i32
    return %c0_i32, %c0_i32_0 : i32, i32
  }
  func.func @transform_3(%arg0: i32) -> (i32, i32) {
    %c0_i32 = arith.constant 0 : i32
    %c0_i32_0 = arith.constant 0 : i32
    %c0_i32_1 = arith.constant 0 : i32
    return %c0_i32, %c0_i32_0 : i32, i32
  }
  func.func @transform_4(%arg0: i32) -> (i32, i32) {
    %c0_i32 = arith.constant 0 : i32
    %c0_i32_0 = arith.constant 0 : i32
    %c0_i32_1 = arith.constant 0 : i32
    return %c0_i32, %c0_i32_0 : i32, i32
  }
  func.func @transform_5(%arg0: i32) -> (i32, i32) {
    %c0_i32 = arith.constant 0 : i32
    %c0_i32_0 = arith.constant 0 : i32
    %c0_i32_1 = arith.constant 0 : i32
    return %c0_i32, %c0_i32_0 : i32, i32
  }
  func.func @transform_6(%arg0: i32) -> (i32, i32) {
    %c0_i32 = arith.constant 0 : i32
    %c0_i32_0 = arith.constant 0 : i32
    %c0_i32_1 = arith.constant 0 : i32
    return %c0_i32, %c0_i32_0 : i32, i32
  }
  func.func @transform_7(%arg0: i32) -> (i32, i32) {
    %c0_i32 = arith.constant 0 : i32
    %c0_i32_0 = arith.constant 0 : i32
    return %arg0, %c0_i32 : i32, i32
  }
}

</mosaic_0001>

<bundles_post_ra>
// kernel: squeeze.1
= control target key start
LH: loop header
LB: loop body
LE: loop exit
PB: predicated region body
PF: predicated region fallthrough
CT: control target
= control target key end

     0   :  { %s779_s12 = smov 123   ;;  %s780_s13 = smov 124   ;;  %vm549_vm0 = vcmask 1022976   ;;  %vm567_vm1 = vcmask 1039360   ;;  %vm17_vm2 = vcmask 39936   ;;  %vm553_vm3 = vcmask 23552   ;;  %s1380_s0 = inlined_call_operand.vmem [shape: f32[2,320], index: 0, kind: input, shape index: {}]   ;;  %s1381_s1 = inlined_call_operand.vmem [shape: f32[2,64,5], index: 1, kind: output, shape index: {}]  }
   0x1   :  { %v583_v0 = vld [vmem:[%s1380_s0 + $0x2] sm:$0x3]  ;;  %v14_v1 = vld [vmem:[%s1380_s0] sm:$0x3]  ;;  %v582_v2 = vld [vmem:[%s1380_s0 + $0x4] sm:$0x3] }
   0x2   :  { %13 = vst [vmem:[#allocation0 + $0x10] sm:$0x3] %v583_v0  ;;  %15 = vst [vmem:[#allocation0 + $0x8] sm:$0x3] %v14_v1  ;;  %s778_s0 = smov 126   ;;  %s781_s14 = smov 121  }
   0x3   :  { %9 = vst [vmem:[#allocation0] sm:$0x3] %v582_v2  ;;  %s782_s15 = smov 119   ;;  %s783_s16 = smov 118   ;;  %vm571_vm4 = vcmask 7168   ;;  %vm558_vm5 = vcmask 39960  }
   0x4   :  { %s784_s17 = smov 116   ;;  %s785_s18 = smov 114   ;;  %vm576_vm6 = vcmask 39944  }
   0x5   :  { %s786_s19 = smov 113   ;;  %s787_s20 = smov 111  }
   0x6   :  { %s788_s21 = smov 109   ;;  %s789_s22 = smov 108  }
   0x7   :  { %s790_s23 = smov 106   ;;  %s791_s24 = smov 104  }
   0x8   :  { %s792_s25 = smov 103   ;;  %s793_s26 = smov 101  }
   0x9   :  { %v22_v3 = vld [vmem:[#allocation0 + $0x10] sm:$0x3]   ;;  %v39_v4 = vld [vmem:[#allocation0 + $0x8] sm:$0x3]   ;;  %s794_s27 = smov 99   ;;  %s795_s28 = smov 98  }
   0xa   :  { %23 = vrot.lane.b32.xlu0 %v22_v3, %s778_s0  ;;  %40 = vrot.lane.b32.xlu1 %v39_v4, %s779_s12  ;;  %v31_v5 = vld [vmem:[#allocation0] sm:$0x3]   ;;  %v48_v6 = vld [vmem:[#allocation0 + $0x10] sm:$0x3]   ;;  %v65_v8 = vld [vmem:[#allocation0 + $0x8] sm:$0x3]  }
   0xb   :  { %v57_v7 = vld [vmem:[#allocation0] sm:$0x3]   ;;  %v74_v9 = vld [vmem:[#allocation0 + $0x10] sm:$0x3]   ;;  %v91_v11 = vld [vmem:[#allocation0 + $0x8] sm:$0x3]  }
   0xc   :  { %v83_v10 = vld [vmem:[#allocation0] sm:$0x3]   ;;  %v100_v12 = vld [vmem:[#allocation0 + $0x10] sm:$0x3]   ;;  %v117_v14 = vld [vmem:[#allocation0 + $0x8] sm:$0x3]  }
   0xd   :  { %v109_v13 = vld [vmem:[#allocation0] sm:$0x3]   ;;  %v126_v15 = vld [vmem:[#allocation0 + $0x10] sm:$0x3]   ;;  %v143_v17 = vld [vmem:[#allocation0 + $0x8] sm:$0x3]  }
   0xe   :  { %32 = vrot.lane.b32.xlu0 %v31_v5, %s780_s13  ;;  %49 = vrot.lane.b32.xlu1 %v48_v6, %s781_s14  ;;  %v135_v16 = vld [vmem:[#allocation0] sm:$0x3]   ;;  %v152_v18 = vld [vmem:[#allocation0 + $0x10] sm:$0x3]   ;;  %v169_v20 = vld [vmem:[#allocation0 + $0x8] sm:$0x3]  }
   0xf   :  { %v161_v19 = vld [vmem:[#allocation0] sm:$0x3]   ;;  %v178_v21 = vld [vmem:[#allocation0 + $0x10] sm:$0x3]   ;;  %s796_s29 = smov 96   ;;  %s797_s30 = smov 94  }
  0x10   :  { %v187_v22 = vld [vmem:[#allocation0] sm:$0x3]   ;;  %v195_v23 = vld [vmem:[#allocation0 + $0x8] sm:$0x3]   ;;  %v204_v24 = vld [vmem:[#allocation0 + $0x10] sm:$0x3]  }
  0x11   :  { %s798_s2 = smov 93   ;;  %s799_s3 = smov 91   ;;  %v213_v25 = vld [vmem:[#allocation0] sm:$0x3]   ;;  %v221_v26 = vld [vmem:[#allocation0 + $0x8] sm:$0x3]  }
  0x12   :  { %58 = vrot.lane.b32.xlu0 %v57_v7, %s782_s15  ;;  %66 = vrot.lane.b32.xlu1 %v65_v8, %s783_s16  ;;  %s800_s4 = smov 89   ;;  %s801_s5 = smov 88   ;;  %v230_v27 = vld [vmem:[#allocation0 + $0x10] sm:$0x3]   ;;  %v239_v28 = vld [vmem:[#allocation0] sm:$0x3]  }
  0x13   :  { %s802_s6 = smov 86   ;;  %s803_s7 = smov 84   ;;  %v247_v29 = vld [vmem:[#allocation0 + $0x8] sm:$0x3]   ;;  %v256_v30 = vld [vmem:[#allocation0 + $0x10] sm:$0x3]  }
  0x14   :  { %s804_s8 = smov 83   ;;  %s805_s9 = smov 81   ;;  %v265_v31 = vld [vmem:[#allocation0] sm:$0x3]   ;;  %v273_v32 = vld [vmem:[#allocation0 + $0x8] sm:$0x3]  }
  0x15   :  { %s806_s10 = smov 79   ;;  %s807_s11 = smov 78   ;;  %v282_v33 = vld [vmem:[#allocation0 + $0x10] sm:$0x3]   ;;  %v291_v34 = vld [vmem:[#allocation0] sm:$0x3]  }
  0x16   :  { %75 = vrot.lane.b32.xlu0 %v74_v9, %s784_s17  ;;  %84 = vrot.lane.b32.xlu1 %v83_v10, %s785_s18  ;;  %s808_s0 = smov 76   ;;  %s809_s12 = smov 74   ;;  %v299_v35 = vld [vmem:[#allocation0 + $0x8] sm:$0x3]   ;;  %v308_v36 = vld [vmem:[#allocation0 + $0x10] sm:$0x3]  }
  0x17   :  { %v546_v37 = vld [vmem:[#allocation0 + $0x8] sm:$0x3]   ;;  %v548_v38 = vld [vmem:[#allocation0 + $0x10] sm:$0x3]   ;;  %v566_v40 = vld [vmem:[#allocation0] sm:$0x3]  }
  0x18   :  { %v564_v39 = vld [vmem:[#allocation0 + $0x10] sm:$0x3]   ;;  %s810_s13 = smov 73   ;;  %s811_s14 = smov 71   ;;  %v550_v41 = vsel %vm549_vm0, %v548_v38, %v546_v37  ;;  %v317_v43 = vld [vmem:[#allocation0] sm:$0x3]  }
  0x19   :  { %v568_v42 = vsel %vm567_vm1, %v566_v40, %v564_v39  ;;  %s812_s15 = smov 3   ;;  %s813_s16 = smov 1   ;;  %v325_v44 = vld [vmem:[#allocation0 + $0x8] sm:$0x3]   ;;  %v334_v45 = vld [vmem:[#allocation0 + $0x10] sm:$0x3]  }
  0x1a   :  { %92 = vrot.lane.b32.xlu0 %v91_v11, %s786_s19  ;;  %101 = vrot.lane.b32.xlu1 %v100_v12, %s787_s20  ;;  %s814_s17 = smov 69   ;;  %s815_s18 = smov 68   ;;  %v342_v46 = vld [vmem:[#allocation0 + $0x8] sm:$0x3]   ;;  %v351_v47 = vld [vmem:[#allocation0 + $0x10] sm:$0x3]  }
  0x1b   :  { %s816_s19 = smov 66   ;;  %s817_s20 = smov 63   ;;  %v359_v48 = vld [vmem:[#allocation0 + $0x8] sm:$0x3]   ;;  %v368_v49 = vld [vmem:[#allocation0 + $0x10] sm:$0x3]  }
  0x1c   :  { %v376_v50 = vld [vmem:[#allocation0 + $0x8] sm:$0x3]   ;;  %v385_v51 = vld [vmem:[#allocation0 + $0x10] sm:$0x3]  }
  0x1d   :  { %v393_v52 = vld [vmem:[#allocation0 + $0x8] sm:$0x3]   ;;  %v402_v53 = vld [vmem:[#allocation0 + $0x10] sm:$0x3]  }
  0x1e   :  { %110 = vrot.lane.b32.xlu0 %v109_v13, %s788_s21  ;;  %118 = vrot.lane.b32.xlu1 %v117_v14, %s789_s22  ;;  %s818_s21 = smov 61   ;;  %s819_s22 = smov 58   ;;  %v410_v54 = vld [vmem:[#allocation0 + $0x8] sm:$0x3]   ;;  %v419_v55 = vld [vmem:[#allocation0 + $0x10] sm:$0x3]  }
  0x1f   :  { %v427_v56 = vld [vmem:[#allocation0 + $0x8] sm:$0x3]   ;;  %v436_v57 = vld [vmem:[#allocation0 + $0x10] sm:$0x3]  }
  0x20   :  { %v444_v58 = vld [vmem:[#allocation0 + $0x8] sm:$0x3]   ;;  %v453_v59 = vld [vmem:[#allocation0 + $0x10] sm:$0x3]  }
  0x21   :  { %v461_v60 = vld [vmem:[#allocation0 + $0x8] sm:$0x3]   ;;  %v470_v61 = vld [vmem:[#allocation0 + $0x10] sm:$0x3]  }
  0x22   :  { %127 = vrot.lane.b32.xlu0 %v126_v15, %s790_s23  ;;  %136 = vrot.lane.b32.xlu1 %v135_v16, %s791_s24  ;;  %s820_s23 = smov 56   ;;  %s821_s24 = smov 53   ;;  %v478_v62 = vld [vmem:[#allocation0 + $0x8] sm:$0x3]   ;;  %v487_v63 = vld [vmem:[#allocation0 + $0x10] sm:$0x3]  }
  0x23   :  { %v495_v0 = vld [vmem:[#allocation0 + $0x8] sm:$0x3]   ;;  %v504_v2 = vld [vmem:[#allocation0 + $0x10] sm:$0x3]  }
  0x24   :  { %v16_v1 = vld [vmem:[#allocation0 + $0x8] sm:$0x3]   ;;  %v521_v6 = vld [vmem:[#allocation0 + $0x10] sm:$0x3]  }
  0x25   :  { %18 = vst.msk [vmem:[%s1381_s1] sm:$0x1] %vm17_vm2, %v16_v1   ;;  %584 = vst.msk [vmem:[%s1381_s1 + $0x3f] sm:$0x2] %vm17_vm2, %v16_v1   ;;  %v512_v3 = vld [vmem:[#allocation0 + $0x8] sm:$0x3]  }
  0x26   :  { %144 = vrot.lane.b32.xlu0 %v143_v17, %s792_s25  ;;  %153 = vrot.lane.b32.xlu1 %v152_v18, %s793_s26  ;;  %s822_s25 = smov 51   ;;  %s823_s26 = smov 48   ;;  %v529_v7 = vld [vmem:[#allocation0 + $0x8] sm:$0x3]   ;;  %v538_v10 = vld [vmem:[#allocation0 + $0x10] sm:$0x3]  }
  0x2a   :  { %162 = vrot.lane.b32.xlu0 %v161_v19, %s794_s27  ;;  %170 = vrot.lane.b32.xlu1 %v169_v20, %s795_s28  ;;  %s824_s27 = smov 46   ;;  %s825_s28 = smov 43  }
  0x2e   :  { %179 = vrot.lane.b32.xlu0 %v178_v21, %s796_s29  ;;  %188 = vrot.lane.b32.xlu1 %v187_v22, %s797_s30  ;;  %s826_s29 = smov 41   ;;  %s827_s30 = smov 38  }
  0x32   :  { %196 = vrot.lane.b32.xlu0 %v195_v23, %s798_s2  ;;  %205 = vrot.lane.b32.xlu1 %v204_v24, %s799_s3  ;;  %s828_s2 = smov 36   ;;  %s829_s3 = smov 33  }
  0x36   :  { %214 = vrot.lane.b32.xlu0 %v213_v25, %s800_s4  ;;  %222 = vrot.lane.b32.xlu1 %v221_v26, %s801_s5  ;;  %s830_s4 = smov 31   ;;  %s831_s5 = smov 28  }
  0x3a   :  { %231 = vrot.lane.b32.xlu0 %v230_v27, %s802_s6  ;;  %240 = vrot.lane.b32.xlu1 %v239_v28, %s803_s7  ;;  %s832_s6 = smov 26   ;;  %s833_s7 = smov 23  }
  0x3e   :  { %248 = vrot.lane.b32.xlu0 %v247_v29, %s804_s8  ;;  %257 = vrot.lane.b32.xlu1 %v256_v30, %s805_s9 }
  0x42   :  { %266 = vrot.lane.b32.xlu0 %v265_v31, %s806_s10  ;;  %274 = vrot.lane.b32.xlu1 %v273_v32, %s807_s11 }
  0x46   :  { %283 = vrot.lane.b32.xlu0 %v282_v33, %s808_s0  ;;  %292 = vrot.lane.b32.xlu1 %v291_v34, %s809_s12  ;;  %s834_s0 = smov 21   ;;  %s835_s12 = smov 18  }
  0x4a   :  { %300 = vrot.lane.b32.xlu0 %v299_v35, %s810_s13  ;;  %309 = vrot.lane.b32.xlu1 %v308_v36, %s811_s14 }
  0x4e   :  { %551 = vrot.lane.b32.xlu0 %v550_v41, %s812_s15  ;;  %569 = vrot.lane.b32.xlu1 %v568_v42, %s813_s16 }
  0x52   :  { %318 = vrot.lane.b32.xlu0 %v317_v43, %s814_s17  ;;  %326 = vrot.lane.b32.xlu1 %v325_v44, %s815_s18 }
  0x56   :  { %335 = vrot.lane.b32.xlu0 %v334_v45, %s816_s19  ;;  %343 = vrot.lane.b32.xlu1 %v342_v46, %s817_s20 }
  0x5a   :  { %352 = vrot.lane.b32.xlu0 %v351_v47, %s818_s21  ;;  %360 = vrot.lane.b32.xlu1 %v359_v48, %s819_s22  ;;  %s836_s21 = smov 16   ;;  %s837_s22 = smov 13  }
  0x5e   :  { %369 = vrot.lane.b32.xlu0 %v368_v49, %s820_s23  ;;  %377 = vrot.lane.b32.xlu1 %v376_v50, %s821_s24 }
  0x62   :  { %386 = vrot.lane.b32.xlu0 %v385_v51, %s822_s25  ;;  %394 = vrot.lane.b32.xlu1 %v393_v52, %s823_s26 }
  0x66   :  { %403 = vrot.lane.b32.xlu0 %v402_v53, %s824_s27  ;;  %411 = vrot.lane.b32.xlu1 %v410_v54, %s825_s28 }
  0x6a   :  { %420 = vrot.lane.b32.xlu0 %v419_v55, %s826_s29  ;;  %428 = vrot.lane.b32.xlu1 %v427_v56, %s827_s30 }
  0x6e   :  { %437 = vrot.lane.b32.xlu0 %v436_v57, %s828_s2  ;;  %445 = vrot.lane.b32.xlu1 %v444_v58, %s829_s3  ;;  %s838_s2 = smov 11   ;;  %s839_s3 = smov 8  }
  0x72   :  { %454 = vrot.lane.b32.xlu0 %v453_v59, %s830_s4  ;;  %462 = vrot.lane.b32.xlu1 %v461_v60, %s831_s5 }
  0x76   :  { %471 = vrot.lane.b32.xlu0 %v470_v61, %s832_s6  ;;  %479 = vrot.lane.b32.xlu1 %v478_v62, %s833_s7 }
  0x7a   :  { %488 = vrot.lane.b32.xlu0 %v487_v63, %s834_s0  ;;  %496 = vrot.lane.b32.xlu1 %v495_v0, %s835_s12  ;;  %s840_s0 = smov 6  }
  0x7c   :  { %v24_v4 = vpop.permute.xlu0 %23   ;;  %v41_v5 = vpop.permute.xlu1 %40  }
  0x7d   :  { %585 = vst.msk [vmem:[%s1381_s1 + $0x1a] sm:$0x1] %vm17_vm2, %v24_v4   ;;  %586 = vst.msk [vmem:[%s1381_s1 + $0x59] sm:$0x2] %vm17_vm2, %v24_v4  }
  0x7e   :  { %589 = vst.msk [vmem:[%s1381_s1 + $0x1] sm:$0x1] %vm17_vm2, %v41_v5   ;;  %590 = vst.msk [vmem:[%s1381_s1 + $0x40] sm:$0x2] %vm17_vm2, %v41_v5   ;;  %505 = vrot.lane.b32.xlu0 %v504_v2, %s836_s21  ;;  %513 = vrot.lane.b32.xlu1 %v512_v3, %s837_s22 }
  0x80   :  { %v33_v8 = vpop.permute.xlu0 %32   ;;  %v50_v9 = vpop.permute.xlu1 %49  }
  0x81   :  { %587 = vst.msk [vmem:[%s1381_s1 + $0x34] sm:$0x1] %vm17_vm2, %v33_v8   ;;  %588 = vst.msk [vmem:[%s1381_s1 + $0x73] sm:$0x2] %vm17_vm2, %v33_v8  }
  0x82   :  { %591 = vst.msk [vmem:[%s1381_s1 + $0x1b] sm:$0x1] %vm17_vm2, %v50_v9   ;;  %592 = vst.msk [vmem:[%s1381_s1 + $0x5a] sm:$0x2] %vm17_vm2, %v50_v9   ;;  %522 = vrot.lane.b32.xlu0 %v521_v6, %s838_s2  ;;  %530 = vrot.lane.b32.xlu1 %v529_v7, %s839_s3 }
  0x84   :  { %v59_v11 = vpop.permute.xlu0 %58   ;;  %v67_v12 = vpop.permute.xlu1 %66  }
  0x85   :  { %593 = vst.msk [vmem:[%s1381_s1 + $0x35] sm:$0x1] %vm17_vm2, %v59_v11   ;;  %594 = vst.msk [vmem:[%s1381_s1 + $0x74] sm:$0x2] %vm17_vm2, %v59_v11  }
  0x86   :  { %595 = vst.msk [vmem:[%s1381_s1 + $0x2] sm:$0x1] %vm17_vm2, %v67_v12   ;;  %596 = vst.msk [vmem:[%s1381_s1 + $0x41] sm:$0x2] %vm17_vm2, %v67_v12   ;;  %539 = vrot.lane.b32.xlu0 %v538_v10, %s840_s0 }
  0x88   :  { %v76_v13 = vpop.permute.xlu0 %75   ;;  %v85_v14 = vpop.permute.xlu1 %84  }
  0x89   :  { %597 = vst.msk [vmem:[%s1381_s1 + $0x1c] sm:$0x1] %vm17_vm2, %v76_v13   ;;  %598 = vst.msk [vmem:[%s1381_s1 + $0x5b] sm:$0x2] %vm17_vm2, %v76_v13  }
  0x8a   :  { %599 = vst.msk [vmem:[%s1381_s1 + $0x36] sm:$0x1] %vm17_vm2, %v85_v14   ;;  %600 = vst.msk [vmem:[%s1381_s1 + $0x75] sm:$0x2] %vm17_vm2, %v85_v14  }
  0x8c   :  { %v93_v15 = vpop.permute.xlu0 %92   ;;  %v102_v16 = vpop.permute.xlu1 %101  }
  0x8d   :  { %601 = vst.msk [vmem:[%s1381_s1 + $0x3] sm:$0x1] %vm17_vm2, %v93_v15   ;;  %602 = vst.msk [vmem:[%s1381_s1 + $0x42] sm:$0x2] %vm17_vm2, %v93_v15  }
  0x8e   :  { %603 = vst.msk [vmem:[%s1381_s1 + $0x1d] sm:$0x1] %vm17_vm2, %v102_v16   ;;  %604 = vst.msk [vmem:[%s1381_s1 + $0x5c] sm:$0x2] %vm17_vm2, %v102_v16  }
  0x90   :  { %v111_v17 = vpop.permute.xlu0 %110   ;;  %v119_v18 = vpop.permute.xlu1 %118  }
  0x91   :  { %605 = vst.msk [vmem:[%s1381_s1 + $0x37] sm:$0x1] %vm17_vm2, %v111_v17   ;;  %606 = vst.msk [vmem:[%s1381_s1 + $0x76] sm:$0x2] %vm17_vm2, %v111_v17  }
  0x92   :  { %607 = vst.msk [vmem:[%s1381_s1 + $0x4] sm:$0x1] %vm17_vm2, %v119_v18   ;;  %608 = vst.msk [vmem:[%s1381_s1 + $0x43] sm:$0x2] %vm17_vm2, %v119_v18  }
  0x94   :  { %v128_v19 = vpop.permute.xlu0 %127   ;;  %v137_v20 = vpop.permute.xlu1 %136  }
  0x95   :  { %609 = vst.msk [vmem:[%s1381_s1 + $0x1e] sm:$0x1] %vm17_vm2, %v128_v19   ;;  %610 = vst.msk [vmem:[%s1381_s1 + $0x5d] sm:$0x2] %vm17_vm2, %v128_v19  }
  0x96   :  { %611 = vst.msk [vmem:[%s1381_s1 + $0x38] sm:$0x1] %vm17_vm2, %v137_v20   ;;  %612 = vst.msk [vmem:[%s1381_s1 + $0x77] sm:$0x2] %vm17_vm2, %v137_v20  }
  0x98   :  { %v145_v21 = vpop.permute.xlu0 %144   ;;  %v154_v22 = vpop.permute.xlu1 %153  }
  0x99   :  { %613 = vst.msk [vmem:[%s1381_s1 + $0x5] sm:$0x1] %vm17_vm2, %v145_v21   ;;  %614 = vst.msk [vmem:[%s1381_s1 + $0x44] sm:$0x2] %vm17_vm2, %v145_v21  }
  0x9a   :  { %615 = vst.msk [vmem:[%s1381_s1 + $0x1f] sm:$0x1] %vm17_vm2, %v154_v22   ;;  %616 = vst.msk [vmem:[%s1381_s1 + $0x5e] sm:$0x2] %vm17_vm2, %v154_v22  }
  0x9c   :  { %v163_v23 = vpop.permute.xlu0 %162   ;;  %v171_v24 = vpop.permute.xlu1 %170  }
  0x9d   :  { %617 = vst.msk [vmem:[%s1381_s1 + $0x39] sm:$0x1] %vm17_vm2, %v163_v23   ;;  %618 = vst.msk [vmem:[%s1381_s1 + $0x78] sm:$0x2] %vm17_vm2, %v163_v23  }
  0x9e   :  { %619 = vst.msk [vmem:[%s1381_s1 + $0x6] sm:$0x1] %vm17_vm2, %v171_v24   ;;  %620 = vst.msk [vmem:[%s1381_s1 + $0x45] sm:$0x2] %vm17_vm2, %v171_v24  }
  0xa0   :  { %v180_v25 = vpop.permute.xlu0 %179   ;;  %v189_v26 = vpop.permute.xlu1 %188  }
  0xa1   :  { %621 = vst.msk [vmem:[%s1381_s1 + $0x20] sm:$0x1] %vm17_vm2, %v180_v25   ;;  %622 = vst.msk [vmem:[%s1381_s1 + $0x5f] sm:$0x2] %vm17_vm2, %v180_v25  }
  0xa2   :  { %623 = vst.msk [vmem:[%s1381_s1 + $0x3a] sm:$0x1] %vm17_vm2, %v189_v26   ;;  %624 = vst.msk [vmem:[%s1381_s1 + $0x79] sm:$0x2] %vm17_vm2, %v189_v26  }
  0xa4   :  { %v197_v27 = vpop.permute.xlu0 %196   ;;  %v206_v28 = vpop.permute.xlu1 %205  }
  0xa5   :  { %625 = vst.msk [vmem:[%s1381_s1 + $0x7] sm:$0x1] %vm17_vm2, %v197_v27   ;;  %626 = vst.msk [vmem:[%s1381_s1 + $0x46] sm:$0x2] %vm17_vm2, %v197_v27  }
  0xa6   :  { %627 = vst.msk [vmem:[%s1381_s1 + $0x21] sm:$0x1] %vm17_vm2, %v206_v28   ;;  %628 = vst.msk [vmem:[%s1381_s1 + $0x60] sm:$0x2] %vm17_vm2, %v206_v28  }
  0xa8   :  { %v215_v29 = vpop.permute.xlu0 %214   ;;  %v223_v30 = vpop.permute.xlu1 %222  }
  0xa9   :  { %629 = vst.msk [vmem:[%s1381_s1 + $0x3b] sm:$0x1] %vm17_vm2, %v215_v29   ;;  %630 = vst.msk [vmem:[%s1381_s1 + $0x7a] sm:$0x2] %vm17_vm2, %v215_v29  }
  0xaa   :  { %631 = vst.msk [vmem:[%s1381_s1 + $0x8] sm:$0x1] %vm17_vm2, %v223_v30   ;;  %632 = vst.msk [vmem:[%s1381_s1 + $0x47] sm:$0x2] %vm17_vm2, %v223_v30  }
  0xac   :  { %v232_v31 = vpop.permute.xlu0 %231   ;;  %v241_v32 = vpop.permute.xlu1 %240  }
  0xad   :  { %633 = vst.msk [vmem:[%s1381_s1 + $0x22] sm:$0x1] %vm17_vm2, %v232_v31   ;;  %634 = vst.msk [vmem:[%s1381_s1 + $0x61] sm:$0x2] %vm17_vm2, %v232_v31  }
  0xae   :  { %635 = vst.msk [vmem:[%s1381_s1 + $0x3c] sm:$0x1] %vm17_vm2, %v241_v32   ;;  %636 = vst.msk [vmem:[%s1381_s1 + $0x7b] sm:$0x2] %vm17_vm2, %v241_v32  }
  0xb0   :  { %v249_v33 = vpop.permute.xlu0 %248   ;;  %v258_v34 = vpop.permute.xlu1 %257  }
  0xb1   :  { %637 = vst.msk [vmem:[%s1381_s1 + $0x9] sm:$0x1] %vm17_vm2, %v249_v33   ;;  %638 = vst.msk [vmem:[%s1381_s1 + $0x48] sm:$0x2] %vm17_vm2, %v249_v33  }
  0xb2   :  { %639 = vst.msk [vmem:[%s1381_s1 + $0x23] sm:$0x1] %vm17_vm2, %v258_v34   ;;  %640 = vst.msk [vmem:[%s1381_s1 + $0x62] sm:$0x2] %vm17_vm2, %v258_v34  }
  0xb4   :  { %v267_v35 = vpop.permute.xlu0 %266   ;;  %v275_v36 = vpop.permute.xlu1 %274  }
  0xb5   :  { %641 = vst.msk [vmem:[%s1381_s1 + $0x3d] sm:$0x1] %vm17_vm2, %v267_v35   ;;  %642 = vst.msk [vmem:[%s1381_s1 + $0x7c] sm:$0x2] %vm17_vm2, %v267_v35  }
  0xb6   :  { %643 = vst.msk [vmem:[%s1381_s1 + $0xa] sm:$0x1] %vm17_vm2, %v275_v36   ;;  %644 = vst.msk [vmem:[%s1381_s1 + $0x49] sm:$0x2] %vm17_vm2, %v275_v36  }
  0xb8   :  { %v284_v37 = vpop.permute.xlu0 %283   ;;  %v293_v38 = vpop.permute.xlu1 %292  }
  0xb9   :  { %645 = vst.msk [vmem:[%s1381_s1 + $0x24] sm:$0x1] %vm17_vm2, %v284_v37   ;;  %646 = vst.msk [vmem:[%s1381_s1 + $0x63] sm:$0x2] %vm17_vm2, %v284_v37  }
  0xba   :  { %647 = vst.msk [vmem:[%s1381_s1 + $0x3e] sm:$0x1] %vm17_vm2, %v293_v38   ;;  %648 = vst.msk [vmem:[%s1381_s1 + $0x7d] sm:$0x2] %vm17_vm2, %v293_v38  }
  0xbc   :  { %v301_v39 = vpop.permute.xlu0 %300   ;;  %v310_v40 = vpop.permute.xlu1 %309  }
  0xbd   :  { %649 = vst.msk [vmem:[%s1381_s1 + $0xb] sm:$0x1] %vm17_vm2, %v301_v39   ;;  %650 = vst.msk [vmem:[%s1381_s1 + $0x4a] sm:$0x2] %vm17_vm2, %v301_v39  }
  0xbe   :  { %651 = vst.msk [vmem:[%s1381_s1 + $0x25] sm:$0x1] %vm17_vm2, %v310_v40   ;;  %652 = vst.msk [vmem:[%s1381_s1 + $0x64] sm:$0x2] %vm17_vm2, %v310_v40  }
  0xc0   :  { %v552_v41 = vpop.permute.xlu0 %551   ;;  %v570_v42 = vpop.permute.xlu1 %569  }
  0xc1   :  { %707 = vst.msk [vmem:[%s1381_s1 + $0x19] sm:$0x1] %vm553_vm3, %v552_v41   ;;  %708 = vst.msk [vmem:[%s1381_s1 + $0x58] sm:$0x2] %vm553_vm3, %v552_v41  }
  0xc2   :  { %711 = vst.msk [vmem:[%s1381_s1 + $0x33] sm:$0x1] %vm571_vm4, %v570_v42   ;;  %712 = vst.msk [vmem:[%s1381_s1 + $0x72] sm:$0x2] %vm571_vm4, %v570_v42  }
  0xc3   :  { %709 = vst.msk [vmem:[%s1381_s1 + $0x19] sm:$0x1] %vm558_vm5, %v552_v41   ;;  %710 = vst.msk [vmem:[%s1381_s1 + $0x58] sm:$0x2] %vm558_vm5, %v552_v41  }
  0xc4   :  { %713 = vst.msk [vmem:[%s1381_s1 + $0x33] sm:$0x1] %vm576_vm6, %v570_v42   ;;  %714 = vst.msk [vmem:[%s1381_s1 + $0x72] sm:$0x2] %vm576_vm6, %v570_v42   ;;  %v319_v43 = vpop.permute.xlu0 %318   ;;  %v327_v44 = vpop.permute.xlu1 %326  }
  0xc5   :  { %653 = vst.msk [vmem:[%s1381_s1 + $0x3f] sm:$0x1] %vm17_vm2, %v319_v43   ;;  %654 = vst.msk [vmem:[%s1381_s1 + $0x7e] sm:$0x2] %vm17_vm2, %v319_v43  }
  0xc6   :  { %655 = vst.msk [vmem:[%s1381_s1 + $0xc] sm:$0x1] %vm17_vm2, %v327_v44   ;;  %656 = vst.msk [vmem:[%s1381_s1 + $0x4b] sm:$0x2] %vm17_vm2, %v327_v44  }
  0xc8   :  { %v336_v45 = vpop.permute.xlu0 %335   ;;  %v344_v46 = vpop.permute.xlu1 %343  }
  0xc9   :  { %657 = vst.msk [vmem:[%s1381_s1 + $0x26] sm:$0x1] %vm17_vm2, %v336_v45   ;;  %658 = vst.msk [vmem:[%s1381_s1 + $0x65] sm:$0x2] %vm17_vm2, %v336_v45  }
  0xca   :  { %659 = vst.msk [vmem:[%s1381_s1 + $0xd] sm:$0x1] %vm17_vm2, %v344_v46   ;;  %660 = vst.msk [vmem:[%s1381_s1 + $0x4c] sm:$0x2] %vm17_vm2, %v344_v46  }
  0xcc   :  { %v353_v47 = vpop.permute.xlu0 %352   ;;  %v361_v48 = vpop.permute.xlu1 %360  }
  0xcd   :  { %661 = vst.msk [vmem:[%s1381_s1 + $0x27] sm:$0x1] %vm17_vm2, %v353_v47   ;;  %662 = vst.msk [vmem:[%s1381_s1 + $0x66] sm:$0x2] %vm17_vm2, %v353_v47  }
  0xce   :  { %663 = vst.msk [vmem:[%s1381_s1 + $0xe] sm:$0x1] %vm17_vm2, %v361_v48   ;;  %664 = vst.msk [vmem:[%s1381_s1 + $0x4d] sm:$0x2] %vm17_vm2, %v361_v48  }
  0xd0   :  { %v370_v49 = vpop.permute.xlu0 %369   ;;  %v378_v50 = vpop.permute.xlu1 %377  }
  0xd1   :  { %665 = vst.msk [vmem:[%s1381_s1 + $0x28] sm:$0x1] %vm17_vm2, %v370_v49   ;;  %666 = vst.msk [vmem:[%s1381_s1 + $0x67] sm:$0x2] %vm17_vm2, %v370_v49  }
  0xd2   :  { %667 = vst.msk [vmem:[%s1381_s1 + $0xf] sm:$0x1] %vm17_vm2, %v378_v50   ;;  %668 = vst.msk [vmem:[%s1381_s1 + $0x4e] sm:$0x2] %vm17_vm2, %v378_v50  }
  0xd4   :  { %v387_v51 = vpop.permute.xlu0 %386   ;;  %v395_v52 = vpop.permute.xlu1 %394  }
  0xd5   :  { %669 = vst.msk [vmem:[%s1381_s1 + $0x29] sm:$0x1] %vm17_vm2, %v387_v51   ;;  %670 = vst.msk [vmem:[%s1381_s1 + $0x68] sm:$0x2] %vm17_vm2, %v387_v51  }
  0xd6   :  { %671 = vst.msk [vmem:[%s1381_s1 + $0x10] sm:$0x1] %vm17_vm2, %v395_v52   ;;  %672 = vst.msk [vmem:[%s1381_s1 + $0x4f] sm:$0x2] %vm17_vm2, %v395_v52  }
  0xd8   :  { %v404_v53 = vpop.permute.xlu0 %403   ;;  %v412_v54 = vpop.permute.xlu1 %411  }
  0xd9   :  { %673 = vst.msk [vmem:[%s1381_s1 + $0x2a] sm:$0x1] %vm17_vm2, %v404_v53   ;;  %674 = vst.msk [vmem:[%s1381_s1 + $0x69] sm:$0x2] %vm17_vm2, %v404_v53  }
  0xda   :  { %675 = vst.msk [vmem:[%s1381_s1 + $0x11] sm:$0x1] %vm17_vm2, %v412_v54   ;;  %676 = vst.msk [vmem:[%s1381_s1 + $0x50] sm:$0x2] %vm17_vm2, %v412_v54  }
  0xdc   :  { %v421_v55 = vpop.permute.xlu0 %420   ;;  %v429_v56 = vpop.permute.xlu1 %428  }
  0xdd   :  { %677 = vst.msk [vmem:[%s1381_s1 + $0x2b] sm:$0x1] %vm17_vm2, %v421_v55   ;;  %678 = vst.msk [vmem:[%s1381_s1 + $0x6a] sm:$0x2] %vm17_vm2, %v421_v55  }
  0xde   :  { %679 = vst.msk [vmem:[%s1381_s1 + $0x12] sm:$0x1] %vm17_vm2, %v429_v56   ;;  %680 = vst.msk [vmem:[%s1381_s1 + $0x51] sm:$0x2] %vm17_vm2, %v429_v56  }
  0xe0   :  { %v438_v57 = vpop.permute.xlu0 %437   ;;  %v446_v58 = vpop.permute.xlu1 %445  }
  0xe1   :  { %681 = vst.msk [vmem:[%s1381_s1 + $0x2c] sm:$0x1] %vm17_vm2, %v438_v57   ;;  %682 = vst.msk [vmem:[%s1381_s1 + $0x6b] sm:$0x2] %vm17_vm2, %v438_v57  }
  0xe2   :  { %683 = vst.msk [vmem:[%s1381_s1 + $0x13] sm:$0x1] %vm17_vm2, %v446_v58   ;;  %684 = vst.msk [vmem:[%s1381_s1 + $0x52] sm:$0x2] %vm17_vm2, %v446_v58  }
  0xe4   :  { %v455_v59 = vpop.permute.xlu0 %454   ;;  %v463_v60 = vpop.permute.xlu1 %462  }
  0xe5   :  { %685 = vst.msk [vmem:[%s1381_s1 + $0x2d] sm:$0x1] %vm17_vm2, %v455_v59   ;;  %686 = vst.msk [vmem:[%s1381_s1 + $0x6c] sm:$0x2] %vm17_vm2, %v455_v59  }
  0xe6   :  { %687 = vst.msk [vmem:[%s1381_s1 + $0x14] sm:$0x1] %vm17_vm2, %v463_v60   ;;  %688 = vst.msk [vmem:[%s1381_s1 + $0x53] sm:$0x2] %vm17_vm2, %v463_v60  }
  0xe8   :  { %v472_v61 = vpop.permute.xlu0 %471   ;;  %v480_v62 = vpop.permute.xlu1 %479  }
  0xe9   :  { %689 = vst.msk [vmem:[%s1381_s1 + $0x2e] sm:$0x1] %vm17_vm2, %v472_v61   ;;  %690 = vst.msk [vmem:[%s1381_s1 + $0x6d] sm:$0x2] %vm17_vm2, %v472_v61  }
  0xea   :  { %691 = vst.msk [vmem:[%s1381_s1 + $0x15] sm:$0x1] %vm17_vm2, %v480_v62   ;;  %692 = vst.msk [vmem:[%s1381_s1 + $0x54] sm:$0x2] %vm17_vm2, %v480_v62  }
  0xec   :  { %v489_v63 = vpop.permute.xlu0 %488   ;;  %v497_v0 = vpop.permute.xlu1 %496  }
  0xed   :  { %693 = vst.msk [vmem:[%s1381_s1 + $0x2f] sm:$0x1] %vm17_vm2, %v489_v63   ;;  %694 = vst.msk [vmem:[%s1381_s1 + $0x6e] sm:$0x2] %vm17_vm2, %v489_v63  }
  0xee   :  { %695 = vst.msk [vmem:[%s1381_s1 + $0x16] sm:$0x1] %vm17_vm2, %v497_v0   ;;  %696 = vst.msk [vmem:[%s1381_s1 + $0x55] sm:$0x2] %vm17_vm2, %v497_v0  }
  0xf0   :  { %v506_v1 = vpop.permute.xlu0 %505   ;;  %v514_v2 = vpop.permute.xlu1 %513  }
  0xf1   :  { %697 = vst.msk [vmem:[%s1381_s1 + $0x30] sm:$0x1] %vm17_vm2, %v506_v1   ;;  %698 = vst.msk [vmem:[%s1381_s1 + $0x6f] sm:$0x2] %vm17_vm2, %v506_v1  }
  0xf2   :  { %699 = vst.msk [vmem:[%s1381_s1 + $0x17] sm:$0x1] %vm17_vm2, %v514_v2   ;;  %700 = vst.msk [vmem:[%s1381_s1 + $0x56] sm:$0x2] %vm17_vm2, %v514_v2  }
  0xf4   :  { %v523_v3 = vpop.permute.xlu0 %522   ;;  %v531_v4 = vpop.permute.xlu1 %530  }
  0xf5   :  { %701 = vst.msk [vmem:[%s1381_s1 + $0x31] sm:$0x1] %vm17_vm2, %v523_v3   ;;  %702 = vst.msk [vmem:[%s1381_s1 + $0x70] sm:$0x2] %vm17_vm2, %v523_v3  }
  0xf6   :  { %703 = vst.msk [vmem:[%s1381_s1 + $0x18] sm:$0x1] %vm17_vm2, %v531_v4   ;;  %704 = vst.msk [vmem:[%s1381_s1 + $0x57] sm:$0x2] %vm17_vm2, %v531_v4  }
  0xf8   :  { %v540_v5 = vpop.permute.xlu0 %539  }
  0xf9   :  { %705 = vst.msk [vmem:[%s1381_s1 + $0x32] sm:$0x1] %vm17_vm2, %v540_v5   ;;  %706 = vst.msk [vmem:[%s1381_s1 + $0x71] sm:$0x2] %vm17_vm2, %v540_v5  }

// kernel: wav2vec2_encoder_forward.11
= control target key start
LH: loop header
LB: loop body
LE: loop exit
PB: predicated region body
PF: predicated region fallthrough
CT: control target
= control target key end

     0   :  { %s451_s9 = smov 0   ;;  %s498_s0 = inlined_call_operand.vmem [shape: f32[2,15,48], index: 0, kind: input, shape index: {}]   ;;  %s499_s1 = inlined_call_operand.vmem [shape: f32[2,24,24], index: 1, kind: input, shape index: {}]   ;;  %s500_s2 = inlined_call_operand.vmem [shape: f32[2,15,24], index: 2, kind: output, shape index: {}]  }
   0x1 LB: > { %s369_s10 = sadd.s32 4294967295, %s431_s9   ;;  %p373_p0 = scmp.ge.s32.totalorder %s431_s9, 1  ;;  %s431_s9 = sphi %s451_s9, %s12_s9  }
   0x2   : > { %p112_p1 = scmp.lt.s32.totalorder %s431_s9, 3 }
   0x4   : > { %p113_p2 = pnand %p373_p0, %p112_p1 }
   0x5   : > { %p134_p3 = scmp.lt.s32.totalorder (!%p113_p2), %s369_s10, 1  ;;  %s435_s27 = smov (!%p113_p2), 104  }
   0x6   : > { %116 = sbr.rel (%p113_p2) target bundleno = 383 (0x17f), region = 28 }
   0xb   : > { %v149_v0 = vld [vmem:[%s499_s1 + $0x10] sm:$0xff]  ;;  %vm165_vm0 = vcmask 1043456   ;;  %v433_v1 = vmov 0.0   ;;  %v147_v3 = vld [vmem:[%s499_s1] sm:$0xff]  ;;  %v148_v4 = vld [vmem:[%s499_s1 + $0x8] sm:$0xff]  ;;  %s502_s10 = smov (!%p134_p3, %s369_s10), 1 }
   0xc   : > { %398 = vmatprep.subr.bf16.mxu1 %v433_v1  ;;  %v155_v2 = vpack.c.bf16 %v149_v0, %v149_v0  ;;  %390 = vmatprep.subr.bf16.mxu0 %v433_v1  ;;  %v152_v5 = vld [vmem:[%s499_s1 + $0x28] sm:$0xff]  ;;  %vm434_vm1 = vmmov 0   ;;  %v150_v7 = vld [vmem:[%s499_s1 + $0x18] sm:$0xff]  ;;  %v151_v8 = vld [vmem:[%s499_s1 + $0x20] sm:$0xff]  ;;  %s382_s23 = sshll.u32 %s502_s10, 4  ;;  %v154_v10 = vpack.c.bf16 %v148_v4, %v147_v3  ;;  %vm161_vm2 = vcmask 195584  }
   0xd   : > { %v157_v6 = vpack.c.bf16 %v152_v5, %v152_v5  ;;  %402 = vmatprep.mubr.msk.bf16.mxu1 %vm434_vm1, %v433_v1  ;;  %394 = vmatprep.mubr.msk.bf16.mxu0 %vm434_vm1, %v433_v1  ;;  %s138_s26 = scalar_lea.vmem %s498_s0, %s382_s23  ;;  %v156_v12 = vpack.c.bf16 %v151_v8, %v150_v7  ;;  %s143_s30 = scalar_lea.vmem %s500_s2, %s382_s23  ;;  %vm312_vm5 = vcmask 194560  }
   0xe   : > { %v214_v9 = vsel %vm165_vm0, %v155_v2, 0  ;;  %v145_v13 = vld [vmem:[%s138_s26] sm:$0xff]  ;;  %v146_v14 = vld [vmem:[%s138_s26 + $0x8] sm:$0x7f] }
   0xf   : > { %399 = vmatpush3.bf16.msra.mxu1 %v214_v9  ;;  %v167_v11 = vsel %vm165_vm0, %v157_v6, 0  ;;  %v153_v15 = vpack.c.bf16 %v146_v14, %v145_v13 }
  0x10   : > { %400 = vmatprep.subr.bf16.mxu1 %v433_v1  ;;  %391 = vmatpush3.bf16.msra.mxu0 %v167_v11 }
  0x11   : > { %392 = vmatprep.subr.bf16.mxu0 %v433_v1  ;;  %159 = vrot.lane.b32.xlu0 %v153_v15, %s435_s27 }
  0x13   : > { %401 = vmatpush3.bf16.msra.mxu1 %v154_v10 }
  0x14   : > { %393 = vmatpush3.bf16.msra.mxu0 %v156_v12 }
  0x16   : > { %403 = vmatmul.mubr.msk.bf16.vlgmr.msra.gmra.mxu1 %vm161_vm2, %v153_v15 }
  0x83   : > { %v160_v16 = vpop.permute.xlu0 %159 }
  0x84   : > { %395 = vmatmul.mubr.msk.bf16.vlgmr.msra.gmra.mxu0 %vm161_vm2, %v160_v16 }
  0xd6   : > { %v250_v17 = vpop.f32.mrf.mxu1 }
  0xd8   : > { %v404_v18 = vpop.f32.mrf.mxu1 }
  0xda   : > { %v253_v19 = vpop.f32.mrf.mxu1 }
  0xdc   : > { %v405_v20 = vpop.f32.mrf.mxu1 }
 0x144   : > { %v203_v21 = vpop.f32.mrf.mxu0 }
 0x145   : > { %v251_v22 = vadd.f32 %v250_v17, %v203_v21 }
 0x146   : > { %v396_v23 = vpop.f32.mrf.mxu0 }
 0x147   : > { %v257_v24 = vmul.f32 0.70710677, %v251_v22  ;;  %v305_v5 = vmul.f32 0.5, %v251_v22 }
 0x148   : > { %v206_v25 = vpop.f32.mrf.mxu0 }
 0x149   : > { %v259_v26 = vand.u32 2147483647, %v257_v24  ;;  %v254_v27 = vadd.f32 %v253_v19, %v206_v25  ;;  %vm299_vm3 = vcmp.ge.f32.partialorder %v257_v24, 0.0 }
 0x14a   : > { %v397_v28 = vpop.f32.mrf.mxu0 }
 0x14b   : > { %v261_v29 = vmul.f32 0.3275911, %v259_v26  ;;  %v258_v30 = vmul.f32 0.70710677, %v254_v27  ;;  %v287_v35 = vsub.f32 0.0, %v259_v26  ;;  %v306_v10 = vmul.f32 0.5, %v254_v27 }
 0x14d   : > { %v263_v31 = vadd.f32 1.0, %v261_v29  ;;  %v260_v32 = vand.u32 2147483647, %v258_v30  ;;  %v289_v36 = vmul.f32 %v287_v35, %v259_v26  ;;  %vm300_vm4 = vcmp.ge.f32.partialorder %v258_v30, 0.0 }
 0x14f   : > { %417 = vrcp.f32 %v263_v31  ;;  %v262_v33 = vmul.f32 0.3275911, %v260_v32  ;;  %v288_v37 = vsub.f32 0.0, %v260_v32  ;;  %v291_v40 = vmul.f32 1.442695, %v289_v36 }
 0x151   : > { %v264_v34 = vadd.f32 1.0, %v262_v33  ;;  %v290_v41 = vmul.f32 %v288_v37, %v260_v32 }
 0x153   : > { %419 = vrcp.f32 %v264_v34  ;;  %v293_v46 = vmul.f32 1.442695, %v290_v41 }
 0x154   : > { %421 = vpow2.f32 %v291_v40 }
 0x155   : > { %423 = vpow2.f32 %v293_v46 }
 0x15c   : > { %v418_v38 = vpop.eup %417 }
 0x15d   : > { %v269_v39 = vmul.f32 1.0614054, %v418_v38 }
 0x15f   : > { %v271_v42 = vadd.f32 -1.4531521, %v269_v39 }
 0x160   : > { %v420_v43 = vpop.eup %419 }
 0x161   : > { %v273_v44 = vmul.f32 %v418_v38, %v271_v42  ;;  %v270_v45 = vmul.f32 1.0614054, %v420_v43  ;;  %v422_v59 = vpop.eup %421 }
 0x162   : > { %v424_v0 = vpop.eup %423 }
 0x163   : > { %v275_v47 = vadd.f32 1.4214138, %v273_v44  ;;  %v272_v48 = vadd.f32 -1.4531521, %v270_v45 }
 0x165   : > { %v277_v49 = vmul.f32 %v418_v38, %v275_v47  ;;  %v274_v50 = vmul.f32 %v420_v43, %v272_v48 }
 0x167   : > { %v279_v51 = vadd.f32 -0.28449672, %v277_v49  ;;  %v276_v52 = vadd.f32 1.4214138, %v274_v50 }
 0x169   : > { %v281_v53 = vmul.f32 %v418_v38, %v279_v51  ;;  %v278_v54 = vmul.f32 %v420_v43, %v276_v52 }
 0x16b   : > { %v283_v55 = vadd.f32 0.2548296, %v281_v53  ;;  %v280_v56 = vadd.f32 -0.28449672, %v278_v54 }
 0x16d   : > { %v285_v57 = vmul.f32 %v418_v38, %v283_v55  ;;  %v282_v58 = vmul.f32 %v420_v43, %v280_v56 }
 0x16f   : > { %v295_v60 = vmul.f32 %v422_v59, %v285_v57  ;;  %v284_v61 = vadd.f32 0.2548296, %v282_v58 }
 0x171   : > { %v297_v62 = vsub.f32 1.0, %v295_v60  ;;  %v286_v63 = vmul.f32 %v420_v43, %v284_v61 }
 0x173   : > { %v301_v1 = vsub.f32 0.0, %v297_v62  ;;  %v296_v2 = vmul.f32 %v424_v0, %v286_v63 }
 0x175   : > { %v303_v3 = vsel %vm299_vm3, %v297_v62, %v301_v1  ;;  %v298_v4 = vsub.f32 1.0, %v296_v2 }
 0x176   : > { %v307_v6 = vadd.f32 1.0, %v303_v3 }
 0x177   : > { %v302_v7 = vsub.f32 0.0, %v298_v4 }
 0x178   : > { %v309_v8 = vmul.f32 %v307_v6, %v305_v5 }
 0x179   : > { %v304_v9 = vsel %vm300_vm4, %v298_v4, %v302_v7 }
 0x17a   : > { %311 = vst.msk [vmem:[%s143_s30] sm:$0xff] %vm161_vm2, %v309_v8  ;;  %v308_v11 = vadd.f32 1.0, %v304_v9 }
 0x17c   : > { %v310_v12 = vmul.f32 %v308_v11, %v306_v10 }
 0x17e   : > { %313 = vst.msk [vmem:[%s143_s30 + $0x8] sm:$0x7f] %vm312_vm5, %v310_v12 }
 0x17f PF: > { %s12_s9 = sadd.s32 1, %s431_s9  }
 0x180   : > { %p9_p4 = scmp.ge.s32.totalorder %s12_s9, 4  }
 0x182   :  { %11 = sbr.rel (!%p9_p4) target bundleno = 1 (0x1), region = 58 }

// kernel: wav2vec2_encoder_forward.10
= control target key start
LH: loop header
LB: loop body
LE: loop exit
PB: predicated region body
PF: predicated region fallthrough
CT: control target
= control target key end

     0   :  { %s641_s9 = smov 0   ;;  %s739_s0 = inlined_call_operand.vmem [shape: f32[2,32,48], index: 0, kind: input, shape index: {}]   ;;  %s740_s1 = inlined_call_operand.vmem [shape: f32[3,24,24], index: 1, kind: input, shape index: {}]   ;;  %s741_s2 = inlined_call_operand.vmem [shape: f32[2,31,24], index: 2, kind: output, shape index: {}]  }
   0x1 LB: > { %s534_s10 = sadd.s32 4294967295, %s623_s9   ;;  %p538_p0 = scmp.ge.s32.totalorder %s623_s9, 1  ;;  %s623_s9 = sphi %s641_s9, %s12_s9  }
   0x2   : > { %p112_p1 = scmp.lt.s32.totalorder %s623_s9, 3 }
   0x4   : > { %p113_p2 = pnand %p538_p0, %p112_p1 }
   0x5   : > { %p134_p3 = scmp.lt.s32.totalorder (!%p113_p2), %s534_s10, 1  ;;  %s625_s29 = smov (!%p113_p2), 104  }
   0x6   : > { %116 = sbr.rel (%p113_p2) target bundleno = 399 (0x18f), region = 28 }
   0xb   : > { %v154_v0 = vld [vmem:[%s740_s1 + $0x28] sm:$0xff]  ;;  %vm177_vm0 = vcmask 1043456   ;;  %v151_v1 = vld [vmem:[%s740_s1 + $0x10] sm:$0xff]  ;;  %v152_v2 = vld [vmem:[%s740_s1 + $0x18] sm:$0xff]  ;;  %s743_s10 = smov (!%p134_p3, %s534_s10), 1  ;;  %vm170_vm1 = vcmask 195584  }
   0xc   : > { %v163_v3 = vpack.c.bf16 %v154_v0, %v154_v0  ;;  %v161_v4 = vpack.c.bf16 %v151_v1, %v151_v1  ;;  %v153_v5 = vld [vmem:[%s740_s1 + $0x20] sm:$0xff]  ;;  %v150_v7 = vld [vmem:[%s740_s1 + $0x8] sm:$0xff]  ;;  %s551_s25 = sshll.u32 %s743_s10, 5  ;;  %vm290_vm2 = vsmask.f32 7424  ;;  %v155_v29 = vld [vmem:[%s740_s1 + $0x30] sm:$0xff] }
   0xd   : > { %v149_v6 = vld [vmem:[%s740_s1] sm:$0xff]  ;;  %v162_v8 = vpack.c.bf16 %v153_v5, %v152_v2  ;;  %s138_s28 = scalar_lea.vmem %s739_s0, %s551_s25  ;;  %v156_v30 = vld [vmem:[%s740_s1 + $0x38] sm:$0xff]  ;;  %s143_s8 = scalar_lea.vmem %s741_s2, %s551_s25  ;;  %vm477_vm6 = vcmask 194560  }
   0xe   : > { %v160_v9 = vpack.c.bf16 %v150_v7, %v149_v6  ;;  %v157_v10 = vld [vmem:[%s740_s1 + $0x40] sm:$0xff]  ;;  %589 = vmatprep.subr.msk.bf16.mxu0 %vm177_vm0, %v163_v3  ;;  %v179_v11 = vsel %vm177_vm0, %v163_v3, 0  ;;  %590 = vmatprep.subr.msk.bf16.mxu1 %vm177_vm0, %v161_v4  ;;  %v237_v12 = vsel %vm177_vm0, %v161_v4, 0  ;;  %v146_v16 = vld [vmem:[%s138_s28 + $0x8] sm:$0xff]  ;;  %v147_v17 = vld [vmem:[%s138_s28 + $0x10] sm:$0xff]  ;;  %v288_v31 = vpack.c.bf16 %v156_v30, %v155_v29 }
   0xf   : > { %v289_v13 = vpack.c.bf16 %v157_v10, %v157_v10  ;;  %566 = vmatpush3.bf16.msra.mxu0 %v179_v11  ;;  %574 = vmatpush3.bf16.msra.mxu1 %v237_v12  ;;  %v145_v15 = vld [vmem:[%s138_s28] sm:$0xff]  ;;  %v148_v19 = vld [vmem:[%s138_s28 + $0x18] sm:$0xff] }
  0x10   : > { %567 = vmatprep.subr.bf16.mxu0 %v162_v8  ;;  %575 = vmatprep.subr.bf16.mxu1 %v160_v9  ;;  %v158_v18 = vpack.c.bf16 %v146_v16, %v145_v15  ;;  %v159_v20 = vpack.c.bf16 %v148_v19, %v147_v17 }
  0x11   : > { %v311_v14 = vsel %vm177_vm0, %v289_v13, 0 }
  0x12   : > { %166 = vrot.lane.b32.xlu0 %v158_v18, %s625_s29  ;;  %v291_v21 = vshrl.u32 %v158_v18, 16  ;;  %v293_v22 = vshll.u32 %v158_v18, 16  ;;  %577 = vmatprep.mubr.msk.bf16.mxu1 %vm170_vm1, %v158_v18  ;;  %v297_v23 = vshll.u32 %v159_v20, 16  ;;  %v301_v33 = vshrl.u32 %v159_v20, 16 }
  0x13   : > { %568 = vmatpush3.bf16.msra.mxu0 %v162_v8  ;;  %576 = vmatpush3.bf16.msra.mxu1 %v160_v9 }
  0x14   : > { %591 = vmatprep.subr.msk.bf16.mxu0 %vm177_vm0, %v289_v13  ;;  %v295_v24 = vrot.slane %v293_v22, 1  ;;  %v299_v25 = vrot.slane %v297_v23, 1 }
  0x16   : > { %578 = vmatmul.mubr.msk.bf16.vlgmr.msra.gmra.mxu1 %vm170_vm1, %v159_v20  ;;  %168 = vrot.lane.b32.xlu0 %v159_v20, %s625_s29  ;;  %v296_v26 = vor.u32 %v295_v24, %v291_v21  ;;  %v303_v34 = vor.u32 %v301_v33, %v299_v25 }
  0x18   : > { %v300_v27 = vsel %vm290_vm2, %v296_v26, %v299_v25 }
  0x84   : > { %v167_v28 = vpop.permute.xlu0 %166 }
  0x85   : > { %569 = vmatprep.mubr.msk.bf16.mxu0 %vm170_vm1, %v167_v28 }
  0x88   : > { %v169_v32 = vpop.permute.xlu0 %168 }
  0x89   : > { %570 = vmatmul.mubr.msk.bf16.vlgmr.msra.gmra.mxu0 %vm170_vm1, %v169_v32 }
  0x8a   : > { %582 = vmatpush3.bf16.msra.mxu0 %v311_v14  ;;  %585 = vmatprep.mubr.msk.bf16.mxu0 %vm170_vm1, %v300_v27 }
  0x8b   : > { %583 = vmatprep.subr.bf16.mxu0 %v288_v31 }
  0x8e   : > { %584 = vmatpush3.bf16.msra.mxu0 %v288_v31 }
  0x91   : > { %586 = vmatmul.mubr.msk.bf16.vlgmr.msra.gmra.mxu0 %vm170_vm1, %v303_v34 }
  0xd6   : > { %v579_v35 = vpop.f32.mrf.mxu1 }
  0xd8   : > { %v273_v38 = vpop.f32.mrf.mxu1 }
  0xda   : > { %v580_v42 = vpop.f32.mrf.mxu1 }
  0xdc   : > { %v276_v47 = vpop.f32.mrf.mxu1 }
 0x149   : > { %v571_v36 = vpop.f32.mrf.mxu0 }
 0x14a   : > { %v282_v41 = vadd.f32 %v579_v35, %v571_v36 }
 0x14b   : > { %v215_v37 = vpop.f32.mrf.mxu0 }
 0x14c   : > { %v274_v44 = vadd.f32 %v273_v38, %v215_v37 }
 0x14d   : > { %v572_v39 = vpop.f32.mrf.mxu0 }
 0x14e   : > { %v285_v50 = vadd.f32 %v580_v42, %v572_v39 }
 0x14f   : > { %v218_v40 = vpop.f32.mrf.mxu0 }
 0x150   : > { %v277_v54 = vadd.f32 %v276_v47, %v218_v40 }
 0x151   : > { %v587_v43 = vpop.f32.mrf.mxu0 }
 0x152   : > { %v696_v45 = vadd.f32 %v587_v43, %v282_v41 }
 0x153   : > { %v347_v46 = vpop.f32.mrf.mxu0 }
 0x154   : > { %v699_v48 = vmul.f32 0.70710677, %v696_v45  ;;  %v701_v49 = vadd.f32 %v347_v46, %v274_v44 }
 0x155   : > { %v588_v51 = vpop.f32.mrf.mxu0 }
 0x156   : > { %v372_v52 = vand.u32 2147483647, %v699_v48  ;;  %v705_v53 = vmul.f32 0.70710677, %v701_v49  ;;  %v707_v55 = vadd.f32 %v588_v51, %v285_v50  ;;  %vm452_vm3 = vcmp.ge.f32.partialorder %v699_v48, 0.0 }
 0x157   : > { %v350_v56 = vpop.f32.mrf.mxu0 }
 0x158   : > { %v376_v57 = vmul.f32 0.3275911, %v372_v52  ;;  %v370_v58 = vand.u32 2147483647, %v705_v53  ;;  %v711_v59 = vmul.f32 0.70710677, %v707_v55  ;;  %v713_v60 = vadd.f32 %v350_v56, %v277_v54 }
 0x159   : > { %v428_v7 = vsub.f32 0.0, %v372_v52  ;;  %vm450_vm4 = vcmp.ge.f32.partialorder %v705_v53, 0.0 }
 0x15a   : > { %v380_v61 = vadd.f32 1.0, %v376_v57  ;;  %v374_v62 = vmul.f32 0.3275911, %v370_v58  ;;  %v373_v63 = vand.u32 2147483647, %v711_v59  ;;  %v426_v8 = vsub.f32 0.0, %v370_v58 }
 0x15b   : > { %v717_v0 = vmul.f32 0.70710677, %v713_v60  ;;  %v432_v9 = vmul.f32 %v428_v7, %v372_v52  ;;  %vm453_vm5 = vcmp.ge.f32.partialorder %v711_v59, 0.0 }
 0x15c   : > { %601 = vrcp.f32 %v380_v61  ;;  %v378_v1 = vadd.f32 1.0, %v374_v62  ;;  %v377_v2 = vmul.f32 0.3275911, %v373_v63  ;;  %v429_v10 = vsub.f32 0.0, %v373_v63 }
 0x15d   : > { %v371_v3 = vand.u32 2147483647, %v717_v0  ;;  %v430_v12 = vmul.f32 %v426_v8, %v370_v58  ;;  %v438_v14 = vmul.f32 1.442695, %v432_v9  ;;  %vm451_vm7 = vcmp.ge.f32.partialorder %v717_v0, 0.0 }
 0x15e   : > { %603 = vrcp.f32 %v378_v1  ;;  %v381_v4 = vadd.f32 1.0, %v377_v2  ;;  %v433_v16 = vmul.f32 %v429_v10, %v373_v63 }
 0x15f   : > { %v375_v5 = vmul.f32 0.3275911, %v371_v3  ;;  %v427_v15 = vsub.f32 0.0, %v371_v3  ;;  %v434_v20 = vmul.f32 1.442695, %v430_v12 }
 0x160   : > { %605 = vrcp.f32 %v381_v4  ;;  %v440_v26 = vmul.f32 1.442695, %v433_v16 }
 0x161   : > { %v379_v6 = vadd.f32 1.0, %v375_v5  ;;  %v431_v23 = vmul.f32 %v427_v15, %v371_v3 }
 0x163   : > { %607 = vrcp.f32 %v379_v6  ;;  %v436_v33 = vmul.f32 1.442695, %v431_v23 }
 0x164   : > { %609 = vpow2.f32 %v438_v14  ;;  %v464_v14 = vmul.f32 0.5, %v696_v45 }
 0x165   : > { %611 = vpow2.f32 %v434_v20 }
 0x166   : > { %613 = vpow2.f32 %v440_v26 }
 0x167   : > { %615 = vpow2.f32 %v436_v33 }
 0x169   : > { %v602_v11 = vpop.eup %601 }
 0x16a   : > { %v392_v13 = vmul.f32 1.0614054, %v602_v11 }
 0x16b   : > { %v604_v17 = vpop.eup %603 }
 0x16c   : > { %v396_v18 = vadd.f32 -1.4531521, %v392_v13  ;;  %v390_v19 = vmul.f32 1.0614054, %v604_v17 }
 0x16d   : > { %v606_v21 = vpop.eup %605 }
 0x16e   : > { %v400_v22 = vmul.f32 %v602_v11, %v396_v18  ;;  %v394_v24 = vadd.f32 -1.4531521, %v390_v19  ;;  %v393_v25 = vmul.f32 1.0614054, %v606_v21 }
 0x170   : > { %v404_v27 = vadd.f32 1.4214138, %v400_v22  ;;  %v608_v28 = vpop.eup %607  ;;  %v398_v29 = vmul.f32 %v604_v17, %v394_v24  ;;  %v397_v30 = vadd.f32 -1.4531521, %v393_v25  ;;  %v465_v25 = vmul.f32 0.5, %v707_v55 }
 0x171   : > { %v391_v32 = vmul.f32 1.0614054, %v608_v28  ;;  %v610_v54 = vpop.eup %609 }
 0x172   : > { %v408_v31 = vmul.f32 %v602_v11, %v404_v27  ;;  %v402_v34 = vadd.f32 1.4214138, %v398_v29  ;;  %v401_v35 = vmul.f32 %v606_v21, %v397_v30  ;;  %v612_v1 = vpop.eup %611 }
 0x173   : > { %v395_v37 = vadd.f32 -1.4531521, %v391_v32  ;;  %v614_v6 = vpop.eup %613 }
 0x174   : > { %v412_v36 = vadd.f32 -0.28449672, %v408_v31  ;;  %v406_v38 = vmul.f32 %v604_v17, %v402_v34  ;;  %v405_v39 = vadd.f32 1.4214138, %v401_v35  ;;  %v616_v13 = vpop.eup %615 }
 0x175   : > { %v399_v41 = vmul.f32 %v608_v28, %v395_v37 }
 0x176   : > { %v416_v40 = vmul.f32 %v602_v11, %v412_v36  ;;  %v410_v42 = vadd.f32 -0.28449672, %v406_v38  ;;  %v409_v43 = vmul.f32 %v606_v21, %v405_v39 }
 0x177   : > { %v403_v46 = vadd.f32 1.4214138, %v399_v41 }
 0x178   : > { %v420_v44 = vadd.f32 0.2548296, %v416_v40  ;;  %v414_v47 = vmul.f32 %v604_v17, %v410_v42  ;;  %v413_v50 = vadd.f32 -0.28449672, %v409_v43 }
 0x179   : > { %v407_v52 = vmul.f32 %v608_v28, %v403_v46 }
 0x17a   : > { %v424_v51 = vmul.f32 %v602_v11, %v420_v44  ;;  %v418_v56 = vadd.f32 0.2548296, %v414_v47  ;;  %v417_v57 = vmul.f32 %v606_v21, %v413_v50 }
 0x17b   : > { %v411_v61 = vadd.f32 -0.28449672, %v407_v52 }
 0x17c   : > { %v444_v58 = vmul.f32 %v610_v54, %v424_v51  ;;  %v422_v62 = vmul.f32 %v604_v17, %v418_v56  ;;  %v421_v63 = vadd.f32 0.2548296, %v417_v57 }
 0x17d   : > { %v415_v3 = vmul.f32 %v608_v28, %v411_v61 }
 0x17e   : > { %v448_v2 = vsub.f32 1.0, %v444_v58  ;;  %v442_v4 = vmul.f32 %v612_v1, %v422_v62  ;;  %v425_v5 = vmul.f32 %v606_v21, %v421_v63  ;;  %v462_v21 = vmul.f32 0.5, %v701_v49 }
 0x17f   : > { %v419_v8 = vadd.f32 0.2548296, %v415_v3  ;;  %v463_v49 = vmul.f32 0.5, %v713_v60 }
 0x180   : > { %v456_v7 = vsub.f32 0.0, %v448_v2  ;;  %v446_v9 = vsub.f32 1.0, %v442_v4  ;;  %v445_v10 = vmul.f32 %v614_v6, %v425_v5 }
 0x181   : > { %v423_v12 = vmul.f32 %v608_v28, %v419_v8 }
 0x182   : > { %v460_v11 = vsel %vm452_vm3, %v448_v2, %v456_v7  ;;  %v454_v16 = vsub.f32 0.0, %v446_v9  ;;  %v449_v17 = vsub.f32 1.0, %v445_v10 }
 0x183   : > { %v468_v15 = vadd.f32 1.0, %v460_v11  ;;  %v443_v18 = vmul.f32 %v616_v13, %v423_v12 }
 0x184   : > { %v458_v48 = vsel %vm450_vm4, %v446_v9, %v454_v16  ;;  %v457_v20 = vsub.f32 0.0, %v449_v17 }
 0x185   : > { %v472_v19 = vmul.f32 %v468_v15, %v464_v14  ;;  %v466_v22 = vadd.f32 1.0, %v458_v48  ;;  %v447_v45 = vsub.f32 1.0, %v443_v18 }
 0x186   : > { %v461_v23 = vsel %vm453_vm5, %v449_v17, %v457_v20 }
 0x187   : > { %476 = vst.msk [vmem:[%s143_s8 + $0x10] sm:$0xff] %vm170_vm1, %v472_v19  ;;  %v470_v24 = vmul.f32 %v466_v22, %v462_v21  ;;  %v469_v26 = vadd.f32 1.0, %v461_v23  ;;  %v455_v27 = vsub.f32 0.0, %v447_v45 }
 0x189   : > { %474 = vst.msk [vmem:[%s143_s8] sm:$0xff] %vm170_vm1, %v470_v24  ;;  %v473_v53 = vmul.f32 %v469_v26, %v465_v25  ;;  %v459_v28 = vsel %vm451_vm7, %v447_v45, %v455_v27 }
 0x18a   : > { %v467_v29 = vadd.f32 1.0, %v459_v28 }
 0x18b   : > { %478 = vst.msk [vmem:[%s143_s8 + $0x18] sm:$0x7f] %vm477_vm6, %v473_v53 }
 0x18c   : > { %v471_v59 = vmul.f32 %v467_v29, %v463_v49 }
 0x18e   : > { %475 = vst.msk [vmem:[%s143_s8 + $0x8] sm:$0xff] %vm170_vm1, %v471_v59 }
 0x18f PF: > { %s12_s9 = sadd.s32 1, %s623_s9  }
 0x190   : > { %p9_p4 = scmp.ge.s32.totalorder %s12_s9, 4  }
 0x192   :  { %11 = sbr.rel (!%p9_p4) target bundleno = 1 (0x1), region = 58 }

// kernel: wav2vec2_encoder_forward.9
= control target key start
LH: loop header
LB: loop body
LE: loop exit
PB: predicated region body
PF: predicated region fallthrough
CT: control target
= control target key end

     0   :  { %s1279_s15 = smov 0   ;;  %s1827_s0 = inlined_call_operand.vmem [shape: f32[2,64,5], index: 0, kind: input, shape index: {}]   ;;  %s1828_s1 = inlined_call_operand.vmem [shape: f32[10,1,24], index: 1, kind: input, shape index: {}]   ;;  %s1829_s2 = inlined_call_operand.vmem [shape: f32[1,24], index: 2, kind: input, shape index: {}]   ;;  %s1830_s3 = inlined_call_operand.vmem [shape: f32[1,24], index: 3, kind: input, shape index: {}]   ;;  %s1831_s4 = inlined_call_operand.vmem [shape: f32[2,63,24], index: 4, kind: output, shape index: {}]  }
   0x1 LB: > { %s1142_s16 = sadd.s32 4294967295, %s1247_s15   ;;  %p1146_p0 = scmp.ge.s32.totalorder %s1247_s15, 1  ;;  %s1247_s15 = sphi %s1279_s15, %s14_s15  }
   0x2   : > { %p162_p1 = scmp.lt.s32.totalorder %s1247_s15, 3 }
   0x4   : > { %p163_p2 = pnand %p1146_p0, %p162_p1 }
   0x5   : > { %p188_p3 = scmp.lt.s32.totalorder (!%p163_p2), %s1142_s16, 1 }
   0x6   : > { %166 = sbr.rel (%p163_p2) target bundleno = 402 (0x192), region = 36 }
   0xb   : > { %v1249_v0 = vmov 2   ;;  %v1250_v1 = vmov 1   ;;  %s1833_s16 = smov (!%p188_p3, %s1142_s16), 1  ;;  %v1251_v7 = vmov 0   ;;  %v1252_v9 = vmov 3  }
   0xc   : > { %1181 = vset.pattern.permute.xlu0 %v1249_v0  ;;  %1180 = vset.pattern.permute.xlu1 %v1250_v1  ;;  %s1165_s17 = sshll.u32 %s1833_s16, 6  ;;  %v1253_v11 = vmov 4   ;;  %v1314_v13 = vld [vmem:[%s1828_s1 + $0x6] ss:$0 sm:$0xff]  ;;  %vm516_vm0 = vcmask 1046528   ;;  %vm760_vm1 = vcmask 195584  }
   0xd   : > { %s1296_s20 = scalar_lea.vmem %s1827_s0, %s1165_s17  ;;  %v1340_v30 = vld [vmem:[%s1828_s1 + $0x1] ss:$0 sm:$0xff]  ;;  %v1345_v31 = vld [vmem:[%s1828_s1 + $0x2] ss:$0 sm:$0xff]  ;;  %v1350_v32 = vld [vmem:[%s1828_s1] ss:$0 sm:$0xff]  ;;  %s197_s24 = scalar_lea.vmem %s1831_s4, %s1165_s17 }
   0xe   : > { %v198_v2 = vld [vmem:[%s1296_s20] sm:$0xff]  ;;  %v201_v3 = vld [vmem:[%s1296_s20 + $0x18] sm:$0xff]  ;;  %v199_v4 = vld [vmem:[%s1296_s20 + $0x8] sm:$0xff]  ;;  %vm774_vm2 = vcmask 194560  }
   0xf   : > { %333 = vperm.xlu0 %1181, %v198_v2   ;;  %279 = vperm.xlu1 %1180, %v198_v2   ;;  %v202_v5 = vld [vmem:[%s1296_s20 + $0x20] sm:$0xff]  ;;  %v200_v6 = vld [vmem:[%s1296_s20 + $0x10] sm:$0xff]  ;;  %v205_v10 = vld [vmem:[%s1296_s20 + $0x38] sm:$0xff] }
  0x10   : > { %v204_v8 = vld [vmem:[%s1296_s20 + $0x30] sm:$0xff]  ;;  %v203_v12 = vld [vmem:[%s1296_s20 + $0x28] sm:$0xff]  ;;  %v1359_v37 = vld [vmem:[%s1828_s1 + $0x7] ss:$0 sm:$0xff] }
  0x11   : > { %v1385_v57 = vld [vmem:[%s1828_s1 + $0x5] ss:$0 sm:$0xff]  ;;  %v1392_v60 = vld [vmem:[%s1828_s1 + $0x3] ss:$0 sm:$0xff] }
  0x13   : > { %345 = vperm.xlu0 %1181, %v201_v3   ;;  %283 = vperm.xlu1 %1180, %v199_v4  }
  0x17   : > { %349 = vperm.xlu0 %1181, %v202_v5   ;;  %287 = vperm.xlu1 %1180, %v200_v6  }
  0x1b   : > { %1192 = vset.pattern.permute.xlu0 %v1251_v7  ;;  %1182 = vset.pattern.permute.xlu1 %v1249_v0 }
  0x1c   : > { %218 = vperm.xlu0 %1192, %v198_v2   ;;  %337 = vperm.xlu1 %1182, %v199_v4  }
  0x20   : > { %223 = vperm.xlu0 %1192, %v199_v4   ;;  %1183 = vset.pattern.permute.xlu1 %v1251_v7 }
  0x21   : > { %233 = vperm.xlu1 %1183, %v201_v3  }
  0x24   : > { %228 = vperm.xlu0 %1192, %v200_v6  }
  0x25   : > { %1184 = vset.pattern.permute.xlu1 %v1249_v0 }
  0x26   : > { %341 = vperm.xlu1 %1184, %v200_v6  }
  0x28   : > { %248 = vperm.xlu0 %1192, %v204_v8  }
  0x2a   : > { %1185 = vset.pattern.permute.xlu1 %v1252_v9 }
  0x2b   : > { %387 = vperm.xlu1 %1185, %v198_v2  }
  0x2c   : > { %1195 = vset.pattern.permute.xlu0 %v1252_v9 }
  0x2d   : > { %391 = vperm.xlu0 %1195, %v199_v4  }
  0x2f   : > { %1186 = vset.pattern.permute.xlu1 %v1251_v7 }
  0x30   : > { %238 = vperm.xlu1 %1186, %v202_v5  }
  0x31   : > { %403 = vperm.xlu0 %1195, %v202_v5  }
  0x34   : > { %1187 = vset.pattern.permute.xlu1 %v1250_v1 }
  0x35   : > { %1198 = vset.pattern.permute.xlu0 %v1250_v1  ;;  %295 = vperm.xlu1 %1187, %v202_v5  }
  0x36   : > { %291 = vperm.xlu0 %1198, %v201_v3  }
  0x39   : > { %1188 = vset.pattern.permute.xlu1 %v1252_v9 }
  0x3a   : > { %307 = vperm.xlu0 %1198, %v205_v10   ;;  %395 = vperm.xlu1 %1188, %v200_v6  }
  0x3e   : > { %1201 = vset.pattern.permute.xlu0 %v1253_v11  ;;  %1189 = vset.pattern.permute.xlu1 %v1253_v11 }
  0x3f   : > { %445 = vperm.xlu0 %1201, %v199_v4   ;;  %441 = vperm.xlu1 %1189, %v198_v2  }
  0x43   : > { %457 = vperm.xlu0 %1201, %v202_v5   ;;  %1190 = vset.pattern.permute.xlu1 %v1251_v7 }
  0x44   : > { %243 = vperm.xlu1 %1190, %v203_v12  }
  0x47   : > { %461 = vperm.xlu0 %1201, %v203_v12  }
  0x48   : > { %1191 = vset.pattern.permute.xlu1 %v1250_v1 }
  0x49   : > { %299 = vperm.xlu1 %1191, %v203_v12  }
  0x4b   : > { %465 = vperm.xlu0 %1201, %v204_v8  }
  0x4d   : > { %1193 = vset.pattern.permute.xlu1 %v1252_v9 }
  0x4e   : > { %399 = vperm.xlu1 %1193, %v201_v3  }
  0x52   : > { %1194 = vset.pattern.permute.xlu1 %v1253_v11 }
  0x53   : > { %449 = vperm.xlu1 %1194, %v200_v6   ;;  %v1405_v6 = vld [vmem:[%s1828_s1 + $0x4] ss:$0 sm:$0xff] }
  0x57   : > { %1196 = vset.pattern.permute.xlu1 %v1250_v1 }
  0x58   : > { %303 = vperm.xlu1 %1196, %v204_v8  }
  0x5c   : > { %1197 = vset.pattern.permute.xlu1 %v1249_v0 }
  0x5d   : > { %353 = vperm.xlu1 %1197, %v203_v12  }
  0x61   : > { %1199 = vset.pattern.permute.xlu1 %v1253_v11 }
  0x62   : > { %453 = vperm.xlu1 %1199, %v201_v3  }
  0x66   : > { %1200 = vset.pattern.permute.xlu1 %v1251_v7 }
  0x67   : > { %253 = vperm.xlu1 %1200, %v205_v10  }
  0x6b   : > { %1202 = vset.pattern.permute.xlu1 %v1249_v0 }
  0x6c   : > { %357 = vperm.xlu1 %1202, %v204_v8  }
  0x70   : > { %1203 = vset.pattern.permute.xlu1 %v1252_v9 }
  0x71   : > { %407 = vperm.xlu1 %1203, %v203_v12   ;;  %v1412_v12 = vld [vmem:[%s1828_s1 + $0x8] ss:$0 sm:$0xff] }
  0x75   : > { %1204 = vset.pattern.permute.xlu1 %v1249_v0 }
  0x76   : > { %361 = vperm.xlu1 %1204, %v205_v10  }
  0x7a   : > { %1205 = vset.pattern.permute.xlu1 %v1252_v9 }
  0x7b   : > { %411 = vperm.xlu1 %1205, %v204_v8  }
  0x7f   : > { %415 = vperm.xlu1 %1205, %v205_v10  }
  0x83   : > { %1206 = vset.pattern.permute.xlu1 %v1253_v11 }
  0x84   : > { %469 = vperm.xlu1 %1206, %v205_v10  }
  0x8a   : > { %v280_v14 = vpop.permute.xlu1 %279  ;;  %v334_v15 = vpop.permute.xlu0 %333 }
  0x8b   : > { %v554_v16 = vmul.f32 %v1314_v13, %v280_v14  ;;  %v316_v56 = vmul.f32 %v1340_v30, %v280_v14  ;;  %v370_v61 = vmul.f32 %v1345_v31, %v334_v15  ;;  %v607_v8 = vmul.f32 %v1359_v37, %v334_v15 }
  0x8d   : > { %v570_v20 = vrot.slane %v554_v16, 1 }
  0x8e   : > { %v284_v17 = vpop.permute.xlu1 %283  ;;  %v1317_v18 = vpop.permute.xlu0 %345 }
  0x8f   : > { %v555_v19 = vmul.f32 %v1314_v13, %v284_v17  ;;  %v317_v34 = vmul.f32 %v1340_v30, %v284_v17 }
  0x91   : > { %v571_v21 = vrot.slane %v555_v19, 1 }
  0x92   : > { %v1320_v22 = vpop.permute.xlu1 %287  ;;  %v1322_v23 = vpop.permute.xlu0 %349 }
  0x93   : > { %v1325_v24 = vsel %vm516_vm0, %v570_v20, %v571_v21  ;;  %v1329_v25 = vmul.f32 %v1314_v13, %v1320_v22 }
  0x95   : > { %v573_v26 = vrot.slane %v1329_v25, 1 }
  0x97   : > { %v1335_v27 = vsel %vm516_vm0, %v571_v21, %v573_v26  ;;  %v219_v28 = vpop.permute.xlu0 %218  ;;  %v338_v29 = vpop.permute.xlu1 %337 }
  0x98   : > { %v371_v38 = vmul.f32 %v1345_v31, %v338_v29  ;;  %v608_v41 = vmul.f32 %v1359_v37, %v338_v29  ;;  %v262_v54 = vmul.f32 %v1350_v32, %v219_v28  ;;  %v500_v58 = vmul.f32 %v1385_v57, %v219_v28 }
  0x9a   : > { %v624_v46 = vrot.slane %v608_v41, 1  ;;  %v324_v62 = vadd.f32 %v316_v56, %v262_v54  ;;  %v517_v4 = vrot.slane %v500_v58, 1 }
  0x9b   : > { %v224_v33 = vpop.permute.xlu0 %223 }
  0x9c   : > { %v263_v35 = vmul.f32 %v1350_v32, %v224_v33  ;;  %v1354_v36 = vpop.permute.xlu1 %233  ;;  %v501_v59 = vmul.f32 %v1385_v57, %v224_v33  ;;  %v378_v7 = vadd.f32 %v370_v61, %v324_v62  ;;  %v623_v33 = vrot.slane %v607_v8, 1 }
  0x9e   : > { %v325_v39 = vadd.f32 %v317_v34, %v263_v35  ;;  %v518_v5 = vrot.slane %v501_v59, 1 }
  0x9f   : > { %v229_v40 = vpop.permute.xlu0 %228 }
  0xa0   : > { %v379_v42 = vadd.f32 %v371_v38, %v325_v39  ;;  %v1398_v1 = vmul.f32 %v1385_v57, %v229_v40  ;;  %v519_v15 = vsel %vm516_vm0, %v517_v4, %v518_v5  ;;  %v264_v61 = vmul.f32 %v1350_v32, %v229_v40 }
  0xa1   : > { %v342_v43 = vpop.permute.xlu1 %341 }
  0xa2   : > { %v1364_v44 = vmul.f32 %v1359_v37, %v342_v43  ;;  %v520_v9 = vrot.slane %v1398_v1, 1 }
  0xa3   : > { %v1366_v45 = vpop.permute.xlu0 %248 }
  0xa4   : > { %v626_v47 = vrot.slane %v1364_v44, 1  ;;  %v521_v21 = vsel %vm516_vm0, %v518_v5, %v520_v9 }
  0xa6   : > { %v627_v48 = vsel %vm516_vm0, %v624_v46, %v626_v47  ;;  %v388_v49 = vpop.permute.xlu1 %387 }
  0xa7   : > { %v424_v2 = vmul.f32 %v1392_v60, %v388_v49  ;;  %v660_v34 = vmul.f32 %v1412_v12, %v388_v49 }
  0xa8   : > { %v392_v50 = vpop.permute.xlu0 %391 }
  0xa9   : > { %v425_v3 = vmul.f32 %v1392_v60, %v392_v50  ;;  %v432_v14 = vadd.f32 %v424_v2, %v378_v7  ;;  %v661_v20 = vmul.f32 %v1412_v12, %v392_v50  ;;  %v625_v50 = vsel %vm516_vm0, %v623_v33, %v624_v46 }
  0xaa   : > { %v676_v56 = vrot.slane %v660_v34, 1  ;;  %v318_v2 = vmul.f32 %v1340_v30, %v1320_v22  ;;  %v372_v46 = vmul.f32 %v1345_v31, %v342_v43  ;;  %v503_v22 = vmul.f32 %v1385_v57, %v1354_v36 }
  0xab   : > { %v1372_v51 = vpop.permute.xlu1 %238  ;;  %v433_v16 = vadd.f32 %v425_v3, %v379_v42  ;;  %v677_v41 = vrot.slane %v661_v20, 1 }
  0xac   : > { %v1374_v52 = vpop.permute.xlu0 %403  ;;  %v522_v20 = vrot.slane %v503_v22, 1 }
  0xad   : > { %v678_v62 = vsel %vm516_vm0, %v676_v56, %v677_v41 }
  0xb0   : > { %v1376_v53 = vpop.permute.xlu1 %295 }
  0xb1   : > { %v1379_v55 = vpop.permute.xlu0 %291 }
  0xb2   : > { %v1445_v7 = vmul.f32 %v1314_v13, %v1379_v55 }
  0xb5   : > { %v396_v63 = vpop.permute.xlu1 %395  ;;  %v1395_v0 = vpop.permute.xlu0 %307 }
  0xb6   : > { %v426_v5 = vmul.f32 %v1392_v60, %v396_v63 }
  0xba   : > { %v446_v10 = vpop.permute.xlu0 %445  ;;  %v442_v11 = vpop.permute.xlu1 %441 }
  0xbb   : > { %v479_v17 = vmul.f32 %v1405_v6, %v446_v10  ;;  %v478_v19 = vmul.f32 %v1405_v6, %v442_v11 }
  0xbd   : > { %v487_v28 = vadd.f32 %v479_v17, %v433_v16  ;;  %v486_v29 = vadd.f32 %v478_v19, %v432_v14  ;;  %v1449_v17 = vmul.f32 %v1359_v37, %v1317_v18 }
  0xbf   : > { %v541_v35 = vadd.f32 %v521_v21, %v487_v28  ;;  %v540_v38 = vadd.f32 %v519_v15, %v486_v29  ;;  %v1420_v39 = vpop.permute.xlu1 %243  ;;  %v575_v21 = vrot.slane %v1445_v7, 1  ;;  %v628_v34 = vrot.slane %v1449_v17, 1  ;;  %v458_v17 = vpop.permute.xlu0 %457 }
  0xc1   : > { %v594_v42 = vadd.f32 %v1335_v27, %v541_v35  ;;  %v593_v54 = vadd.f32 %v1325_v24, %v540_v38  ;;  %v1434_v27 = vld [vmem:[%s1828_s1 + $0x9] ss:$0 sm:$0xff]  ;;  %v326_v24 = vadd.f32 %v318_v2, %v264_v61  ;;  %v523_v38 = vsel %vm516_vm0, %v520_v9, %v522_v20 }
  0xc2   : > { %v714_v40 = vmul.f32 %v1434_v27, %v446_v10  ;;  %v713_v3 = vmul.f32 %v1434_v27, %v442_v11  ;;  %v265_v9 = vmul.f32 %v1350_v32, %v1354_v36  ;;  %v1486_v36 = vmul.f32 %v1385_v57, %v1372_v51 }
  0xc3   : > { %v647_v58 = vadd.f32 %v627_v48, %v594_v42  ;;  %v646_v59 = vadd.f32 %v625_v50, %v593_v54  ;;  %v662_v48 = vmul.f32 %v1412_v12, %v396_v63  ;;  %v380_v8 = vadd.f32 %v372_v46, %v326_v24 }
  0xc4   : > { %v1427_v1 = vpop.permute.xlu1 %299  ;;  %v730_v16 = vrot.slane %v714_v40, 1  ;;  %v729_v43 = vrot.slane %v713_v3, 1 }
  0xc5   : > { %v699_v49 = vadd.f32 %v678_v62, %v646_v59  ;;  %v679_v14 = vrot.slane %v662_v48, 1  ;;  %v434_v11 = vadd.f32 %v426_v5, %v380_v8  ;;  %v576_v59 = vsel %vm516_vm0, %v573_v26, %v575_v21 }
  0xc6   : > { %v731_v28 = vsel %vm516_vm0, %v729_v43, %v730_v16  ;;  %v373_v26 = vmul.f32 %v1345_v31, %v1317_v18  ;;  %v1495_v18 = vmul.f32 %v1359_v37, %v1322_v23  ;;  %v524_v5 = vrot.slane %v1486_v36, 1 }
  0xc7   : > { %v680_v15 = vsel %vm516_vm0, %v677_v41, %v679_v14  ;;  %v1457_v35 = vadd.f32 %v731_v28, %v699_v49  ;;  %v319_v41 = vmul.f32 %v1340_v30, %v1379_v55 }
  0xc8   : > { %v700_v42 = vadd.f32 %v680_v15, %v647_v58  ;;  %v629_v58 = vsel %vm516_vm0, %v626_v47, %v628_v34  ;;  %v1491_v47 = vmul.f32 %v1314_v13, %v1376_v53  ;;  %v1508_v15 = vmul.f32 %v1434_v27, %v458_v17 }
  0xc9   : > { %v400_v4 = vpop.permute.xlu1 %399  ;;  %v761_v49 = vsel %vm760_vm1, %v1457_v35, 0.0  ;;  %v327_v24 = vadd.f32 %v319_v41, %v265_v9  ;;  %v525_v28 = vsel %vm516_vm0, %v522_v20, %v524_v5  ;;  %v320_v20 = vmul.f32 %v1340_v30, %v1376_v53 }
  0xca   : > { %v663_v46 = vmul.f32 %v1412_v12, %v400_v4  ;;  %v427_v44 = vmul.f32 %v1392_v60, %v400_v4  ;;  %v1502_v4 = vmul.f32 %v1412_v12, %v1374_v52  ;;  %v577_v43 = vrot.slane %v1491_v47, 1 }
  0xcb   : > { %v381_v40 = vadd.f32 %v373_v26, %v327_v24  ;;  %v374_v53 = vmul.f32 %v1345_v31, %v1322_v23  ;;  %v1552_v23 = vmul.f32 %v1385_v57, %v1366_v45 }
  0xcc   : > { %v681_v3 = vrot.slane %v663_v46, 1  ;;  %v267_v46 = vmul.f32 %v1350_v32, %v1420_v39 }
  0xcd   : > { %v435_v7 = vadd.f32 %v427_v44, %v381_v40  ;;  %v505_v44 = vmul.f32 %v1385_v57, %v1420_v39 }
  0xce   : > { %v450_v10 = vpop.permute.xlu1 %449 }
  0xcf   : > { %v480_v19 = vmul.f32 %v1405_v6, %v450_v10  ;;  %v715_v63 = vmul.f32 %v1434_v27, %v450_v10  ;;  %v682_v10 = vsel %vm516_vm0, %v679_v14, %v681_v3  ;;  %v578_v14 = vsel %vm516_vm0, %v575_v21, %v577_v43 }
  0xd0   : > { %v266_v21 = vmul.f32 %v1350_v32, %v1372_v51 }
  0xd1   : > { %v488_v29 = vadd.f32 %v480_v19, %v434_v11  ;;  %v732_v33 = vrot.slane %v715_v63, 1  ;;  %v630_v63 = vrot.slane %v1495_v18, 1 }
  0xd2   : > { %v328_v24 = vadd.f32 %v320_v20, %v266_v21 }
  0xd3   : > { %v542_v54 = vadd.f32 %v523_v38, %v488_v29  ;;  %v733_v50 = vsel %vm516_vm0, %v730_v16, %v732_v33  ;;  %v1461_v56 = vpop.permute.xlu1 %303 }
  0xd4   : > { %v1468_v61 = vadd.f32 %v733_v50, %v700_v42  ;;  %v683_v50 = vrot.slane %v1502_v4, 1  ;;  %v560_v20 = vmul.f32 %v1314_v13, %v1461_v56 }
  0xd5   : > { %v595_v62 = vadd.f32 %v576_v59, %v542_v54 }
  0xd6   : > { %v762_v55 = vsel %vm760_vm1, %v1468_v61, 0.0 }
  0xd7   : > { %v648_v2 = vadd.f32 %v629_v58, %v595_v62  ;;  %v763_v25 = vadd.f32 %v762_v55, %v761_v49  ;;  %v631_v62 = vsel %vm516_vm0, %v628_v34, %v630_v63  ;;  %v321_v55 = vmul.f32 %v1340_v30, %v1427_v1 }
  0xd8   : > { %v1482_v48 = vpop.permute.xlu1 %353  ;;  %v684_v34 = vsel %vm516_vm0, %v681_v3, %v683_v50 }
  0xd9   : > { %v701_v29 = vadd.f32 %v682_v10, %v648_v2  ;;  %v329_v3 = vadd.f32 %v321_v55, %v267_v46  ;;  %v382_v10 = vadd.f32 %v374_v53, %v328_v24  ;;  %v581_v24 = vrot.slane %v560_v20, 1 }
  0xdd   : > { %v454_v22 = vpop.permute.xlu1 %453 }
  0xde   : > { %v481_v8 = vmul.f32 %v1405_v6, %v454_v22  ;;  %v716_v16 = vmul.f32 %v1434_v27, %v454_v22  ;;  %v462_v22 = vpop.permute.xlu0 %461 }
  0xe0   : > { %v489_v11 = vadd.f32 %v481_v8, %v435_v7  ;;  %v734_v19 = vrot.slane %v716_v16, 1  ;;  %v428_v7 = vmul.f32 %v1392_v60, %v1374_v52  ;;  %v268_v52 = vmul.f32 %v1350_v32, %v1366_v45 }
  0xe2   : > { %v543_v38 = vadd.f32 %v525_v28, %v489_v11  ;;  %v735_v42 = vsel %vm516_vm0, %v732_v33, %v734_v19  ;;  %v1514_v54 = vpop.permute.xlu1 %253  ;;  %v736_v33 = vrot.slane %v1508_v15, 1  ;;  %v526_v28 = vrot.slane %v505_v44, 1  ;;  %v466_v44 = vpop.permute.xlu0 %465 }
  0xe3   : > { %v1520_v41 = vadd.f32 %v735_v42, %v701_v29  ;;  %v559_v29 = vmul.f32 %v1314_v13, %v1427_v1  ;;  %v482_v42 = vmul.f32 %v1405_v6, %v458_v17  ;;  %v528_v1 = vrot.slane %v1552_v23, 1 }
  0xe4   : > { %v596_v59 = vadd.f32 %v578_v14, %v543_v38  ;;  %v737_v51 = vsel %vm516_vm0, %v734_v19, %v736_v33  ;;  %v483_v38 = vmul.f32 %v1405_v6, %v462_v22  ;;  %v612_v17 = vmul.f32 %v1359_v37, %v1482_v48 }
  0xe5   : > { %v764_v9 = vsel %vm760_vm1, %v1520_v41, 0.0  ;;  %v579_v21 = vrot.slane %v559_v29, 1  ;;  %v507_v46 = vmul.f32 %v1385_v57, %v1514_v54 }
  0xe6   : > { %v649_v58 = vadd.f32 %v631_v62, %v596_v59  ;;  %v765_v49 = vadd.f32 %v764_v9, %v763_v25  ;;  %v375_v25 = vmul.f32 %v1345_v31, %v1482_v48  ;;  %v1569_v59 = vmul.f32 %v1314_v13, %v1395_v0 }
  0xe7   : > { %v358_v2 = vpop.permute.xlu1 %357  ;;  %v322_v62 = vmul.f32 %v1340_v30, %v1461_v56  ;;  %v436_v9 = vadd.f32 %v428_v7, %v382_v10  ;;  %v323_v13 = vmul.f32 %v1340_v30, %v1395_v0  ;;  %v580_v30 = vsel %vm516_vm0, %v577_v43, %v579_v21 }
  0xe8   : > { %v702_v26 = vadd.f32 %v684_v34, %v649_v58  ;;  %v383_v11 = vadd.f32 %v375_v25, %v329_v3  ;;  %v1579_v58 = vmul.f32 %v1434_v27, %v462_v22  ;;  %v376_v55 = vmul.f32 %v1345_v31, %v358_v2 }
  0xe9   : > { %v490_v56 = vadd.f32 %v482_v42, %v436_v9  ;;  %v583_v48 = vrot.slane %v1569_v59, 1  ;;  %v632_v25 = vrot.slane %v612_v17, 1  ;;  %v269_v10 = vmul.f32 %v1350_v32, %v1514_v54 }
  0xea   : > { %v1548_v40 = vadd.f32 %v737_v51, %v702_v26  ;;  %v330_v26 = vadd.f32 %v322_v62, %v268_v52  ;;  %v529_v51 = vsel %vm516_vm0, %v526_v28, %v528_v1  ;;  %v738_v22 = vrot.slane %v1579_v58, 1 }
  0xeb   : > { %v530_v47 = vrot.slane %v507_v46, 1  ;;  %v484_v43 = vmul.f32 %v1405_v6, %v466_v44  ;;  %v719_v42 = vmul.f32 %v1434_v27, %v466_v44  ;;  %v584_v58 = vsel %vm516_vm0, %v581_v24, %v583_v48 }
  0xec   : > { %v766_v8 = vsel %vm760_vm1, %v1548_v40, 0.0  ;;  %v408_v16 = vpop.permute.xlu1 %407  ;;  %v384_v0 = vadd.f32 %v376_v55, %v330_v26 }
  0xed   : > { %v1558_v19 = vadd.f32 %v766_v8, %v765_v49  ;;  %v429_v39 = vmul.f32 %v1392_v60, %v408_v16  ;;  %v527_v49 = vsel %vm516_vm0, %v524_v5, %v526_v28  ;;  %v665_v53 = vmul.f32 %v1412_v12, %v408_v16 }
  0xee   : > { %v544_v36 = vadd.f32 %v527_v49, %v490_v56  ;;  %v613_v5 = vmul.f32 %v1359_v37, %v358_v2  ;;  %v582_v2 = vsel %vm516_vm0, %v579_v21, %v581_v24  ;;  %v531_v9 = vsel %vm516_vm0, %v528_v1, %v530_v47 }
  0xef   : > { %v437_v14 = vadd.f32 %v429_v39, %v383_v11  ;;  %v685_v7 = vrot.slane %v665_v53, 1  ;;  %v633_v11 = vsel %vm516_vm0, %v630_v63, %v632_v25  ;;  %v331_v63 = vadd.f32 %v323_v13, %v269_v10 }
  0xf0   : > { %v634_v39 = vrot.slane %v613_v5, 1  ;;  %v740_v1 = vrot.slane %v719_v42, 1 }
  0xf1   : > { %v362_v45 = vpop.permute.xlu1 %361  ;;  %v491_v34 = vadd.f32 %v483_v38, %v437_v14  ;;  %v686_v32 = vsel %vm516_vm0, %v683_v50, %v685_v7 }
  0xf2   : > { %v614_v8 = vmul.f32 %v1359_v37, %v362_v45  ;;  %v597_v37 = vadd.f32 %v580_v30, %v544_v36  ;;  %v377_v14 = vmul.f32 %v1345_v31, %v362_v45  ;;  %v635_v31 = vsel %vm516_vm0, %v632_v25, %v634_v39 }
  0xf3   : > { %v545_v3 = vadd.f32 %v529_v51, %v491_v34  ;;  %v741_v15 = vsel %vm516_vm0, %v738_v22, %v740_v1 }
  0xf4   : > { %v636_v54 = vrot.slane %v614_v8, 1  ;;  %v650_v20 = vadd.f32 %v633_v11, %v597_v37  ;;  %v385_v49 = vadd.f32 %v377_v14, %v331_v63 }
  0xf5   : > { %v598_v38 = vadd.f32 %v582_v2, %v545_v3 }
  0xf6   : > { %v412_v23 = vpop.permute.xlu1 %411  ;;  %v703_v50 = vadd.f32 %v686_v32, %v650_v20 }
  0xf7   : > { %v430_v57 = vmul.f32 %v1392_v60, %v412_v23  ;;  %v666_v16 = vmul.f32 %v1412_v12, %v412_v23  ;;  %v651_v21 = vadd.f32 %v635_v31, %v598_v38 }
  0xf9   : > { %v438_v28 = vadd.f32 %v430_v57, %v384_v0  ;;  %v687_v29 = vrot.slane %v666_v16, 1 }
  0xfa   : > { %v416_v52 = vpop.permute.xlu1 %415 }
  0xfb   : > { %v492_v62 = vadd.f32 %v484_v43, %v438_v28  ;;  %v667_v18 = vmul.f32 %v1412_v12, %v416_v52  ;;  %v431_v17 = vmul.f32 %v1392_v60, %v416_v52  ;;  %v688_v4 = vsel %vm516_vm0, %v685_v7, %v687_v29 }
  0xfc   : > { %v739_v12 = vsel %vm516_vm0, %v736_v33, %v738_v22  ;;  %v637_v60 = vsel %vm516_vm0, %v634_v39, %v636_v54  ;;  %v704_v56 = vadd.f32 %v688_v4, %v651_v21 }
  0xfd   : > { %v546_v45 = vadd.f32 %v531_v9, %v492_v62  ;;  %v689_v55 = vrot.slane %v667_v18, 1  ;;  %v439_v53 = vadd.f32 %v431_v17, %v385_v49  ;;  %v756_v36 = vadd.f32 %v739_v12, %v703_v50 }
  0xfe   : > { %v757_v44 = vadd.f32 %v741_v15, %v704_v56 }
  0xff   : > { %v599_v34 = vadd.f32 %v584_v58, %v546_v45  ;;  %v470_v13 = vpop.permute.xlu1 %469  ;;  %v690_v25 = vsel %vm516_vm0, %v687_v29, %v689_v55  ;;  %v768_v3 = vsel %vm760_vm1, %v756_v36, 0.0 }
 0x100   : > { %v485_v26 = vmul.f32 %v1405_v6, %v470_v13  ;;  %v720_v24 = vmul.f32 %v1434_v27, %v470_v13  ;;  %v770_v27 = vsel %vm760_vm1, %v757_v44, 0.0  ;;  %v769_v8 = vadd.f32 %v768_v3, %v1558_v19 }
 0x101   : > { %v652_v46 = vadd.f32 %v637_v60, %v599_v34 }
 0x102   : > { %v493_v5 = vadd.f32 %v485_v26, %v439_v53  ;;  %v742_v51 = vrot.slane %v720_v24, 1  ;;  %v771_v22 = vadd.f32 %v770_v27, %v769_v8 }
 0x103   : > { %v705_v33 = vadd.f32 %v690_v25, %v652_v46 }
 0x104   : > { %v547_v30 = vadd.f32 %v530_v47, %v493_v5  ;;  %v743_v0 = vsel %vm516_vm0, %v740_v1, %v742_v51 }
 0x105   : > { %v758_v23 = vadd.f32 %v743_v0, %v705_v33  ;;  %v1161_v33 = vld [vmem:[%s1829_s2] ss:$0 sm:$0xff] }
 0x106   : > { %v600_v6 = vadd.f32 %v583_v48, %v547_v30 }
 0x107   : > { %v772_v16 = vsel %vm760_vm1, %v758_v23, 0.0 }
 0x108   : > { %v653_v7 = vadd.f32 %v636_v54, %v600_v6  ;;  %v773_v10 = vadd.f32 %v772_v16, %v771_v22  ;;  %v1162_v6 = vld [vmem:[%s1830_s3] ss:$0 sm:$0xff] }
 0x10a   : > { %v706_v57 = vadd.f32 %v689_v55, %v653_v7 }
 0x10c   : > { %v759_v2 = vadd.f32 %v742_v51, %v706_v57 }
 0x10e   : > { %v775_v47 = vsel %vm774_vm2, %v759_v2, 0.0 }
 0x10f   : > { %v776_v43 = vadd.f32 %v775_v47, %v773_v10 }
 0x111   : > { %v777_v11 = vrot.slane %v776_v43, 4 }
 0x113   : > { %v778_v39 = vadd.f32 %v777_v11, %v776_v43 }
 0x115   : > { %v779_v59 = vrot.slane %v778_v39, 2 }
 0x117   : > { %v780_v48 = vadd.f32 %v779_v59, %v778_v39 }
 0x119   : > { %v781_v28 = vrot.slane %v780_v48, 1 }
 0x11b   : > { %v782_v29 = vadd.f32 %v781_v28, %v780_v48 }
 0x11d   : > { %v784_v37 = vmul.f32 0.015873017, %v782_v29 }
 0x11f   : > { %v785_v38 = vsub.f32 %v1457_v35, %v784_v37  ;;  %v786_v19 = vsub.f32 %v1468_v61, %v784_v37  ;;  %v787_v42 = vsub.f32 %v1520_v41, %v784_v37  ;;  %v788_v14 = vsub.f32 %v1548_v40, %v784_v37 }
 0x120   : > { %v789_v52 = vsub.f32 %v756_v36, %v784_v37  ;;  %v790_v18 = vsub.f32 %v757_v44, %v784_v37  ;;  %v791_v58 = vsub.f32 %v758_v23, %v784_v37  ;;  %v792_v45 = vsub.f32 %v759_v2, %v784_v37 }
 0x121   : > { %v793_v32 = vmul.f32 %v785_v38, %v785_v38  ;;  %v794_v54 = vmul.f32 %v786_v19, %v786_v19  ;;  %v795_v62 = vmul.f32 %v787_v42, %v787_v42  ;;  %v796_v20 = vmul.f32 %v788_v14, %v788_v14 }
 0x122   : > { %v797_v31 = vmul.f32 %v789_v52, %v789_v52  ;;  %v798_v41 = vmul.f32 %v790_v18, %v790_v18  ;;  %v799_v50 = vmul.f32 %v791_v58, %v791_v58  ;;  %v800_v55 = vmul.f32 %v792_v45, %v792_v45 }
 0x123   : > { %v801_v63 = vsel %vm760_vm1, %v793_v32, 0.0  ;;  %v802_v9 = vsel %vm760_vm1, %v794_v54, 0.0  ;;  %v804_v35 = vsel %vm760_vm1, %v795_v62, 0.0  ;;  %v806_v40 = vsel %vm760_vm1, %v796_v20, 0.0 }
 0x124   : > { %v803_v17 = vadd.f32 %v802_v9, %v801_v63  ;;  %v808_v49 = vsel %vm760_vm1, %v797_v31, 0.0  ;;  %v810_v12 = vsel %vm760_vm1, %v798_v41, 0.0  ;;  %v812_v60 = vsel %vm760_vm1, %v799_v50, 0.0 }
 0x125   : > { %v814_v13 = vsel %vm774_vm2, %v800_v55, 0.0 }
 0x126   : > { %v805_v61 = vadd.f32 %v804_v35, %v803_v17 }
 0x128   : > { %v807_v4 = vadd.f32 %v806_v40, %v805_v61 }
 0x12a   : > { %v809_v21 = vadd.f32 %v808_v49, %v807_v4 }
 0x12c   : > { %v811_v1 = vadd.f32 %v810_v12, %v809_v21 }
 0x12e   : > { %v813_v34 = vadd.f32 %v812_v60, %v811_v1 }
 0x130   : > { %v815_v56 = vadd.f32 %v814_v13, %v813_v34 }
 0x132   : > { %v816_v53 = vrot.slane %v815_v56, 4 }
 0x134   : > { %v817_v26 = vadd.f32 %v816_v53, %v815_v56 }
 0x136   : > { %v818_v24 = vrot.slane %v817_v26, 2 }
 0x138   : > { %v819_v46 = vadd.f32 %v818_v24, %v817_v26 }
 0x13a   : > { %v820_v36 = vrot.slane %v819_v46, 1 }
 0x13c   : > { %v821_v25 = vadd.f32 %v820_v36, %v819_v46 }
 0x13e   : > { %v822_v5 = vmul.f32 0.015873017, %v821_v25 }
 0x140   : > { %v823_v51 = vadd.f32 1e-05, %v822_v5 }
 0x142   : > { %1207 = vrsqrt.f32 %v823_v51 }
 0x14f   : > { %v1208_v15 = vpop.eup %1207 }
 0x150   : > { %v825_v44 = vmul.f32 %v1208_v15, %v785_v38  ;;  %v826_v30 = vmul.f32 %v1208_v15, %v786_v19  ;;  %v827_v0 = vmul.f32 %v1208_v15, %v787_v42  ;;  %v828_v3 = vmul.f32 %v1208_v15, %v788_v14 }
 0x151   : > { %v829_v23 = vmul.f32 %v1208_v15, %v789_v52  ;;  %v830_v27 = vmul.f32 %v1208_v15, %v790_v18  ;;  %v831_v7 = vmul.f32 %v1208_v15, %v791_v58  ;;  %v832_v8 = vmul.f32 %v1208_v15, %v792_v45 }
 0x152   : > { %v840_v57 = vmul.f32 %v1161_v33, %v825_v44  ;;  %v841_v16 = vmul.f32 %v1161_v33, %v826_v30  ;;  %v842_v22 = vmul.f32 %v1161_v33, %v827_v0  ;;  %v843_v2 = vmul.f32 %v1161_v33, %v828_v3 }
 0x153   : > { %v844_v10 = vmul.f32 %v1161_v33, %v829_v23  ;;  %v845_v47 = vmul.f32 %v1161_v33, %v830_v27  ;;  %v846_v43 = vmul.f32 %v1161_v33, %v831_v7  ;;  %v847_v11 = vmul.f32 %v1161_v33, %v832_v8 }
 0x154   : > { %v1654_v39 = vadd.f32 %v1162_v6, %v840_v57  ;;  %v1656_v59 = vadd.f32 %v1162_v6, %v841_v16  ;;  %v1658_v48 = vadd.f32 %v1162_v6, %v842_v22  ;;  %v1660_v28 = vadd.f32 %v1162_v6, %v843_v2 }
 0x155   : > { %v1662_v29 = vadd.f32 %v1162_v6, %v844_v10  ;;  %v1664_v37 = vadd.f32 %v1162_v6, %v845_v47  ;;  %v1666_v38 = vadd.f32 %v1162_v6, %v846_v43  ;;  %v1668_v19 = vadd.f32 %v1162_v6, %v847_v11 }
 0x156   : > { %v1671_v42 = vmul.f32 0.70710677, %v1654_v39  ;;  %v1674_v14 = vmul.f32 0.70710677, %v1656_v59  ;;  %v1677_v52 = vmul.f32 0.70710677, %v1658_v48 }
 0x157   : > { %v1680_v32 = vmul.f32 0.70710677, %v1660_v28  ;;  %v1683_v54 = vmul.f32 0.70710677, %v1662_v29  ;;  %v1686_v62 = vmul.f32 0.70710677, %v1664_v37 }
 0x158   : > { %v1689_v18 = vmul.f32 0.70710677, %v1666_v38  ;;  %v1692_v20 = vmul.f32 0.70710677, %v1668_v19  ;;  %v871_v63 = vand.u32 2147483647, %v1671_v42 }
 0x159   : > { %v872_v9 = vand.u32 2147483647, %v1674_v14  ;;  %v873_v17 = vand.u32 2147483647, %v1677_v52  ;;  %v874_v58 = vand.u32 2147483647, %v1680_v32 }
 0x15a   : > { %v875_v31 = vand.u32 2147483647, %v1683_v54  ;;  %v876_v35 = vand.u32 2147483647, %v1686_v62  ;;  %v877_v61 = vand.u32 2147483647, %v1689_v18 }
 0x15b   : > { %v878_v45 = vand.u32 2147483647, %v1692_v20  ;;  %v879_v41 = vmul.f32 0.3275911, %v871_v63  ;;  %v880_v40 = vmul.f32 0.3275911, %v872_v9 }
 0x15c   : > { %v881_v4 = vmul.f32 0.3275911, %v873_v17  ;;  %v882_v50 = vmul.f32 0.3275911, %v874_v58  ;;  %v883_v49 = vmul.f32 0.3275911, %v875_v31 }
 0x15d   : > { %v884_v21 = vmul.f32 0.3275911, %v876_v35  ;;  %v885_v55 = vmul.f32 0.3275911, %v877_v61  ;;  %v887_v12 = vadd.f32 1.0, %v879_v41  ;;  %v888_v1 = vadd.f32 1.0, %v880_v40 }
 0x15e   : > { %v889_v60 = vadd.f32 1.0, %v881_v4  ;;  %v886_v34 = vmul.f32 0.3275911, %v878_v45  ;;  %v890_v13 = vadd.f32 1.0, %v882_v50  ;;  %v891_v56 = vadd.f32 1.0, %v883_v49 }
 0x15f   : > { %1209 = vrcp.f32 %v887_v12  ;;  %v983_v53 = vsub.f32 0.0, %v871_v63  ;;  %v984_v26 = vsub.f32 0.0, %v872_v9  ;;  %v892_v24 = vadd.f32 1.0, %v884_v21 }
 0x160   : > { %1211 = vrcp.f32 %v888_v1  ;;  %v985_v46 = vsub.f32 0.0, %v873_v17  ;;  %v893_v36 = vadd.f32 1.0, %v885_v55  ;;  %v986_v25 = vsub.f32 0.0, %v874_v58 }
 0x161   : > { %1213 = vrcp.f32 %v889_v60  ;;  %v894_v5 = vadd.f32 1.0, %v886_v34  ;;  %v987_v51 = vsub.f32 0.0, %v875_v31  ;;  %v991_v15 = vmul.f32 %v983_v53, %v871_v63 }
 0x162   : > { %1215 = vrcp.f32 %v890_v13  ;;  %v988_v33 = vsub.f32 0.0, %v876_v35  ;;  %v992_v44 = vmul.f32 %v984_v26, %v872_v9  ;;  %v989_v30 = vsub.f32 0.0, %v877_v61 }
 0x163   : > { %1217 = vrcp.f32 %v891_v56  ;;  %v990_v0 = vsub.f32 0.0, %v878_v45  ;;  %v993_v3 = vmul.f32 %v985_v46, %v873_v17  ;;  %v994_v6 = vmul.f32 %v986_v25, %v874_v58 }
 0x164   : > { %1219 = vrcp.f32 %v892_v24  ;;  %v995_v23 = vmul.f32 %v987_v51, %v875_v31  ;;  %v999_v27 = vmul.f32 1.442695, %v991_v15  ;;  %v1001_v7 = vmul.f32 1.442695, %v992_v44 }
 0x165   : > { %1221 = vrcp.f32 %v893_v36  ;;  %v996_v8 = vmul.f32 %v988_v33, %v876_v35  ;;  %v997_v57 = vmul.f32 %v989_v30, %v877_v61  ;;  %v998_v16 = vmul.f32 %v990_v0, %v878_v45 }
 0x166   : > { %1223 = vrcp.f32 %v894_v5  ;;  %v1003_v22 = vmul.f32 1.442695, %v993_v3  ;;  %v1005_v2 = vmul.f32 1.442695, %v994_v6  ;;  %v1007_v10 = vmul.f32 1.442695, %v995_v23 }
 0x167   : > { %1225 = vpow2.f32 %v999_v27  ;;  %v1009_v43 = vmul.f32 1.442695, %v996_v8  ;;  %v1011_v11 = vmul.f32 1.442695, %v997_v57  ;;  %v1013_v63 = vmul.f32 1.442695, %v998_v16 }
 0x168   : > { %1227 = vpow2.f32 %v1001_v7  ;;  %v1708_v58 = vmul.f32 0.5, %v1654_v39  ;;  %v1711_v31 = vmul.f32 0.5, %v1656_v59  ;;  %v1717_v45 = vmul.f32 0.5, %v1658_v48 }
 0x169   : > { %1229 = vpow2.f32 %v1003_v22  ;;  %v1720_v41 = vmul.f32 0.5, %v1660_v28  ;;  %v1726_v50 = vmul.f32 0.5, %v1662_v29  ;;  %v1729_v59 = vmul.f32 0.5, %v1664_v37 }
 0x16a   : > { %1231 = vpow2.f32 %v1005_v2  ;;  %v1735_v28 = vmul.f32 0.5, %v1666_v38  ;;  %vm1031_vm3 = vcmp.ge.f32.partialorder %v1671_v42, 0.0  ;;  %vm1032_vm4 = vcmp.ge.f32.partialorder %v1674_v14, 0.0 }
 0x16b   : > { %1233 = vpow2.f32 %v1007_v10  ;;  %vm1033_vm5 = vcmp.ge.f32.partialorder %v1677_v52, 0.0  ;;  %vm1034_vm6 = vcmp.ge.f32.partialorder %v1680_v32, 0.0  ;;  %vm1035_vm7 = vcmp.ge.f32.partialorder %v1683_v54, 0.0 }
 0x16c   : > { %v1702_v47 = vpop.eup %1209  ;;  %1235 = vpow2.f32 %v1009_v43  ;;  %vm1036_vm8 = vcmp.ge.f32.partialorder %v1686_v62, 0.0  ;;  %vm1037_vm9 = vcmp.ge.f32.partialorder %v1689_v18, 0.0  ;;  %vm1038_vm10 = vcmp.ge.f32.partialorder %v1692_v20, 0.0 }
 0x16d   : > { %v1704_v9 = vpop.eup %1211  ;;  %v911_v17 = vmul.f32 1.0614054, %v1702_v47  ;;  %1237 = vpow2.f32 %v1011_v11 }
 0x16e   : > { %v1713_v35 = vpop.eup %1213  ;;  %v912_v61 = vmul.f32 1.0614054, %v1704_v9  ;;  %1239 = vpow2.f32 %v1013_v63 }
 0x16f   : > { %v1722_v40 = vpop.eup %1215  ;;  %v913_v4 = vmul.f32 1.0614054, %v1713_v35  ;;  %v919_v39 = vadd.f32 -1.4531521, %v911_v17 }
 0x170   : > { %v1731_v49 = vpop.eup %1217  ;;  %v914_v21 = vmul.f32 1.0614054, %v1722_v40  ;;  %v920_v48 = vadd.f32 -1.4531521, %v912_v61 }
 0x171   : > { %v1737_v55 = vpop.eup %1219  ;;  %v915_v12 = vmul.f32 1.0614054, %v1731_v49  ;;  %v921_v1 = vadd.f32 -1.4531521, %v913_v4  ;;  %v927_v29 = vmul.f32 %v1702_v47, %v919_v39 }
 0x172   : > { %v1741_v60 = vpop.eup %1221  ;;  %v916_v37 = vmul.f32 1.0614054, %v1737_v55  ;;  %v922_v34 = vadd.f32 -1.4531521, %v914_v21  ;;  %v928_v13 = vmul.f32 %v1704_v9, %v920_v48 }
 0x173   : > { %v1745_v56 = vpop.eup %1223  ;;  %v917_v38 = vmul.f32 1.0614054, %v1741_v60  ;;  %v923_v53 = vadd.f32 -1.4531521, %v915_v12  ;;  %v929_v26 = vmul.f32 %v1713_v35, %v921_v1  ;;  %v935_v24 = vadd.f32 1.4214138, %v927_v29 }
 0x174   : > { %v918_v46 = vmul.f32 1.0614054, %v1745_v56  ;;  %v924_v36 = vadd.f32 -1.4531521, %v916_v37  ;;  %v930_v25 = vmul.f32 %v1722_v40, %v922_v34  ;;  %v936_v5 = vadd.f32 1.4214138, %v928_v13  ;;  %v1226_v23 = vpop.eup %1225 }
 0x175   : > { %v925_v51 = vadd.f32 -1.4531521, %v917_v38  ;;  %v931_v15 = vmul.f32 %v1731_v49, %v923_v53  ;;  %v937_v33 = vadd.f32 1.4214138, %v929_v26  ;;  %v943_v44 = vmul.f32 %v1702_v47, %v935_v24  ;;  %v1228_v16 = vpop.eup %1227 }
 0x176   : > { %v926_v30 = vadd.f32 -1.4531521, %v918_v46  ;;  %v932_v0 = vmul.f32 %v1737_v55, %v924_v36  ;;  %v938_v3 = vadd.f32 1.4214138, %v930_v25  ;;  %v944_v6 = vmul.f32 %v1704_v9, %v936_v5  ;;  %v1230_v11 = vpop.eup %1229 }
 0x177   : > { %v933_v27 = vmul.f32 %v1741_v60, %v925_v51  ;;  %v939_v7 = vadd.f32 1.4214138, %v931_v15  ;;  %v945_v8 = vmul.f32 %v1713_v35, %v937_v33  ;;  %v951_v57 = vadd.f32 -0.28449672, %v943_v44  ;;  %v1232_v39 = vpop.eup %1231 }
 0x178   : > { %v934_v22 = vmul.f32 %v1745_v56, %v926_v30  ;;  %v940_v2 = vadd.f32 1.4214138, %v932_v0  ;;  %v946_v10 = vmul.f32 %v1722_v40, %v938_v3  ;;  %v952_v43 = vadd.f32 -0.28449672, %v944_v6  ;;  %v1234_v29 = vpop.eup %1233 }
 0x179   : > { %v941_v63 = vadd.f32 1.4214138, %v933_v27  ;;  %v947_v17 = vmul.f32 %v1731_v49, %v939_v7  ;;  %v953_v61 = vadd.f32 -0.28449672, %v945_v8  ;;  %v959_v4 = vmul.f32 %v1702_v47, %v951_v57  ;;  %v1236_v36 = vpop.eup %1235 }
 0x17a   : > { %v942_v21 = vadd.f32 1.4214138, %v934_v22  ;;  %v948_v48 = vmul.f32 %v1737_v55, %v940_v2  ;;  %v954_v12 = vadd.f32 -0.28449672, %v946_v10  ;;  %v960_v1 = vmul.f32 %v1704_v9, %v952_v43  ;;  %v1238_v33 = vpop.eup %1237 }
 0x17b   : > { %v949_v37 = vmul.f32 %v1741_v60, %v941_v63  ;;  %v955_v34 = vadd.f32 -0.28449672, %v947_v17  ;;  %v961_v13 = vmul.f32 %v1713_v35, %v953_v61  ;;  %v967_v38 = vadd.f32 0.2548296, %v959_v4  ;;  %v1240_v6 = vpop.eup %1239 }
 0x17c   : > { %v950_v53 = vmul.f32 %v1745_v56, %v942_v21  ;;  %v956_v26 = vadd.f32 -0.28449672, %v948_v48  ;;  %v962_v24 = vmul.f32 %v1722_v40, %v954_v12  ;;  %v968_v46 = vadd.f32 0.2548296, %v960_v1 }
 0x17d   : > { %v957_v25 = vadd.f32 -0.28449672, %v949_v37  ;;  %v963_v5 = vmul.f32 %v1731_v49, %v955_v34  ;;  %v969_v51 = vadd.f32 0.2548296, %v961_v13  ;;  %v975_v15 = vmul.f32 %v1702_v47, %v967_v38 }
 0x17e   : > { %v958_v44 = vadd.f32 -0.28449672, %v950_v53  ;;  %v964_v30 = vmul.f32 %v1737_v55, %v956_v26  ;;  %v970_v0 = vadd.f32 0.2548296, %v962_v24  ;;  %v976_v3 = vmul.f32 %v1704_v9, %v968_v46 }
 0x17f   : > { %v965_v27 = vmul.f32 %v1741_v60, %v957_v25  ;;  %v971_v7 = vadd.f32 0.2548296, %v963_v5  ;;  %v977_v8 = vmul.f32 %v1713_v35, %v969_v51  ;;  %v1015_v57 = vmul.f32 %v1226_v23, %v975_v15 }
 0x180   : > { %v966_v47 = vmul.f32 %v1745_v56, %v958_v44  ;;  %v972_v22 = vadd.f32 0.2548296, %v964_v30  ;;  %v978_v2 = vmul.f32 %v1722_v40, %v970_v0  ;;  %v1016_v10 = vmul.f32 %v1228_v16, %v976_v3 }
 0x181   : > { %v973_v9 = vadd.f32 0.2548296, %v965_v27  ;;  %v979_v43 = vmul.f32 %v1731_v49, %v971_v7  ;;  %v1017_v63 = vmul.f32 %v1230_v11, %v977_v8  ;;  %v1023_v17 = vsub.f32 1.0, %v1015_v57 }
 0x182   : > { %v974_v61 = vadd.f32 0.2548296, %v966_v47  ;;  %v980_v35 = vmul.f32 %v1737_v55, %v972_v22  ;;  %v1018_v23 = vmul.f32 %v1232_v39, %v978_v2  ;;  %v1024_v4 = vsub.f32 1.0, %v1016_v10 }
 0x183   : > { %v981_v21 = vmul.f32 %v1741_v60, %v973_v9  ;;  %v1019_v40 = vmul.f32 %v1234_v29, %v979_v43  ;;  %v1025_v16 = vsub.f32 1.0, %v1017_v63  ;;  %v1039_v48 = vsub.f32 0.0, %v1023_v17 }
 0x184   : > { %v982_v49 = vmul.f32 %v1745_v56, %v974_v61  ;;  %v1020_v11 = vmul.f32 %v1236_v36, %v980_v35  ;;  %v1026_v12 = vsub.f32 1.0, %v1018_v23  ;;  %v1040_v1 = vsub.f32 0.0, %v1024_v4 }
 0x185   : > { %v1021_v37 = vmul.f32 %v1238_v33, %v981_v21  ;;  %v1027_v34 = vsub.f32 1.0, %v1019_v40  ;;  %v1041_v55 = vsub.f32 0.0, %v1025_v16  ;;  %v1047_v39 = vsel %vm1031_vm3, %v1023_v17, %v1039_v48 }
 0x186   : > { %v1022_v13 = vmul.f32 %v1240_v6, %v982_v49  ;;  %v1028_v38 = vsub.f32 1.0, %v1020_v11  ;;  %v1042_v60 = vsub.f32 0.0, %v1026_v12  ;;  %v1048_v29 = vsel %vm1032_vm4, %v1024_v4, %v1040_v1 }
 0x187   : > { %v1029_v53 = vsub.f32 1.0, %v1021_v37  ;;  %v1043_v26 = vsub.f32 0.0, %v1027_v34  ;;  %v1049_v56 = vsel %vm1033_vm5, %v1025_v16, %v1041_v55  ;;  %v1063_v24 = vadd.f32 1.0, %v1047_v39 }
 0x188   : > { %v1030_v46 = vsub.f32 1.0, %v1022_v13  ;;  %v1044_v36 = vsub.f32 0.0, %v1028_v38  ;;  %v1050_v25 = vsel %vm1034_vm6, %v1026_v12, %v1042_v60  ;;  %v1064_v5 = vadd.f32 1.0, %v1048_v29 }
 0x189   : > { %v1045_v42 = vsub.f32 0.0, %v1029_v53  ;;  %v1051_v14 = vsel %vm1035_vm7, %v1027_v34, %v1043_v26  ;;  %v1065_v51 = vadd.f32 1.0, %v1049_v56  ;;  %v1066_v15 = vadd.f32 1.0, %v1050_v25 }
 0x18a   : > { %v1046_v52 = vsub.f32 0.0, %v1030_v46  ;;  %v1052_v33 = vsel %vm1036_vm8, %v1028_v38, %v1044_v36  ;;  %v1067_v44 = vadd.f32 1.0, %v1051_v14  ;;  %v1071_v32 = vmul.f32 %v1063_v24, %v1708_v58 }
 0x18b   : > { %v1053_v30 = vsel %vm1037_vm9, %v1029_v53, %v1045_v42  ;;  %v1068_v0 = vadd.f32 1.0, %v1052_v33  ;;  %v1072_v3 = vmul.f32 %v1064_v5, %v1711_v31  ;;  %v1073_v6 = vmul.f32 %v1065_v51, %v1717_v45 }
 0x18c   : > { %v1054_v54 = vsel %vm1038_vm10, %v1030_v46, %v1046_v52  ;;  %v1069_v27 = vadd.f32 1.0, %v1053_v30  ;;  %v1074_v7 = vmul.f32 %v1066_v15, %v1720_v41  ;;  %v1075_v62 = vmul.f32 %v1067_v44, %v1726_v50  ;;  %1079 = vst.msk [vmem:[%s197_s24] sm:$0xff] %vm760_vm1, %v1071_v32 }
 0x18d   : > { %v1062_v58 = vmul.f32 0.5, %v1668_v19  ;;  %v1070_v8 = vadd.f32 1.0, %v1054_v54  ;;  %v1076_v18 = vmul.f32 %v1068_v0, %v1729_v59  ;;  %1080 = vst.msk [vmem:[%s197_s24 + $0x8] sm:$0xff] %vm760_vm1, %v1072_v3  ;;  %1081 = vst.msk [vmem:[%s197_s24 + $0x10] sm:$0xff] %vm760_vm1, %v1073_v6 }
 0x18e   : > { %v1077_v31 = vmul.f32 %v1069_v27, %v1735_v28  ;;  %1082 = vst.msk [vmem:[%s197_s24 + $0x18] sm:$0xff] %vm760_vm1, %v1074_v7  ;;  %1083 = vst.msk [vmem:[%s197_s24 + $0x20] sm:$0xff] %vm760_vm1, %v1075_v62 }
 0x18f   : > { %v1078_v20 = vmul.f32 %v1070_v8, %v1062_v58  ;;  %1084 = vst.msk [vmem:[%s197_s24 + $0x28] sm:$0xff] %vm760_vm1, %v1076_v18 }
 0x190   : > { %1085 = vst.msk [vmem:[%s197_s24 + $0x30] sm:$0xff] %vm760_vm1, %v1077_v31 }
 0x191   : > { %1086 = vst.msk [vmem:[%s197_s24 + $0x38] sm:$0x7f] %vm774_vm2, %v1078_v20 }
 0x192 PF: > { %s14_s15 = sadd.s32 1, %s1247_s15  }
 0x193   : > { %p11_p4 = scmp.ge.s32.totalorder %s14_s15, 4  }
 0x195   :  { %13 = sbr.rel (!%p11_p4) target bundleno = 1 (0x1), region = 66 }

// kernel: wav2vec2_encoder_forward.12
= control target key start
LH: loop header
LB: loop body
LE: loop exit
PB: predicated region body
PF: predicated region fallthrough
CT: control target
= control target key end

     0   :  { %vm27_vm0 = vcmask 195584   ;;  %vm37_vm1 = vcmask 193536   ;;  %vm129_vm2 = vcmask 1043456   ;;  %vm182_vm3 = vcmask 261120   ;;  %s301_s0 = inlined_call_operand.vmem [shape: f32[30,24], index: 0, kind: input, shape index: {}]   ;;  %s302_s3 = inlined_call_operand.vmem [shape: bf16[24,32], index: 3, kind: input, shape index: {}]   ;;  %s303_s1 = inlined_call_operand.vmem [shape: f32[1,24], index: 1, kind: input, shape index: {}]   ;;  %s304_s2 = inlined_call_operand.vmem [shape: f32[1,24], index: 2, kind: input, shape index: {}]   ;;  %s305_s4 = inlined_call_operand.vmem [shape: f32[1,32], index: 4, kind: input, shape index: {}]   ;;  %s306_s5 = inlined_call_operand.vmem [shape: f32[30,32], index: 5, kind: output, shape index: {}]  }
   0x1   :  { %v21_v0 = vld [vmem:[%s301_s0] sm:$0xff]  ;;  %v23_v1 = vld [vmem:[%s301_s0 + $0x10] sm:$0xff]  ;;  %v22_v2 = vld [vmem:[%s301_s0 + $0x8] sm:$0xff]  ;;  %vm186_vm4 = vcmask 259072  }
   0x2   :  { %v28_v3 = vsel %vm27_vm0, %v21_v0, 0.0  ;;  %v34_v4 = vsel %vm27_vm0, %v23_v1, 0.0  ;;  %v24_v5 = vld [vmem:[%s301_s0 + $0x18] sm:$0x3f]  ;;  %v31_v6 = vsel %vm27_vm0, %v22_v2, 0.0  ;;  %v213_v29 = vld [vmem:[%s302_s3] sm:$0xff]  }
   0x3   :  { %29 = vadd.xlane.f32.xlu0 %v28_v3  ;;  %35 = vadd.xlane.f32.xlu1 %v34_v4  ;;  %v38_v7 = vsel %vm37_vm1, %v24_v5, 0.0  ;;  %v212_v28 = vld [vmem:[%s302_s3 + $0x8] ss:$0 sps:$4 sm:$0xff]   ;;  %v192_v45 = vld [vmem:[%s303_s1] ss:$0 sm:$0xff] }
   0x4   :  { %211 = vmatprep.subr.msk.bf16.mxu0 %vm129_vm2, %v212_v28  ;;  %v131_v30 = vsel %vm129_vm2, %v212_v28, 0  ;;  %v193_v50 = vld [vmem:[%s304_s2] ss:$0 sm:$0xff] }
   0x5   :  { %204 = vmatpush3.bf16.msra.mxu0 %v131_v30  ;;  %v194_v63 = vld [vmem:[%s305_s4] ss:$0 sm:$0xff] }
   0x6   :  { %205 = vmatprep.subr.bf16.mxu0 %v213_v29 }
   0x7   :  { %32 = vadd.xlane.f32.xlu0 %v31_v6  ;;  %39 = vadd.xlane.f32.xlu1 %v38_v7 }
   0x9   :  { %206 = vmatpush3.bf16.msra.mxu0 %v213_v29 }
  0x8c   :  { %v30_v8 = vpop.xlane.xlu0 %29  ;;  %v36_v9 = vpop.xlane.xlu1 %35 }
  0x8d   :  { %v42_v10 = vmul.f32 0.041666668, %v30_v8  ;;  %v44_v11 = vmul.f32 0.041666668, %v36_v9 }
  0x8f   :  { %v46_v12 = vsub.f32 %v21_v0, %v42_v10  ;;  %v48_v13 = vsub.f32 %v23_v1, %v44_v11 }
  0x90   :  { %v33_v14 = vpop.xlane.xlu0 %32  ;;  %v40_v15 = vpop.xlane.xlu1 %39 }
  0x91   :  { %v43_v16 = vmul.f32 0.041666668, %v33_v14  ;;  %v45_v17 = vmul.f32 0.041666668, %v40_v15  ;;  %v50_v18 = vmul.f32 %v46_v12, %v46_v12  ;;  %v52_v19 = vmul.f32 %v48_v13, %v48_v13 }
  0x93   :  { %v47_v20 = vsub.f32 %v22_v2, %v43_v16  ;;  %v49_v21 = vsub.f32 %v24_v5, %v45_v17  ;;  %v54_v22 = vsel %vm27_vm0, %v50_v18, 0.0  ;;  %v60_v23 = vsel %vm27_vm0, %v52_v19, 0.0 }
  0x94   :  { %55 = vadd.xlane.f32.xlu0 %v54_v22 }
  0x95   :  { %v51_v24 = vmul.f32 %v47_v20, %v47_v20  ;;  %v53_v25 = vmul.f32 %v49_v21, %v49_v21 }
  0x97   :  { %v57_v26 = vsel %vm27_vm0, %v51_v24, 0.0  ;;  %v63_v27 = vsel %vm37_vm1, %v53_v25, 0.0 }
  0x98   :  { %61 = vadd.xlane.f32.xlu0 %v60_v23  ;;  %58 = vadd.xlane.f32.xlu1 %v57_v26 }
  0x9c   :  { %64 = vadd.xlane.f32.xlu1 %v63_v27 }
 0x11d   :  { %v56_v31 = vpop.xlane.xlu0 %55 }
 0x11e   :  { %v66_v32 = vmul.f32 0.041666668, %v56_v31 }
 0x120   :  { %v70_v33 = vadd.f32 1e-05, %v66_v32 }
 0x121   :  { %v59_v34 = vpop.xlane.xlu1 %58  ;;  %v62_v35 = vpop.xlane.xlu0 %61 }
 0x122   :  { %214 = vrsqrt.f32 %v70_v33  ;;  %v67_v36 = vmul.f32 0.041666668, %v59_v34  ;;  %v68_v37 = vmul.f32 0.041666668, %v62_v35 }
 0x124   :  { %v71_v38 = vadd.f32 1e-05, %v67_v36  ;;  %v72_v39 = vadd.f32 1e-05, %v68_v37 }
 0x125   :  { %v65_v40 = vpop.xlane.xlu1 %64 }
 0x126   :  { %216 = vrsqrt.f32 %v71_v38  ;;  %v69_v41 = vmul.f32 0.041666668, %v65_v40 }
 0x127   :  { %218 = vrsqrt.f32 %v72_v39 }
 0x128   :  { %v73_v42 = vadd.f32 1e-05, %v69_v41 }
 0x12a   :  { %220 = vrsqrt.f32 %v73_v42 }
 0x12f   :  { %v215_v43 = vpop.eup %214 }
 0x130   :  { %v78_v44 = vmul.f32 %v215_v43, %v46_v12 }
 0x132   :  { %v88_v49 = vmul.f32 %v192_v45, %v78_v44 }
 0x133   :  { %v217_v46 = vpop.eup %216 }
 0x134   :  { %v219_v47 = vpop.eup %218  ;;  %v79_v48 = vmul.f32 %v217_v46, %v47_v20  ;;  %v98_v54 = vadd.f32 %v193_v50, %v88_v49 }
 0x135   :  { %v80_v51 = vmul.f32 %v219_v47, %v48_v13 }
 0x136   :  { %v89_v52 = vmul.f32 %v192_v45, %v79_v48 }
 0x137   :  { %v221_v53 = vpop.eup %220  ;;  %v90_v57 = vmul.f32 %v192_v45, %v80_v51 }
 0x138   :  { %v99_v55 = vadd.f32 %v193_v50, %v89_v52  ;;  %v81_v56 = vmul.f32 %v221_v53, %v49_v21 }
 0x139   :  { %v100_v60 = vadd.f32 %v193_v50, %v90_v57 }
 0x13a   :  { %v102_v58 = vpack.c.bf16 %v99_v55, %v98_v54  ;;  %v91_v59 = vmul.f32 %v192_v45, %v81_v56 }
 0x13c   :  { %207 = vmatprep.mubr.msk.bf16.mxu0 %vm27_vm0, %v102_v58  ;;  %v101_v61 = vadd.f32 %v193_v50, %v91_v59 }
 0x13e   :  { %v103_v62 = vpack.c.bf16 %v101_v61, %v100_v60 }
 0x140   :  { %208 = vmatmul.mubr.msk.bf16.vlgmr.msra.gmra.mxu0 %vm27_vm0, %v103_v62 }
 0x200   :  { %v209_v0 = vpop.f32.mrf.mxu0 }
 0x201   :  { %v176_v1 = vadd.f32 %v209_v0, %v194_v63 }
 0x202   :  { %v167_v2 = vpop.f32.mrf.mxu0 }
 0x203   :  { %185 = vst.msk [vmem:[%s306_s5 + $0x10] sm:$0xff] %vm182_vm3, %v176_v1  ;;  %v168_v3 = vadd.f32 %v194_v63, %v167_v2 }
 0x204   :  { %v210_v4 = vpop.f32.mrf.mxu0 }
 0x205   :  { %183 = vst.msk [vmem:[%s306_s5] sm:$0xff] %vm182_vm3, %v168_v3  ;;  %v179_v5 = vadd.f32 %v210_v4, %v194_v63 }
 0x206   :  { %v170_v6 = vpop.f32.mrf.mxu0 }
 0x207   :  { %187 = vst.msk [vmem:[%s306_s5 + $0x18] sm:$0x3f] %vm186_vm4, %v179_v5  ;;  %v171_v7 = vadd.f32 %v194_v63, %v170_v6 }
 0x209   :  { %184 = vst.msk [vmem:[%s306_s5 + $0x8] sm:$0xff] %vm182_vm3, %v171_v7 }

// kernel: wav2vec2_encoder_forward.13
= control target key start
LH: loop header
LB: loop body
LE: loop exit
PB: predicated region body
PF: predicated region fallthrough
CT: control target
= control target key end

     0   :  { %s685_s18 = smov 0   ;;  %s777_s0 = inlined_call_operand.vmem [shape: f32[2,17,32], index: 0, kind: input, shape index: {}]   ;;  %s778_s1 = inlined_call_operand.vmem [shape: f32[3,32,32], index: 1, kind: input, shape index: {}]   ;;  %s779_s2 = inlined_call_operand.vmem [shape: f32[1,32], index: 2, kind: input, shape index: {}]   ;;  %s780_s3 = inlined_call_operand.vmem [shape: f32[1,32], index: 3, kind: input, shape index: {}]   ;;  %s781_s4 = inlined_call_operand.vmem [shape: f32[1,32], index: 4, kind: input, shape index: {}]   ;;  %s782_s5 = inlined_call_operand.vmem [shape: f32[2,15,32], index: 5, kind: output, shape index: {}]  }
   0x1 LB: > { %s572_s19 = sadd.s32 4294967295, %s651_s18   ;;  %p576_p0 = scmp.ge.s32.totalorder %s651_s18, 1  ;;  %s651_s18 = sphi %s685_s18, %s15_s18  }
   0x2   : > { %p187_p1 = scmp.lt.s32.totalorder %s651_s18, 3 }
   0x4   : > { %p188_p2 = pnand %p576_p0, %p187_p1 }
   0x5   : > { %p702_p3 = scmp.lt.s32.totalorder (!%p188_p2), %s572_s19, 1 }
   0x6   : > { %191 = sbr.rel (%p188_p2) target bundleno = 598 (0x256), region = 40 }
   0xb   : > { %v235_v0 = vld [vmem:[%s778_s1 + $0x30] sm:$0xff]  ;;  %v236_v1 = vld [vmem:[%s778_s1 + $0x38] sm:$0xff]  ;;  %v653_v3 = vmov 0.0   ;;  %v233_v6 = vld [vmem:[%s778_s1 + $0x20] sm:$0xff]  ;;  %vm654_vm0 = vmmov 0   ;;  %s785_s19 = smov (!%p702_p3, %s572_s19), 1 }
   0xc   : > { %v231_v2 = vld [vmem:[%s778_s1 + $0x10] sm:$0xff]  ;;  %598 = vmatprep.subr.bf16.mxu0 %v653_v3  ;;  %v245_v4 = vpack.c.bf16 %v236_v1, %v235_v0  ;;  %606 = vmatprep.subr.bf16.mxu1 %v653_v3  ;;  %v232_v5 = vld [vmem:[%s778_s1 + $0x18] sm:$0xff]  ;;  %v234_v7 = vld [vmem:[%s778_s1 + $0x28] sm:$0xff]  ;;  %s622_s12 = smul.u32 24, %s785_s19  ;;  %vm253_vm1 = vcmask 261120   ;;  %vm346_vm2 = vcmask 1046528  }
   0xd   : > { %v243_v8 = vpack.c.bf16 %v232_v5, %v231_v2  ;;  %v229_v9 = vld [vmem:[%s778_s1] sm:$0xff]  ;;  %v230_v10 = vld [vmem:[%s778_s1 + $0x8] sm:$0xff]  ;;  %602 = vmatprep.mubr.msk.bf16.mxu0 %vm654_vm0, %v653_v3  ;;  %610 = vmatprep.mubr.msk.bf16.mxu1 %vm654_vm0, %v653_v3  ;;  %v244_v11 = vpack.c.bf16 %v234_v7, %v233_v6  ;;  %v239_v18 = vld [vmem:[%s778_s1 + $0x50] sm:$0xff]  ;;  %vm471_vm5 = vcmask 261121   ;;  %vm461_vm6 = vcmask 1040384   ;;  %s588_s30 = sshll.u32 %s785_s19, 4 }
   0xe   : > { %599 = vmatpush3.bf16.msra.mxu0 %v245_v4  ;;  %v242_v12 = vpack.c.bf16 %v230_v10, %v229_v9  ;;  %s219_s15 = scalar_lea.vmem %s777_s0, %s622_s12  ;;  %v240_v19 = vld [vmem:[%s778_s1 + $0x58] sm:$0xff]  ;;  %v237_v25 = vld [vmem:[%s778_s1 + $0x40] sm:$0xff]  ;;  %v238_v26 = vld [vmem:[%s778_s1 + $0x48] sm:$0xff]  ;;  %s224_s10 = scalar_lea.vmem %s782_s5, %s588_s30 }
   0xf   : > { %607 = vmatpush3.bf16.msra.mxu1 %v243_v8  ;;  %600 = vmatprep.subr.bf16.mxu0 %v653_v3  ;;  %v731_v13 = vld [vmem:[%s219_s15] sm:$0xff]  ;;  %v733_v14 = vld [vmem:[%s219_s15 + $0x8] sm:$0xff]  ;;  %v228_v20 = vld [vmem:[%s219_s15 + $0x10] sm:$0x1]  ;;  %v343_v22 = vpack.c.bf16 %v240_v19, %v239_v18  ;;  %v342_v27 = vpack.c.bf16 %v238_v26, %v237_v25 }
  0x10   : > { %608 = vmatprep.subr.bf16.mxu1 %v653_v3  ;;  %v241_v15 = vpack.c.bf16 %v733_v14, %v731_v13  ;;  %v341_v23 = vpack.c.bf16 %v228_v20, %v228_v20  ;;  %v583_v41 = vld [vmem:[%s779_s2] ss:$0 sm:$0xff] }
  0x12   : > { %601 = vmatpush3.bf16.msra.mxu0 %v244_v11  ;;  %v247_v16 = vshrl.u32 %v241_v15, 16  ;;  %v249_v17 = vshll.u32 %v241_v15, 16  ;;  %v347_v28 = vrot.slane %v241_v15, 1  ;;  %v348_v29 = vrot.slane %v341_v23, 1 }
  0x13   : > { %609 = vmatpush3.bf16.msra.mxu1 %v242_v12  ;;  %614 = vmatprep.subr.bf16.mxu0 %v653_v3 }
  0x14   : > { %v251_v21 = vrot.slane %v249_v17, 1  ;;  %v349_v30 = vsel %vm346_vm2, %v347_v28, %v348_v29 }
  0x16   : > { %611 = vmatmul.mubr.msk.bf16.vlgmr.msra.gmra.mxu1 %vm253_vm1, %v241_v15  ;;  %v252_v24 = vor.u32 %v251_v21, %v247_v16 }
  0x18   : > { %603 = vmatmul.mubr.msk.bf16.vlgmr.msra.gmra.mxu0 %vm253_vm1, %v252_v24 }
  0x19   : > { %615 = vmatpush3.bf16.msra.mxu0 %v343_v22  ;;  %618 = vmatprep.mubr.msk.bf16.mxu0 %vm654_vm0, %v653_v3 }
  0x1a   : > { %616 = vmatprep.subr.bf16.mxu0 %v653_v3 }
  0x1d   : > { %617 = vmatpush3.bf16.msra.mxu0 %v342_v27 }
  0x20   : > { %619 = vmatmul.mubr.msk.bf16.vlgmr.msra.gmra.mxu0 %vm253_vm1, %v349_v30 }
  0xd6   : > { %v334_v31 = vpop.f32.mrf.mxu1 }
  0xd8   : > { %v612_v32 = vpop.f32.mrf.mxu1  ;;  %v291_v34 = vpop.f32.mrf.mxu0 }
  0xd9   : > { %v335_v39 = vadd.f32 %v334_v31, %v291_v34 }
  0xda   : > { %v337_v33 = vpop.f32.mrf.mxu1  ;;  %v604_v36 = vpop.f32.mrf.mxu0 }
  0xdc   : > { %v613_v35 = vpop.f32.mrf.mxu1  ;;  %v294_v37 = vpop.f32.mrf.mxu0 }
  0xdd   : > { %v338_v44 = vadd.f32 %v337_v33, %v294_v37 }
  0xde   : > { %v605_v38 = vpop.f32.mrf.mxu0 }
  0xe0   : > { %v387_v40 = vpop.f32.mrf.mxu0 }
  0xe1   : > { %v394_v42 = vadd.f32 %v387_v40, %v335_v39 }
  0xe2   : > { %v620_v43 = vpop.f32.mrf.mxu0 }
  0xe3   : > { %v403_v45 = vadd.f32 %v583_v41, %v394_v42 }
  0xe4   : > { %v390_v46 = vpop.f32.mrf.mxu0 }
  0xe5   : > { %v405_v47 = vmul.f32 0.70710677, %v403_v45  ;;  %v395_v48 = vadd.f32 %v390_v46, %v338_v44  ;;  %v453_v30 = vmul.f32 0.5, %v403_v45 }
  0xe6   : > { %v621_v49 = vpop.f32.mrf.mxu0 }
  0xe7   : > { %v407_v50 = vand.u32 2147483647, %v405_v47  ;;  %v404_v51 = vadd.f32 %v583_v41, %v395_v48  ;;  %vm447_vm3 = vcmp.ge.f32.partialorder %v405_v47, 0.0 }
  0xe9   : > { %v409_v52 = vmul.f32 0.3275911, %v407_v50  ;;  %v406_v53 = vmul.f32 0.70710677, %v404_v51  ;;  %v435_v58 = vsub.f32 0.0, %v407_v50  ;;  %v454_v35 = vmul.f32 0.5, %v404_v51 }
  0xeb   : > { %v411_v54 = vadd.f32 1.0, %v409_v52  ;;  %v408_v55 = vand.u32 2147483647, %v406_v53  ;;  %v437_v59 = vmul.f32 %v435_v58, %v407_v50  ;;  %vm448_vm4 = vcmp.ge.f32.partialorder %v406_v53, 0.0 }
  0xed   : > { %633 = vrcp.f32 %v411_v54  ;;  %v410_v56 = vmul.f32 0.3275911, %v408_v55  ;;  %v436_v60 = vsub.f32 0.0, %v408_v55  ;;  %v439_v62 = vmul.f32 1.442695, %v437_v59 }
  0xef   : > { %v412_v57 = vadd.f32 1.0, %v410_v56  ;;  %v438_v63 = vmul.f32 %v436_v60, %v408_v55  ;;  %v584_v60 = vld [vmem:[%s780_s3] ss:$0 sm:$0xff] }
  0xf1   : > { %635 = vrcp.f32 %v412_v57  ;;  %v441_v4 = vmul.f32 1.442695, %v438_v63 }
  0xf2   : > { %637 = vpow2.f32 %v439_v62  ;;  %v585_v62 = vld [vmem:[%s781_s4] ss:$0 sm:$0xff] }
  0xf3   : > { %639 = vpow2.f32 %v441_v4 }
  0xfa   : > { %v634_v61 = vpop.eup %633 }
  0xfb   : > { %v417_v0 = vmul.f32 1.0614054, %v634_v61 }
  0xfd   : > { %v419_v1 = vadd.f32 -1.4531521, %v417_v0 }
  0xfe   : > { %v636_v2 = vpop.eup %635 }
  0xff   : > { %v418_v3 = vmul.f32 1.0614054, %v636_v2  ;;  %v421_v5 = vmul.f32 %v634_v61, %v419_v1  ;;  %v638_v20 = vpop.eup %637 }
 0x100   : > { %v640_v25 = vpop.eup %639 }
 0x101   : > { %v420_v6 = vadd.f32 -1.4531521, %v418_v3  ;;  %v423_v7 = vadd.f32 1.4214138, %v421_v5 }
 0x103   : > { %v422_v8 = vmul.f32 %v636_v2, %v420_v6  ;;  %v425_v9 = vmul.f32 %v634_v61, %v423_v7 }
 0x105   : > { %v424_v10 = vadd.f32 1.4214138, %v422_v8  ;;  %v427_v11 = vadd.f32 -0.28449672, %v425_v9 }
 0x107   : > { %v426_v12 = vmul.f32 %v636_v2, %v424_v10  ;;  %v429_v15 = vmul.f32 %v634_v61, %v427_v11 }
 0x109   : > { %v428_v16 = vadd.f32 -0.28449672, %v426_v12  ;;  %v431_v17 = vadd.f32 0.2548296, %v429_v15 }
 0x10b   : > { %v430_v18 = vmul.f32 %v636_v2, %v428_v16  ;;  %v433_v19 = vmul.f32 %v634_v61, %v431_v17 }
 0x10d   : > { %v432_v21 = vadd.f32 0.2548296, %v430_v18  ;;  %v443_v22 = vmul.f32 %v638_v20, %v433_v19 }
 0x10f   : > { %v434_v23 = vmul.f32 %v636_v2, %v432_v21  ;;  %v445_v24 = vsub.f32 1.0, %v443_v22 }
 0x111   : > { %v444_v26 = vmul.f32 %v640_v25, %v434_v23  ;;  %v449_v27 = vsub.f32 0.0, %v445_v24 }
 0x113   : > { %v446_v28 = vsub.f32 1.0, %v444_v26  ;;  %v451_v29 = vsel %vm447_vm3, %v445_v24, %v449_v27 }
 0x114   : > { %v455_v31 = vadd.f32 1.0, %v451_v29 }
 0x115   : > { %v450_v32 = vsub.f32 0.0, %v446_v28 }
 0x116   : > { %v457_v33 = vmul.f32 %v455_v31, %v453_v30 }
 0x117   : > { %v452_v34 = vsel %vm448_vm4, %v446_v28, %v450_v32 }
 0x118   : > { %v456_v36 = vadd.f32 1.0, %v452_v34  ;;  %v462_v37 = vrot.slane %v457_v33, 7 }
 0x11a   : > { %v458_v38 = vmul.f32 %v456_v36, %v454_v35  ;;  %v467_v39 = vadd.f32 %v462_v37, %v731_v13 }
 0x11c   : > { %v463_v40 = vrot.slane %v458_v38, 7  ;;  %v472_v41 = vsel %vm471_vm5, %v467_v39, 0.0 }
 0x11d   : > { %473 = vadd.xlane.f32.xlu0 %v472_v41 }
 0x11e   : > { %v464_v42 = vsel %vm461_vm6, %v462_v37, %v463_v40 }
 0x11f   : > { %v468_v43 = vadd.f32 %v464_v42, %v733_v14 }
 0x121   : > { %v475_v44 = vsel %vm253_vm1, %v468_v43, 0.0 }
 0x122   : > { %476 = vadd.xlane.f32.xlu0 %v475_v44 }
 0x1a6   : > { %v474_v45 = vpop.xlane.xlu0 %473 }
 0x1a7   : > { %v479_v46 = vmul.f32 0.03125, %v474_v45 }
 0x1a9   : > { %v481_v47 = vsub.f32 %v467_v39, %v479_v46 }
 0x1ab   : > { %v477_v48 = vpop.xlane.xlu0 %476  ;;  %v483_v49 = vmul.f32 %v481_v47, %v481_v47 }
 0x1ac   : > { %v480_v50 = vmul.f32 0.03125, %v477_v48 }
 0x1ad   : > { %v485_v51 = vsel %vm471_vm5, %v483_v49, 0.0 }
 0x1ae   : > { %v482_v13 = vsub.f32 %v468_v43, %v480_v50  ;;  %486 = vadd.xlane.f32.xlu1 %v485_v51 }
 0x1b0   : > { %v484_v52 = vmul.f32 %v482_v13, %v482_v13 }
 0x1b2   : > { %v488_v53 = vsel %vm253_vm1, %v484_v52, 0.0 }
 0x1b3   : > { %489 = vadd.xlane.f32.xlu1 %v488_v53 }
 0x237   : > { %v487_v54 = vpop.xlane.xlu1 %486 }
 0x238   : > { %v491_v14 = vmul.f32 0.03125, %v487_v54 }
 0x23a   : > { %v493_v55 = vadd.f32 1e-05, %v491_v14 }
 0x23c   : > { %641 = vrsqrt.f32 %v493_v55  ;;  %v490_v56 = vpop.xlane.xlu1 %489 }
 0x23d   : > { %v492_v57 = vmul.f32 0.03125, %v490_v56 }
 0x23f   : > { %v494_v58 = vadd.f32 1e-05, %v492_v57 }
 0x241   : > { %643 = vrsqrt.f32 %v494_v58 }
 0x249   : > { %v642_v59 = vpop.eup %641 }
 0x24a   : > { %v497_v61 = vmul.f32 %v642_v59, %v481_v47 }
 0x24c   : > { %v505_v63 = vmul.f32 %v584_v60, %v497_v61 }
 0x24e   : > { %v644_v0 = vpop.eup %643  ;;  %v513_v1 = vadd.f32 %v585_v62, %v505_v63 }
 0x24f   : > { %v498_v2 = vmul.f32 %v644_v0, %v482_v13 }
 0x250   : > { %515 = vst.msk [vmem:[%s224_s10 - $0x1] sm:$0xfe] %vm471_vm5, %v513_v1 }
 0x251   : > { %v506_v3 = vmul.f32 %v584_v60, %v498_v2 }
 0x253   : > { %v514_v4 = vadd.f32 %v585_v62, %v506_v3 }
 0x255   : > { %516 = vst.msk [vmem:[%s224_s10 + $0x7] sm:$0xff] %vm253_vm1, %v514_v4 }
 0x256 PF: > { %s15_s18 = sadd.s32 1, %s651_s18  }
 0x257   : > { %p12_p4 = scmp.ge.s32.totalorder %s15_s18, 4  }
 0x259   :  { %14 = sbr.rel (!%p12_p4) target bundleno = 1 (0x1), region = 70 }

// kernel: wav2vec2_encoder_forward.15
= control target key start
LH: loop header
LB: loop body
LE: loop exit
PB: predicated region body
PF: predicated region fallthrough
CT: control target
= control target key end

     0   :  { %vm56_vm0 = vcmask 261120   ;;  %vm261_vm5 = vcmask 523264   ;;  %vm332_vm6 = vcmask 259072   ;;  %s635_s1 = inlined_call_operand.vmem [shape: bf16[32,64], index: 1, kind: input, shape index: {}]   ;;  %s636_s0 = inlined_call_operand.vmem [shape: f32[30,32], index: 0, kind: input, shape index: {}]   ;;  %s637_s3 = inlined_call_operand.vmem [shape: bf16[64,32], index: 3, kind: input, shape index: {}]   ;;  %s638_s2 = inlined_call_operand.vmem [shape: f32[1,64], index: 2, kind: input, shape index: {}]   ;;  %s639_s4 = inlined_call_operand.vmem [shape: f32[1,32], index: 4, kind: input, shape index: {}]   ;;  %s640_s5 = inlined_call_operand.vmem [shape: f32[1,32], index: 5, kind: input, shape index: {}]   ;;  %s641_s6 = inlined_call_operand.vmem [shape: f32[1,32], index: 6, kind: input, shape index: {}]   ;;  %s642_s7 = inlined_call_operand.vmem [shape: f32[30,32], index: 7, kind: output, shape index: {}]  }
   0x1   :  { %v449_v0 = vld [vmem:[%s635_s1 + $0x8] sm:$0xff]   ;;  %v450_v1 = vld [vmem:[%s635_s1] sm:$0xff]   ;;  %v540_v5 = vld [vmem:[%s636_s0 + $0x10] sm:$0xff] }
   0x2   :  { %429 = vmatprep.subr.bf16.mxu0 %v449_v0  ;;  %v528_v2 = vld [vmem:[%s636_s0] sm:$0xff]  ;;  %v533_v3 = vld [vmem:[%s636_s0 + $0x8] sm:$0xff]  ;;  %v545_v6 = vld [vmem:[%s636_s0 + $0x18] sm:$0x3f] }
   0x3   :  { %430 = vmatpush3.bf16.msra.mxu0 %v449_v0  ;;  %v31_v4 = vpack.c.bf16 %v533_v3, %v528_v2  ;;  %v32_v7 = vpack.c.bf16 %v545_v6, %v540_v5  ;;  %v451_v8 = vld [vmem:[%s637_s3 + $0x18] sm:$0xff]   ;;  %v452_v9 = vld [vmem:[%s637_s3 + $0x10] sm:$0xff]   ;;  %v453_v10 = vld [vmem:[%s637_s3 + $0x8] sm:$0xff]  }
   0x4   :  { %431 = vmatprep.subr.bf16.mxu0 %v450_v1  ;;  %437 = vmatprep.subr.bf16.mxu1 %v451_v8  ;;  %v454_v11 = vld [vmem:[%s637_s3] sm:$0xff]  }
   0x5   :  { %433 = vmatprep.mubr.msk.bf16.mxu0 %vm56_vm0, %v31_v4  ;;  %438 = vmatpush3.bf16.msra.mxu1 %v451_v8  ;;  %v405_v12 = vld [vmem:[%s638_s2] ss:$0 sm:$0xff] }
   0x6   :  { %439 = vmatprep.subr.bf16.mxu1 %v452_v9 }
   0x7   :  { %432 = vmatpush3.bf16.msra.mxu0 %v450_v1 }
   0x9   :  { %440 = vmatpush3.bf16.msra.mxu1 %v452_v9 }
   0xa   :  { %434 = vmatmul.mubr.msk.bf16.vlgmr.msra.gmra.mxu0 %vm56_vm0, %v32_v7  ;;  %441 = vmatprep.subr.bf16.mxu1 %v453_v10 }
   0xd   :  { %442 = vmatpush3.bf16.msra.mxu1 %v453_v10 }
   0xe   :  { %443 = vmatprep.subr.bf16.mxu1 %v454_v11 }
  0x11   :  { %444 = vmatpush3.bf16.msra.mxu1 %v454_v11 }
  0xca   :  { %v435_v13 = vpop.f32.mrf.mxu0 }
  0xcb   :  { %v566_v14 = vadd.f32 %v435_v13, %v405_v12 }
  0xcc   :  { %v97_v15 = vpop.f32.mrf.mxu0 }
  0xcd   :  { %v569_v16 = vmul.f32 0.70710677, %v566_v14  ;;  %v571_v17 = vadd.f32 %v405_v12, %v97_v15 }
  0xce   :  { %v436_v18 = vpop.f32.mrf.mxu0 }
  0xcf   :  { %v118_v19 = vand.u32 2147483647, %v569_v16  ;;  %v575_v20 = vmul.f32 0.70710677, %v571_v17  ;;  %v577_v21 = vadd.f32 %v436_v18, %v405_v12  ;;  %vm198_vm2 = vcmp.ge.f32.partialorder %v569_v16, 0.0 }
  0xd0   :  { %v100_v22 = vpop.f32.mrf.mxu0 }
  0xd1   :  { %v122_v23 = vmul.f32 0.3275911, %v118_v19  ;;  %v116_v24 = vand.u32 2147483647, %v575_v20  ;;  %v581_v25 = vmul.f32 0.70710677, %v577_v21  ;;  %v583_v26 = vadd.f32 %v405_v12, %v100_v22 }
  0xd2   :  { %v174_v37 = vsub.f32 0.0, %v118_v19  ;;  %vm196_vm1 = vcmp.ge.f32.partialorder %v575_v20, 0.0  ;;  %v208_v20 = vmul.f32 0.5, %v571_v17 }
  0xd3   :  { %v126_v27 = vadd.f32 1.0, %v122_v23  ;;  %v120_v28 = vmul.f32 0.3275911, %v116_v24  ;;  %v119_v29 = vand.u32 2147483647, %v581_v25  ;;  %v172_v38 = vsub.f32 0.0, %v116_v24 }
  0xd4   :  { %v587_v30 = vmul.f32 0.70710677, %v583_v26  ;;  %v178_v39 = vmul.f32 %v174_v37, %v118_v19  ;;  %vm199_vm3 = vcmp.ge.f32.partialorder %v581_v25, 0.0  ;;  %v210_v25 = vmul.f32 0.5, %v566_v14 }
  0xd5   :  { %455 = vrcp.f32 %v126_v27  ;;  %v124_v31 = vadd.f32 1.0, %v120_v28  ;;  %v123_v32 = vmul.f32 0.3275911, %v119_v29  ;;  %v175_v40 = vsub.f32 0.0, %v119_v29 }
  0xd6   :  { %v117_v33 = vand.u32 2147483647, %v587_v30  ;;  %v176_v42 = vmul.f32 %v172_v38, %v116_v24  ;;  %v184_v44 = vmul.f32 1.442695, %v178_v39  ;;  %vm197_vm4 = vcmp.ge.f32.partialorder %v587_v30, 0.0 }
  0xd7   :  { %457 = vrcp.f32 %v124_v31  ;;  %v127_v34 = vadd.f32 1.0, %v123_v32  ;;  %v179_v46 = vmul.f32 %v175_v40, %v119_v29 }
  0xd8   :  { %v121_v35 = vmul.f32 0.3275911, %v117_v33  ;;  %v173_v45 = vsub.f32 0.0, %v117_v33  ;;  %v180_v49 = vmul.f32 1.442695, %v176_v42 }
  0xd9   :  { %459 = vrcp.f32 %v127_v34  ;;  %v186_v55 = vmul.f32 1.442695, %v179_v46 }
  0xda   :  { %v125_v36 = vadd.f32 1.0, %v121_v35  ;;  %v177_v53 = vmul.f32 %v173_v45, %v117_v33 }
  0xdc   :  { %461 = vrcp.f32 %v125_v36  ;;  %v182_v62 = vmul.f32 1.442695, %v177_v53 }
  0xdd   :  { %463 = vpow2.f32 %v184_v44 }
  0xde   :  { %465 = vpow2.f32 %v180_v49 }
  0xdf   :  { %467 = vpow2.f32 %v186_v55 }
  0xe0   :  { %469 = vpow2.f32 %v182_v62 }
  0xe2   :  { %v456_v41 = vpop.eup %455 }
  0xe3   :  { %v138_v43 = vmul.f32 1.0614054, %v456_v41 }
  0xe4   :  { %v458_v47 = vpop.eup %457 }
  0xe5   :  { %v142_v48 = vadd.f32 -1.4531521, %v138_v43  ;;  %v136_v50 = vmul.f32 1.0614054, %v458_v47 }
  0xe6   :  { %v460_v51 = vpop.eup %459 }
  0xe7   :  { %v146_v52 = vmul.f32 %v456_v41, %v142_v48  ;;  %v139_v54 = vmul.f32 1.0614054, %v460_v51  ;;  %v140_v56 = vadd.f32 -1.4531521, %v136_v50 }
  0xe9   :  { %v150_v57 = vadd.f32 1.4214138, %v146_v52  ;;  %v462_v58 = vpop.eup %461  ;;  %v143_v59 = vadd.f32 -1.4531521, %v139_v54  ;;  %v144_v60 = vmul.f32 %v458_v47, %v140_v56 }
  0xea   :  { %v137_v63 = vmul.f32 1.0614054, %v462_v58  ;;  %v464_v27 = vpop.eup %463 }
  0xeb   :  { %v154_v61 = vmul.f32 %v456_v41, %v150_v57  ;;  %v147_v0 = vmul.f32 %v460_v51, %v143_v59  ;;  %v148_v1 = vadd.f32 1.4214138, %v144_v60  ;;  %v466_v35 = vpop.eup %465  ;;  %v211_v59 = vmul.f32 0.5, %v577_v21  ;;  %v410_v21 = vld [vmem:[%s639_s4] ss:$0 sm:$0xff] }
  0xec   :  { %v141_v7 = vadd.f32 -1.4531521, %v137_v63  ;;  %v468_v40 = vpop.eup %467 }
  0xed   :  { %v158_v4 = vadd.f32 -0.28449672, %v154_v61  ;;  %v151_v8 = vadd.f32 1.4214138, %v147_v0  ;;  %v152_v9 = vmul.f32 %v458_v47, %v148_v1  ;;  %v470_v46 = vpop.eup %469  ;;  %v209_v61 = vmul.f32 0.5, %v583_v26 }
  0xee   :  { %v145_v11 = vmul.f32 %v462_v58, %v141_v7 }
  0xef   :  { %v162_v10 = vmul.f32 %v456_v41, %v158_v4  ;;  %v155_v12 = vmul.f32 %v460_v51, %v151_v8  ;;  %v156_v13 = vadd.f32 -0.28449672, %v152_v9 }
  0xf0   :  { %v149_v18 = vadd.f32 1.4214138, %v145_v11 }
  0xf1   :  { %v166_v15 = vadd.f32 0.2548296, %v162_v10  ;;  %v159_v19 = vadd.f32 -0.28449672, %v155_v12  ;;  %v160_v22 = vmul.f32 %v458_v47, %v156_v13 }
  0xf2   :  { %v153_v24 = vmul.f32 %v462_v58, %v149_v18 }
  0xf3   :  { %v170_v23 = vmul.f32 %v456_v41, %v166_v15  ;;  %v163_v28 = vmul.f32 %v460_v51, %v159_v19  ;;  %v164_v29 = vadd.f32 0.2548296, %v160_v22 }
  0xf4   :  { %v157_v32 = vadd.f32 -0.28449672, %v153_v24 }
  0xf5   :  { %v190_v31 = vmul.f32 %v464_v27, %v170_v23  ;;  %v167_v33 = vadd.f32 0.2548296, %v163_v28  ;;  %v168_v34 = vmul.f32 %v458_v47, %v164_v29 }
  0xf6   :  { %v161_v36 = vmul.f32 %v462_v58, %v157_v32 }
  0xf7   :  { %v194_v37 = vsub.f32 1.0, %v190_v31  ;;  %v171_v38 = vmul.f32 %v460_v51, %v167_v33  ;;  %v188_v39 = vmul.f32 %v466_v35, %v168_v34 }
  0xf8   :  { %v165_v42 = vadd.f32 0.2548296, %v161_v36 }
  0xf9   :  { %v191_v43 = vmul.f32 %v468_v40, %v171_v38  ;;  %v192_v44 = vsub.f32 1.0, %v188_v39  ;;  %v202_v41 = vsub.f32 0.0, %v194_v37 }
  0xfa   :  { %v169_v45 = vmul.f32 %v462_v58, %v165_v42 }
  0xfb   :  { %v195_v48 = vsub.f32 1.0, %v191_v43  ;;  %v200_v49 = vsub.f32 0.0, %v192_v44  ;;  %v206_v53 = vsel %vm198_vm2, %v194_v37, %v202_v41 }
  0xfc   :  { %v189_v50 = vmul.f32 %v470_v46, %v169_v45  ;;  %v214_v58 = vadd.f32 1.0, %v206_v53 }
  0xfd   :  { %v203_v52 = vsub.f32 0.0, %v195_v48  ;;  %v204_v51 = vsel %vm196_vm1, %v192_v44, %v200_v49 }
  0xfe   :  { %v193_v47 = vsub.f32 1.0, %v189_v50  ;;  %v212_v57 = vadd.f32 1.0, %v204_v51  ;;  %v218_v1 = vmul.f32 %v214_v58, %v210_v25 }
  0xff   :  { %v207_v54 = vsel %vm199_vm3, %v195_v48, %v203_v52 }
 0x100   :  { %v215_v55 = vadd.f32 1.0, %v207_v54  ;;  %v201_v56 = vsub.f32 0.0, %v193_v47  ;;  %v216_v63 = vmul.f32 %v212_v57, %v208_v20  ;;  %v417_v57 = vld [vmem:[%s640_s5] ss:$0 sm:$0xff] }
 0x102   :  { %v205_v60 = vsel %vm197_vm4, %v193_v47, %v201_v56  ;;  %v219_v62 = vmul.f32 %v215_v55, %v211_v59  ;;  %v418_v59 = vld [vmem:[%s641_s6] ss:$0 sm:$0xff] }
 0x103   :  { %v213_v16 = vadd.f32 1.0, %v205_v60 }
 0x104   :  { %v221_v7 = vpack.c.bf16 %v219_v62, %v218_v1 }
 0x105   :  { %v217_v0 = vmul.f32 %v213_v16, %v209_v61 }
 0x107   :  { %v220_v4 = vpack.c.bf16 %v217_v0, %v216_v63 }
 0x109   :  { %445 = vmatprep.mubr.msk.bf16.mxu1 %vm261_vm5, %v220_v4 }
 0x10a   :  { %446 = vmatmul.mubr.msk.bf16.vlgmr.msra.gmra.mxu1 %vm261_vm5, %v221_v7 }
 0x1ca   :  { %v447_v30 = vpop.f32.mrf.mxu1 }
 0x1cb   :  { %v311_v17 = vadd.f32 %v447_v30, %v410_v21 }
 0x1cc   :  { %v302_v8 = vpop.f32.mrf.mxu1 }
 0x1cd   :  { %v303_v26 = vadd.f32 %v410_v21, %v302_v8  ;;  %v319_v9 = vadd.f32 %v311_v17, %v540_v5 }
 0x1ce   :  { %v448_v14 = vpop.f32.mrf.mxu1 }
 0x1cf   :  { %v314_v10 = vadd.f32 %v448_v14, %v410_v21  ;;  %v329_v11 = vsel %vm56_vm0, %v319_v9, 0.0  ;;  %v317_v12 = vadd.f32 %v303_v26, %v528_v2 }
 0x1d0   :  { %330 = vadd.xlane.f32.xlu1 %v329_v11  ;;  %v305_v13 = vpop.f32.mrf.mxu1 }
 0x1d1   :  { %v306_v15 = vadd.f32 %v410_v21, %v305_v13  ;;  %v323_v18 = vsel %vm56_vm0, %v317_v12, 0.0  ;;  %v320_v19 = vadd.f32 %v314_v10, %v545_v6 }
 0x1d2   :  { %324 = vadd.xlane.f32.xlu0 %v323_v18 }
 0x1d3   :  { %v333_v22 = vsel %vm332_vm6, %v320_v19, 0.0  ;;  %v318_v23 = vadd.f32 %v306_v15, %v533_v3 }
 0x1d4   :  { %334 = vadd.xlane.f32.xlu1 %v333_v22 }
 0x1d5   :  { %v326_v5 = vsel %vm56_vm0, %v318_v23, 0.0 }
 0x1d6   :  { %327 = vadd.xlane.f32.xlu0 %v326_v5 }
 0x259   :  { %v331_v24 = vpop.xlane.xlu1 %330 }
 0x25a   :  { %v339_v27 = vmul.f32 0.03125, %v331_v24 }
 0x25b   :  { %v325_v2 = vpop.xlane.xlu0 %324 }
 0x25c   :  { %v337_v28 = vmul.f32 0.03125, %v325_v2  ;;  %v343_v31 = vsub.f32 %v319_v9, %v339_v27 }
 0x25d   :  { %v335_v29 = vpop.xlane.xlu1 %334 }
 0x25e   :  { %v341_v32 = vsub.f32 %v317_v12, %v337_v28  ;;  %v340_v33 = vmul.f32 0.03125, %v335_v29  ;;  %v347_v3 = vmul.f32 %v343_v31, %v343_v31 }
 0x25f   :  { %v328_v34 = vpop.xlane.xlu0 %327 }
 0x260   :  { %v338_v35 = vmul.f32 0.03125, %v328_v34  ;;  %v345_v6 = vmul.f32 %v341_v32, %v341_v32  ;;  %v344_v36 = vsub.f32 %v320_v19, %v340_v33  ;;  %v355_v40 = vsel %vm56_vm0, %v347_v3, 0.0 }
 0x262   :  { %v342_v37 = vsub.f32 %v318_v23, %v338_v35  ;;  %v349_v38 = vsel %vm56_vm0, %v345_v6, 0.0  ;;  %v348_v43 = vmul.f32 %v344_v36, %v344_v36 }
 0x263   :  { %350 = vadd.xlane.f32.xlu0 %v349_v38 }
 0x264   :  { %v346_v39 = vmul.f32 %v342_v37, %v342_v37  ;;  %v358_v44 = vsel %vm332_vm6, %v348_v43, 0.0 }
 0x266   :  { %v352_v42 = vsel %vm56_vm0, %v346_v39, 0.0 }
 0x267   :  { %356 = vadd.xlane.f32.xlu0 %v355_v40  ;;  %353 = vadd.xlane.f32.xlu1 %v352_v42 }
 0x26b   :  { %359 = vadd.xlane.f32.xlu1 %v358_v44 }
 0x2ec   :  { %v351_v45 = vpop.xlane.xlu0 %350 }
 0x2ed   :  { %v361_v46 = vmul.f32 0.03125, %v351_v45 }
 0x2ef   :  { %v365_v41 = vadd.f32 1e-05, %v361_v46 }
 0x2f0   :  { %v354_v48 = vpop.xlane.xlu1 %353  ;;  %v357_v49 = vpop.xlane.xlu0 %356 }
 0x2f1   :  { %471 = vrsqrt.f32 %v365_v41  ;;  %v362_v50 = vmul.f32 0.03125, %v354_v48  ;;  %v363_v52 = vmul.f32 0.03125, %v357_v49 }
 0x2f3   :  { %v366_v47 = vadd.f32 1e-05, %v362_v50  ;;  %v367_v51 = vadd.f32 1e-05, %v363_v52 }
 0x2f4   :  { %v360_v53 = vpop.xlane.xlu1 %359 }
 0x2f5   :  { %473 = vrsqrt.f32 %v366_v47  ;;  %v364_v54 = vmul.f32 0.03125, %v360_v53 }
 0x2f6   :  { %475 = vrsqrt.f32 %v367_v51 }
 0x2f7   :  { %v368_v55 = vadd.f32 1e-05, %v364_v54 }
 0x2f9   :  { %477 = vrsqrt.f32 %v368_v55 }
 0x2fe   :  { %v472_v56 = vpop.eup %471 }
 0x2ff   :  { %v373_v58 = vmul.f32 %v472_v56, %v341_v32 }
 0x301   :  { %v383_v60 = vmul.f32 %v417_v57, %v373_v58 }
 0x302   :  { %v474_v20 = vpop.eup %473 }
 0x303   :  { %v476_v61 = vpop.eup %475  ;;  %v393_v16 = vadd.f32 %v418_v59, %v383_v60  ;;  %v374_v25 = vmul.f32 %v474_v20, %v342_v37 }
 0x304   :  { %v375_v62 = vmul.f32 %v476_v61, %v343_v31 }
 0x305   :  { %397 = vst.msk [vmem:[%s642_s7] sm:$0xff] %vm56_vm0, %v393_v16  ;;  %v384_v63 = vmul.f32 %v417_v57, %v374_v25 }
 0x306   :  { %v478_v0 = vpop.eup %477  ;;  %v385_v1 = vmul.f32 %v417_v57, %v375_v62 }
 0x307   :  { %v394_v4 = vadd.f32 %v418_v59, %v384_v63  ;;  %v376_v7 = vmul.f32 %v478_v0, %v344_v36 }
 0x308   :  { %v395_v21 = vadd.f32 %v418_v59, %v385_v1 }
 0x309   :  { %398 = vst.msk [vmem:[%s642_s7 + $0x8] sm:$0xff] %vm56_vm0, %v394_v4  ;;  %v386_v30 = vmul.f32 %v417_v57, %v376_v7 }
 0x30a   :  { %399 = vst.msk [vmem:[%s642_s7 + $0x10] sm:$0xff] %vm56_vm0, %v395_v21 }
 0x30b   :  { %v396_v17 = vadd.f32 %v418_v59, %v386_v30 }
 0x30d   :  { %400 = vst.msk [vmem:[%s642_s7 + $0x18] sm:$0x3f] %vm332_vm6, %v396_v17 }

// kernel: wav2vec2_encoder_forward.14
= control target key start
LH: loop header
LB: loop body
LE: loop exit
PB: predicated region body
PF: predicated region fallthrough
CT: control target
= control target key end

     0   :  { %s1426_s24 = smov 0   ;;  %s1597_s0 = inlined_call_operand.vmem [shape: f32[2,15,32], index: 0, kind: input, shape index: {}]   ;;  %s1598_s1 = inlined_call_operand.vmem [shape: bf16[32,96], index: 1, kind: input, shape index: {}]   ;;  %s1599_s2 = inlined_call_operand.vmem [shape: f32[1,96], index: 2, kind: input, shape index: {}]   ;;  %s1600_s3 = inlined_call_operand.vmem [shape: bf16[32,32], index: 3, kind: input, shape index: {}]   ;;  %s1601_s4 = inlined_call_operand.vmem [shape: f32[1,32], index: 4, kind: input, shape index: {}]   ;;  %s1602_s5 = inlined_call_operand.vmem [shape: f32[1,32], index: 5, kind: input, shape index: {}]   ;;  %s1603_s6 = inlined_call_operand.vmem [shape: f32[1,32], index: 6, kind: input, shape index: {}]   ;;  %s1604_s7 = inlined_call_operand.vmem [shape: f32[2,15,32], index: 7, kind: output, shape index: {}]  }
   0x1 LB: > { %s1165_s25 = sadd.s32 4294967295, %s1370_s24   ;;  %p1169_p0 = scmp.ge.s32.totalorder %s1370_s24, 1  ;;  %s1370_s24 = sphi %s1426_s24, %s17_s24  }
   0x2   : > { %p237_p1 = scmp.lt.s32.totalorder %s1370_s24, 3 }
   0x4   : > { %p238_p2 = pnand %p1169_p0, %p237_p1 }
   0x5   : > { %p269_p3 = scmp.lt.s32.totalorder (!%p238_p2), %s1165_s25, 1  ;;  %s1374_s13 = smov (!%p238_p2), 120  }
   0x6   : > { %241 = sbr.rel (%p238_p2) target bundleno = 2811 (0xafb), region = 48  ;;  %s1375_s14 = smov (!%p238_p2), 96  }
   0x7   : > { %s1376_s15 = smov (!%p238_p2), 88   ;;  %s1377_s16 = smov (!%p238_p2), 56  }
   0x8   : > { %s1378_s17 = smov (!%p238_p2), 64   ;;  %s1379_s18 = smov (!%p238_p2), 80  }
   0x9   : > { %s1380_s19 = smov (!%p238_p2), 112   ;;  %s1382_s26 = smov (!%p238_p2), 72  }
   0xa   : > { %s1383_s27 = smov (!%p238_p2), 48   ;;  %s1384_s28 = smov (!%p238_p2), 104  }
   0xb   : > { %v1326_v0 = vld [vmem:[%s1598_s1 + $0x8] sm:$0xff]   ;;  %v1372_v1 = vmov 0.0   ;;  %v1327_v2 = vld [vmem:[%s1598_s1] sm:$0xff]   ;;  %vm1373_vm0 = vmmov 0   ;;  %s1606_s25 = smov (!%p269_p3, %s1165_s25), 1  ;;  %vm306_vm1 = vcmask 261120  }
   0xc   : > { %1224 = vmatprep.subr.bf16.mxu0 %v1372_v1  ;;  %1232 = vmatprep.subr.bf16.mxu1 %v1372_v1  ;;  %s1195_s30 = sshll.u32 %s1606_s25, 4  ;;  %v1174_v7 = vld [vmem:[%s1599_s2] ss:$0 sm:$0xff]  ;;  %vm359_vm2 = vcmask 64512   ;;  %vm407_vm3 = vcmask 121856   ;;  %vm411_vm4 = vcmask 120832  }
   0xd   : > { %1225 = vmatpush3.bf16.msra.mxu0 %v1326_v0  ;;  %1228 = vmatprep.mubr.msk.bf16.mxu0 %vm1373_vm0, %v1372_v1  ;;  %s273_s10 = scalar_lea.vmem %s1597_s0, %s1195_s30  ;;  %vm437_vm5 = vcmask 1046528   ;;  %vm438_vm6 = vcmask 1047552   ;;  %v1381_v53 = vmov 65535   ;;  %vm613_vm7 = vcmask 1043456   ;;  %s1385_s9 = smov 40  }
   0xe   : > { %1226 = vmatprep.subr.bf16.mxu0 %v1372_v1  ;;  %1234 = vmatprep.mubr.msk.bf16.mxu1 %vm1373_vm0, %v1372_v1  ;;  %v1456_v3 = vld [vmem:[%s273_s10] sm:$0xff]  ;;  %v1458_v4 = vld [vmem:[%s273_s10 + $0x8] sm:$0x7f]  ;;  %v439_v54 = vsel %vm437_vm5, 4294967295, %v1381_v53  ;;  %vm1067_vm8 = vcmask 260096   ;;  %s278_s20 = scalar_lea.vmem %s1604_s7, %s1195_s30 }
   0xf   : > { %v282_v5 = vpack.c.bf16 %v1458_v4, %v1456_v3  ;;  %v1496_v56 = vsel %vm438_vm6, %v439_v54, 0 }
  0x11   : > { %1227 = vmatpush3.bf16.msra.mxu0 %v1327_v2 }
  0x12   : > { %1238 = vmatprep.subr.bf16.mxu0 %v1372_v1 }
  0x14   : > { %1229 = vmatmul.mubr.msk.bf16.vlgmr.msra.gmra.mxu0 %vm306_vm1, %v282_v5 }
  0x15   : > { %1240 = vmatprep.mubr.msk.bf16.mxu0 %vm1373_vm0, %v1372_v1 }
  0xd4   : > { %v344_v6 = vpop.f32.mrf.mxu0 }
  0xd5   : > { %v345_v10 = vadd.f32 %v1174_v7, %v344_v6 }
  0xd6   : > { %v1230_v8 = vpop.f32.mrf.mxu0 }
  0xd8   : > { %v347_v9 = vpop.f32.mrf.mxu0 }
  0xd9   : > { %v348_v11 = vadd.f32 %v1174_v7, %v347_v9 }
  0xda   : > { %v1231_v12 = vpop.f32.mrf.mxu0 }
  0xdb   : > { %v1468_v13 = vpack.c.bf16 %v348_v11, %v345_v10  ;;  %v351_v11 = vld [vmem:[%s1600_s3] sm:$0xf] }
  0xdc   : > { %v662_v12 = vsel %vm613_vm7, %v351_v11, 0 }
  0xdd   : > { %486 = vrot.lane.b32.xlu1 %v1468_v13, %s1374_s13  ;;  %357 = vrot.lane.b32.xlu0 %v1468_v13, %s1375_s14 }
  0xe1   : > { %488 = vrot.lane.b32.xlu0 %v1468_v13, %s1376_s15 }
 0x14f   : > { %v358_v14 = vpop.permute.xlu0 %357  ;;  %v487_v18 = vpop.permute.xlu1 %486 }
 0x150   : > { %v364_v15 = vsel %vm359_vm2, %v358_v14, 0  ;;  %v352_v14 = vld [vmem:[%s1600_s3 + $0x4] sm:$0xf] }
 0x151   : > { %1233 = vmatpush3.bf16.xpose.msra.mxu1 %v364_v15  ;;  %v615_v15 = vsel %vm613_vm7, %v352_v14, 0 }
 0x152   : > { %1244 = vmatprep.subr.bf16.mxu1 %v1372_v1 }
 0x153   : > { %v489_v16 = vpop.permute.xlu0 %488 }
 0x154   : > { %v494_v17 = vsel %vm359_vm2, %v489_v16, 0 }
 0x158   : > { %1235 = vmatmul.mubr.msk.bf16.vlgmr.msra.gmra.mxu1 %vm359_vm2, %v1468_v13 }
 0x159   : > { %1245 = vmatpush3.bf16.xpose.msra.mxu1 %v494_v17  ;;  %1246 = vmatprep.mubr.msk.bf16.mxu1 %vm1373_vm0, %v1372_v1 }
 0x15a   : > { %1256 = vmatprep.subr.bf16.mxu1 %v1372_v1 }
 0x160   : > { %1247 = vmatmul.mubr.msk.bf16.vlgmr.msra.gmra.mxu1 %vm359_vm2, %v487_v18 }
 0x161   : > { %1258 = vmatprep.mubr.msk.bf16.mxu1 %vm1373_vm0, %v1372_v1  ;;  %1257 = vmatpush3.bf16.msra.mxu1 %v615_v15 }
 0x162   : > { %1268 = vmatprep.subr.bf16.mxu1 %v1372_v1 }
 0x218   : > { %v400_v19 = vpop.f32.mrf.mxu1 }
 0x219   : > { %v408_v20 = vsel %vm407_vm3, %v400_v19, -inf }
 0x21a   : > { %409 = vmax.xlane.f32.xlu1 %v408_v20  ;;  %v1236_v21 = vpop.f32.mrf.mxu1 }
 0x21c   : > { %v403_v22 = vpop.f32.mrf.mxu1 }
 0x21d   : > { %v412_v23 = vsel %vm411_vm4, %v403_v22, -inf }
 0x21e   : > { %413 = vmax.xlane.f32.xlu0 %v412_v23  ;;  %v1237_v24 = vpop.f32.mrf.mxu1 }
 0x220   : > { %v530_v25 = vpop.f32.mrf.mxu1 }
 0x221   : > { %v537_v26 = vsel %vm407_vm3, %v530_v25, -inf }
 0x222   : > { %538 = vmax.xlane.f32.xlu0 %v537_v26  ;;  %v1248_v27 = vpop.f32.mrf.mxu1 }
 0x224   : > { %v533_v28 = vpop.f32.mrf.mxu1 }
 0x225   : > { %v540_v29 = vsel %vm411_vm4, %v533_v28, -inf }
 0x226   : > { %541 = vmax.xlane.f32.xlu1 %v540_v29  ;;  %v1249_v30 = vpop.f32.mrf.mxu1 }
 0x2a3   : > { %v410_v31 = vpop.xlane.xlu1 %409 }
 0x2a4   : > { %v415_v32 = vsub.f32 %v400_v19, %v410_v31 }
 0x2a6   : > { %v417_v33 = vmul.f32 1.442695, %v415_v32 }
 0x2a7   : > { %v414_v34 = vpop.xlane.xlu0 %413 }
 0x2a8   : > { %1328 = vpow2.f32 %v417_v33  ;;  %v416_v35 = vsub.f32 %v403_v22, %v414_v34 }
 0x2aa   : > { %v419_v36 = vmul.f32 1.442695, %v416_v35 }
 0x2ab   : > { %v539_v37 = vpop.xlane.xlu0 %538 }
 0x2ac   : > { %1330 = vpow2.f32 %v419_v36  ;;  %v543_v38 = vsub.f32 %v530_v25, %v539_v37 }
 0x2ae   : > { %v545_v39 = vmul.f32 1.442695, %v543_v38 }
 0x2af   : > { %v542_v40 = vpop.xlane.xlu1 %541 }
 0x2b0   : > { %1332 = vpow2.f32 %v545_v39  ;;  %v544_v41 = vsub.f32 %v533_v28, %v542_v40 }
 0x2b2   : > { %v547_v42 = vmul.f32 1.442695, %v544_v41 }
 0x2b4   : > { %1334 = vpow2.f32 %v547_v42 }
 0x2b5   : > { %v1329_v43 = vpop.eup %1328 }
 0x2b6   : > { %v421_v44 = vsel %vm407_vm3, %v1329_v43, 0.0 }
 0x2b7   : > { %422 = vadd.xlane.f32.xlu0 %v421_v44 }
 0x2b9   : > { %v1331_v45 = vpop.eup %1330 }
 0x2ba   : > { %v424_v46 = vsel %vm411_vm4, %v1331_v45, 0.0 }
 0x2bb   : > { %425 = vadd.xlane.f32.xlu1 %v424_v46 }
 0x2bd   : > { %v1333_v47 = vpop.eup %1332 }
 0x2be   : > { %v549_v48 = vsel %vm407_vm3, %v1333_v47, 0.0 }
 0x2bf   : > { %550 = vadd.xlane.f32.xlu0 %v549_v48 }
 0x2c1   : > { %v1335_v49 = vpop.eup %1334 }
 0x2c2   : > { %v552_v50 = vsel %vm411_vm4, %v1335_v49, 0.0 }
 0x2c3   : > { %553 = vadd.xlane.f32.xlu1 %v552_v50 }
 0x2d4   : > { %560 = vrot.lane.b32.xlu1 %v1468_v13, %s1377_s16 }
 0x2d5   : > { %432 = vrot.lane.b32.xlu0 %v1468_v13, %s1378_s17 }
 0x2d8   : > { %707 = vrot.lane.b32.xlu1 %v1468_v13, %s1379_s18 }
 0x2d9   : > { %705 = vrot.lane.b32.xlu0 %v1468_v13, %s1380_s19 }
 0x340   : > { %v423_v51 = vpop.xlane.xlu0 %422 }
 0x341   : > { %1336 = vrcp.f32 %v423_v51 }
 0x344   : > { %v426_v52 = vpop.xlane.xlu1 %425 }
 0x345   : > { %1338 = vrcp.f32 %v426_v52 }
 0x348   : > { %v551_v55 = vpop.xlane.xlu0 %550 }
 0x349   : > { %1340 = vrcp.f32 %v551_v55 }
 0x34c   : > { %v554_v57 = vpop.xlane.xlu1 %553  ;;  %v433_v58 = vpop.permute.xlu0 %432 }
 0x34d   : > { %1342 = vrcp.f32 %v554_v57  ;;  %v442_v59 = vand.u32 %v1496_v56, %v433_v58 }
 0x34e   : > { %v1337_v60 = vpop.eup %1336 }
 0x34f   : > { %1239 = vmatpush3.bf16.msra.mxu0 %v442_v59  ;;  %v429_v63 = vmul.f32 %v1337_v60, %v1329_v43 }
 0x350   : > { %1250 = vmatprep.subr.bf16.mxu0 %v1372_v1  ;;  %v561_v62 = vpop.permute.xlu1 %560  ;;  %v706_v28 = vpop.permute.xlu0 %705 }
 0x351   : > { %v566_v5 = vand.u32 %v561_v62, %v1496_v56 }
 0x352   : > { %v1339_v61 = vpop.eup %1338 }
 0x353   : > { %v430_v0 = vmul.f32 %v1339_v61, %v1331_v45 }
 0x354   : > { %v708_v23 = vpop.permute.xlu1 %707 }
 0x355   : > { %v431_v2 = vpack.c.bf16 %v430_v0, %v429_v63  ;;  %v713_v27 = vsel %vm359_vm2, %v708_v23, 0 }
 0x356   : > { %v1341_v6 = vpop.eup %1340 }
 0x357   : > { %1241 = vmatmul.mubr.msk.bf16.vlgmr.msra.gmra.mxu0 %vm407_vm3, %v431_v2  ;;  %v557_v8 = vmul.f32 %v1341_v6, %v1333_v47 }
 0x358   : > { %1251 = vmatpush3.bf16.msra.mxu0 %v566_v5  ;;  %1252 = vmatprep.mubr.msk.bf16.mxu0 %vm1373_vm0, %v1372_v1 }
 0x359   : > { %1262 = vmatprep.subr.bf16.mxu0 %v1372_v1 }
 0x35a   : > { %v1343_v7 = vpop.eup %1342 }
 0x35b   : > { %v558_v9 = vmul.f32 %v1343_v7, %v1335_v49  ;;  %v353_v7 = vld [vmem:[%s1600_s3 + $0x8] sm:$0xf] }
 0x35d   : > { %v559_v10 = vpack.c.bf16 %v558_v9, %v557_v8  ;;  %v833_v8 = vsel %vm613_vm7, %v353_v7, 0 }
 0x35f   : > { %1253 = vmatmul.mubr.msk.bf16.vlgmr.msra.gmra.mxu0 %vm407_vm3, %v559_v10 }
 0x360   : > { %1264 = vmatprep.mubr.msk.bf16.mxu0 %vm1373_vm0, %v1372_v1  ;;  %1263 = vmatpush3.bf16.msra.mxu0 %v662_v12 }
 0x361   : > { %1274 = vmatprep.subr.bf16.mxu0 %v1372_v1 }
 0x417   : > { %v478_v16 = vpop.f32.mrf.mxu0 }
 0x419   : > { %v1242_v17 = vpop.f32.mrf.mxu0 }
 0x41b   : > { %v481_v18 = vpop.f32.mrf.mxu0 }
 0x41c   : > { %v485_v19 = vpack.c.bf16 %v481_v18, %v478_v16 }
 0x41d   : > { %v1243_v20 = vpop.f32.mrf.mxu0 }
 0x41e   : > { %1265 = vmatmul.mubr.msk.bf16.vlgmr.msra.gmra.mxu0 %vm359_vm2, %v485_v19 }
 0x41f   : > { %v602_v21 = vpop.f32.mrf.mxu0  ;;  %1276 = vmatprep.mubr.msk.bf16.mxu0 %vm1373_vm0, %v1372_v1 }
 0x421   : > { %v1254_v22 = vpop.f32.mrf.mxu0 }
 0x423   : > { %v605_v24 = vpop.f32.mrf.mxu0 }
 0x424   : > { %v609_v25 = vpack.c.bf16 %v605_v24, %v602_v21 }
 0x425   : > { %v1255_v26 = vpop.f32.mrf.mxu0 }
 0x426   : > { %1259 = vmatmul.mubr.msk.bf16.vlgmr.msra.gmra.mxu1 %vm359_vm2, %v609_v25 }
 0x427   : > { %1269 = vmatpush3.bf16.xpose.msra.mxu1 %v713_v27  ;;  %1270 = vmatprep.mubr.msk.bf16.mxu1 %vm1373_vm0, %v1372_v1 }
 0x428   : > { %1280 = vmatprep.subr.bf16.mxu1 %v1372_v1 }
 0x42e   : > { %1271 = vmatmul.mubr.msk.bf16.vlgmr.msra.gmra.mxu1 %vm359_vm2, %v706_v28 }
 0x42f   : > { %1282 = vmatprep.mubr.msk.bf16.mxu1 %vm1373_vm0, %v1372_v1  ;;  %1281 = vmatpush3.bf16.msra.mxu1 %v833_v8 }
 0x430   : > { %1292 = vmatprep.subr.bf16.mxu1 %v1372_v1 }
 0x4de   : > { %v698_v29 = vpop.f32.mrf.mxu0 }
 0x4e0   : > { %v1266_v30 = vpop.f32.mrf.mxu0 }
 0x4e2   : > { %v701_v31 = vpop.f32.mrf.mxu0 }
 0x4e4   : > { %v1267_v32 = vpop.f32.mrf.mxu0 }
 0x4e6   : > { %v651_v33 = vpop.f32.mrf.mxu1 }
 0x4e7   : > { %v1529_v34 = vadd.f32 %v698_v29, %v651_v33 }
 0x4e8   : > { %v1260_v35 = vpop.f32.mrf.mxu1 }
 0x4ea   : > { %v654_v36 = vpop.f32.mrf.mxu1 }
 0x4eb   : > { %v1531_v37 = vadd.f32 %v701_v31, %v654_v36 }
 0x4ec   : > { %v1261_v38 = vpop.f32.mrf.mxu1 }
 0x4ee   : > { %v749_v39 = vpop.f32.mrf.mxu1 }
 0x4ef   : > { %v756_v40 = vsel %vm407_vm3, %v749_v39, -inf }
 0x4f0   : > { %757 = vmax.xlane.f32.xlu1 %v756_v40  ;;  %v1272_v41 = vpop.f32.mrf.mxu1 }
 0x4f2   : > { %v752_v42 = vpop.f32.mrf.mxu1 }
 0x4f3   : > { %v759_v43 = vsel %vm411_vm4, %v752_v42, -inf }
 0x4f4   : > { %760 = vmax.xlane.f32.xlu0 %v759_v43  ;;  %v1273_v44 = vpop.f32.mrf.mxu1 }
 0x579   : > { %v758_v45 = vpop.xlane.xlu1 %757 }
 0x57a   : > { %v762_v46 = vsub.f32 %v749_v39, %v758_v45 }
 0x57c   : > { %v764_v47 = vmul.f32 1.442695, %v762_v46 }
 0x57d   : > { %v761_v48 = vpop.xlane.xlu0 %760 }
 0x57e   : > { %1344 = vpow2.f32 %v764_v47  ;;  %v763_v49 = vsub.f32 %v752_v42, %v761_v48 }
 0x580   : > { %v766_v50 = vmul.f32 1.442695, %v763_v49 }
 0x582   : > { %1346 = vpow2.f32 %v766_v50 }
 0x58b   : > { %v1345_v51 = vpop.eup %1344 }
 0x58c   : > { %v768_v52 = vsel %vm407_vm3, %v1345_v51, 0.0 }
 0x58d   : > { %769 = vadd.xlane.f32.xlu0 %v768_v52 }
 0x58f   : > { %v1347_v53 = vpop.eup %1346 }
 0x590   : > { %v771_v54 = vsel %vm411_vm4, %v1347_v53, 0.0 }
 0x591   : > { %772 = vadd.xlane.f32.xlu1 %v771_v54 }
 0x5a2   : > { %880 = vrot.lane.b32.xlu1 %v1468_v13, %s1382_s26 }
 0x5a3   : > { %779 = vrot.lane.b32.xlu0 %v1468_v13, %s1383_s27 }
 0x5a6   : > { %878 = vrot.lane.b32.xlu1 %v1468_v13, %s1384_s28 }
 0x616   : > { %v770_v55 = vpop.xlane.xlu0 %769 }
 0x617   : > { %1348 = vrcp.f32 %v770_v55 }
 0x61a   : > { %v773_v57 = vpop.xlane.xlu1 %772  ;;  %v780_v58 = vpop.permute.xlu0 %779 }
 0x61b   : > { %1350 = vrcp.f32 %v773_v57  ;;  %v785_v59 = vand.u32 %v780_v58, %v1496_v56 }
 0x61d   : > { %1275 = vmatpush3.bf16.msra.mxu0 %v785_v59 }
 0x61e   : > { %1286 = vmatprep.subr.bf16.mxu0 %v1372_v1  ;;  %v881_v0 = vpop.permute.xlu1 %880 }
 0x61f   : > { %v886_v5 = vsel %vm359_vm2, %v881_v0, 0 }
 0x622   : > { %v879_v6 = vpop.permute.xlu1 %878 }
 0x624   : > { %v1349_v60 = vpop.eup %1348 }
 0x625   : > { %v776_v62 = vmul.f32 %v1349_v60, %v1345_v51 }
 0x628   : > { %v1351_v61 = vpop.eup %1350 }
 0x629   : > { %v777_v63 = vmul.f32 %v1351_v61, %v1347_v53  ;;  %v1190_v53 = vld [vmem:[%s1601_s4] ss:$0 sm:$0xff] }
 0x62b   : > { %v778_v2 = vpack.c.bf16 %v777_v63, %v776_v62 }
 0x62d   : > { %1277 = vmatmul.mubr.msk.bf16.vlgmr.msra.gmra.mxu0 %vm407_vm3, %v778_v2 }
 0x62e   : > { %1287 = vmatpush3.bf16.xpose.msra.mxu0 %v886_v5  ;;  %1288 = vmatprep.mubr.msk.bf16.mxu0 %vm1373_vm0, %v1372_v1 }
 0x62f   : > { %1298 = vmatprep.subr.bf16.mxu0 %v1372_v1 }
 0x635   : > { %1289 = vmatmul.mubr.msk.bf16.vlgmr.msra.gmra.mxu0 %vm359_vm2, %v879_v6 }
 0x636   : > { %1300 = vmatprep.mubr.msk.bf16.mxu0 %vm1373_vm0, %v1372_v1 }
 0x6ed   : > { %v821_v9 = vpop.f32.mrf.mxu0 }
 0x6ef   : > { %v1278_v10 = vpop.f32.mrf.mxu0 }
 0x6f1   : > { %v824_v11 = vpop.f32.mrf.mxu0 }
 0x6f2   : > { %v828_v12 = vpack.c.bf16 %v824_v11, %v821_v9 }
 0x6f3   : > { %v1279_v14 = vpop.f32.mrf.mxu0 }
 0x6f4   : > { %1283 = vmatmul.mubr.msk.bf16.vlgmr.msra.gmra.mxu1 %vm359_vm2, %v828_v12 }
 0x6f5   : > { %v922_v15 = vpop.f32.mrf.mxu0  ;;  %1294 = vmatprep.mubr.msk.bf16.mxu1 %vm1373_vm0, %v1372_v1 }
 0x6f6   : > { %v929_v16 = vsel %vm407_vm3, %v922_v15, -inf }
 0x6f7   : > { %930 = vmax.xlane.f32.xlu0 %v929_v16  ;;  %v1290_v17 = vpop.f32.mrf.mxu0 }
 0x6f9   : > { %v925_v18 = vpop.f32.mrf.mxu0 }
 0x6fa   : > { %v932_v19 = vsel %vm411_vm4, %v925_v18, -inf }
 0x6fb   : > { %933 = vmax.xlane.f32.xlu1 %v932_v19  ;;  %v1291_v20 = vpop.f32.mrf.mxu0  ;;  %v1191_v19 = vld [vmem:[%s1602_s5] ss:$0 sm:$0xff] }
 0x70c   : > { %952 = vrot.lane.b32.xlu1 %v1468_v13, %s1385_s9 }
 0x780   : > { %v931_v21 = vpop.xlane.xlu0 %930 }
 0x781   : > { %v935_v22 = vsub.f32 %v922_v15, %v931_v21  ;;  %v1192_v21 = vld [vmem:[%s1603_s6] ss:$0 sm:$0xff] }
 0x783   : > { %v937_v23 = vmul.f32 1.442695, %v935_v22 }
 0x784   : > { %v934_v24 = vpop.xlane.xlu1 %933 }
 0x785   : > { %1352 = vpow2.f32 %v937_v23  ;;  %v936_v25 = vsub.f32 %v925_v18, %v934_v24 }
 0x787   : > { %v939_v26 = vmul.f32 1.442695, %v936_v25 }
 0x788   : > { %v953_v1 = vpop.permute.xlu1 %952 }
 0x789   : > { %1354 = vpow2.f32 %v939_v26  ;;  %v958_v27 = vand.u32 %v953_v1, %v1496_v56 }
 0x78b   : > { %1293 = vmatpush3.bf16.msra.mxu1 %v958_v27 }
 0x792   : > { %v1353_v28 = vpop.eup %1352 }
 0x793   : > { %v941_v29 = vsel %vm407_vm3, %v1353_v28, 0.0 }
 0x794   : > { %942 = vadd.xlane.f32.xlu0 %v941_v29 }
 0x796   : > { %v1355_v30 = vpop.eup %1354 }
 0x797   : > { %v944_v31 = vsel %vm411_vm4, %v1355_v30, 0.0 }
 0x798   : > { %945 = vadd.xlane.f32.xlu0 %v944_v31 }
 0x7b4   : > { %v869_v13 = vpop.f32.mrf.mxu1 }
 0x7b5   : > { %v876_v32 = vadd.f32 %v869_v13, %v1529_v34  ;;  %v354_v34 = vld [vmem:[%s1600_s3 + $0xc] sm:$0xf] }
 0x7b6   : > { %v1284_v33 = vpop.f32.mrf.mxu1  ;;  %v1006_v45 = vsel %vm613_vm7, %v354_v34, 0 }
 0x7b7   : > { %1299 = vmatpush3.bf16.msra.mxu0 %v1006_v45 }
 0x7b8   : > { %v872_v35 = vpop.f32.mrf.mxu1 }
 0x7b9   : > { %v877_v36 = vadd.f32 %v872_v35, %v1531_v37 }
 0x7ba   : > { %v1285_v38 = vpop.f32.mrf.mxu1 }
 0x81d   : > { %v943_v39 = vpop.xlane.xlu0 %942 }
 0x81e   : > { %1356 = vrcp.f32 %v943_v39 }
 0x821   : > { %v946_v56 = vpop.xlane.xlu0 %945 }
 0x822   : > { %1358 = vrcp.f32 %v946_v56 }
 0x82b   : > { %v1357_v40 = vpop.eup %1356 }
 0x82c   : > { %v949_v42 = vmul.f32 %v1357_v40, %v1353_v28 }
 0x82f   : > { %v1359_v41 = vpop.eup %1358 }
 0x830   : > { %v950_v43 = vmul.f32 %v1359_v41, %v1355_v30 }
 0x832   : > { %v951_v44 = vpack.c.bf16 %v950_v43, %v949_v42 }
 0x834   : > { %1295 = vmatmul.mubr.msk.bf16.vlgmr.msra.gmra.mxu1 %vm407_vm3, %v951_v44 }
 0x8f4   : > { %v994_v37 = vpop.f32.mrf.mxu1 }
 0x8f6   : > { %v1296_v46 = vpop.f32.mrf.mxu1 }
 0x8f8   : > { %v997_v47 = vpop.f32.mrf.mxu1 }
 0x8f9   : > { %v1001_v48 = vpack.c.bf16 %v997_v47, %v994_v37 }
 0x8fa   : > { %v1297_v49 = vpop.f32.mrf.mxu1 }
 0x8fb   : > { %1301 = vmatmul.mubr.msk.bf16.vlgmr.msra.gmra.mxu0 %vm359_vm2, %v1001_v48 }
 0x9bb   : > { %v1042_v50 = vpop.f32.mrf.mxu0 }
 0x9bc   : > { %v1049_v51 = vadd.f32 %v1042_v50, %v876_v32 }
 0x9bd   : > { %v1302_v52 = vpop.f32.mrf.mxu0 }
 0x9be   : > { %v1051_v54 = vadd.f32 %v1049_v51, %v1456_v3 }
 0x9bf   : > { %v1045_v55 = vpop.f32.mrf.mxu0 }
 0x9c0   : > { %v1050_v57 = vadd.f32 %v1045_v55, %v877_v36  ;;  %v1060_v58 = vadd.f32 %v1190_v53, %v1051_v54 }
 0x9c1   : > { %v1303_v59 = vpop.f32.mrf.mxu0 }
 0x9c2   : > { %v1052_v60 = vadd.f32 %v1050_v57, %v1458_v4  ;;  %v1064_v61 = vsel %vm306_vm1, %v1060_v58, 0.0 }
 0x9c3   : > { %1065 = vadd.xlane.f32.xlu0 %v1064_v61 }
 0x9c4   : > { %v1061_v62 = vadd.f32 %v1190_v53, %v1052_v60 }
 0x9c6   : > { %v1068_v63 = vsel %vm1067_vm8, %v1061_v62, 0.0 }
 0x9c7   : > { %1069 = vadd.xlane.f32.xlu0 %v1068_v63 }
 0xa4c   : > { %v1066_v0 = vpop.xlane.xlu0 %1065 }
 0xa4d   : > { %v1072_v2 = vmul.f32 0.03125, %v1066_v0 }
 0xa4f   : > { %v1074_v5 = vsub.f32 %v1060_v58, %v1072_v2 }
 0xa50   : > { %v1070_v6 = vpop.xlane.xlu0 %1069 }
 0xa51   : > { %v1073_v7 = vmul.f32 0.03125, %v1070_v6  ;;  %v1076_v3 = vmul.f32 %v1074_v5, %v1074_v5 }
 0xa53   : > { %v1075_v8 = vsub.f32 %v1061_v62, %v1073_v7  ;;  %v1078_v9 = vsel %vm306_vm1, %v1076_v3, 0.0 }
 0xa54   : > { %1079 = vadd.xlane.f32.xlu0 %v1078_v9 }
 0xa55   : > { %v1077_v10 = vmul.f32 %v1075_v8, %v1075_v8 }
 0xa57   : > { %v1081_v4 = vsel %vm1067_vm8, %v1077_v10, 0.0 }
 0xa58   : > { %1082 = vadd.xlane.f32.xlu0 %v1081_v4 }
 0xadd   : > { %v1080_v11 = vpop.xlane.xlu0 %1079 }
 0xade   : > { %v1084_v12 = vmul.f32 0.03125, %v1080_v11 }
 0xae0   : > { %v1086_v14 = vadd.f32 1e-05, %v1084_v12 }
 0xae1   : > { %v1083_v15 = vpop.xlane.xlu0 %1082 }
 0xae2   : > { %1360 = vrsqrt.f32 %v1086_v14  ;;  %v1085_v16 = vmul.f32 0.03125, %v1083_v15 }
 0xae4   : > { %v1087_v17 = vadd.f32 1e-05, %v1085_v16 }
 0xae6   : > { %1362 = vrsqrt.f32 %v1087_v17 }
 0xaef   : > { %v1361_v18 = vpop.eup %1360 }
 0xaf0   : > { %v1090_v20 = vmul.f32 %v1361_v18, %v1074_v5 }
 0xaf2   : > { %v1098_v22 = vmul.f32 %v1191_v19, %v1090_v20 }
 0xaf3   : > { %v1363_v23 = vpop.eup %1362 }
 0xaf4   : > { %v1106_v24 = vadd.f32 %v1192_v21, %v1098_v22  ;;  %v1091_v25 = vmul.f32 %v1363_v23, %v1075_v8 }
 0xaf6   : > { %1108 = vst.msk [vmem:[%s278_s20] sm:$0xff] %vm306_vm1, %v1106_v24  ;;  %v1099_v26 = vmul.f32 %v1191_v19, %v1091_v25 }
 0xaf8   : > { %v1107_v1 = vadd.f32 %v1192_v21, %v1099_v26 }
 0xafa   : > { %1109 = vst.msk [vmem:[%s278_s20 + $0x8] sm:$0x7f] %vm1067_vm8, %v1107_v1 }
 0xafb PF: > { %s17_s24 = sadd.s32 1, %s1370_s24  }
 0xafc   : > { %p14_p4 = scmp.ge.s32.totalorder %s17_s24, 4  }
 0xafe   :  { %16 = sbr.rel (!%p14_p4) target bundleno = 1 (0x1), region = 78 }

</bundles_post_ra>
